<compile_context>
chip_gen: v5e
topology: v5e:2x2
jax: 0.10.0
libtpu: 0.0.40
codegen_flags: <defaults>
</compile_context>

<pallas_src>
import functools

import jax
import jax.numpy as jnp
from jax.experimental import pallas as pl
from jax.experimental.pallas import tpu as pltpu

LEAKY_SLOPE = 0.01             # PyTorch nn.LeakyReLU() default
BN_EPS = 1e-5                  # PyTorch nn.BatchNorm2d default
COMPUTE_DTYPE = jnp.bfloat16   # MXU operand dtype (accumulation is always f32)


def _bilinear_matrix(n_in, n_out):
    """align_corners=True bilinear interpolation matrix, shape (n_out, n_in)."""
    o = jnp.arange(n_out)
    if n_out == 1:
        s = jnp.zeros((1,), jnp.float32)
    else:
        s = o.astype(jnp.float32) * (n_in - 1) / (n_out - 1)
    lo = jnp.floor(s).astype(jnp.int32)
    hi = jnp.minimum(lo + 1, n_in - 1)
    frac = s - lo.astype(jnp.float32)
    m = jnp.zeros((n_out, n_in), jnp.float32)
    m = m.at[o, lo].add(1.0 - frac)
    m = m.at[o, hi].add(frac)
    return m


def _round_up(x, m):
    return (x + m - 1) // m * m


def _pick_frames_per_step(n, sl, c_pad, itemsize, patches_budget_bytes=8 * 1024 * 1024):
    """Largest divisor B of n whose (9*C_pad, B*Ho*Wo) im2col buffer stays small."""
    best = 1
    for cand in range(1, n + 1):
        if n % cand == 0 and 9 * c_pad * cand * sl * itemsize <= patches_budget_bytes:
            best = cand
    return best


def _upsample_bn_kernel(x_ref, mup_ref, masks_ref,
                        w1_ref, s1_ref, t1_ref,
                        w2_ref, s2_ref, t2_ref,
                        out_ref, *, wo, sl, n_frames, cout):
    cdt = x_ref.dtype
    lanes = masks_ref.shape[1]                       # n_frames * Ho*Wo (lane axis)

    # ---- bilinear 2x upsample: ONE lane-native MXU matmul per folded frame ------
    mup = mup_ref[...]                               # (Hi*Wi, Ho*Wo), compute dtype
    ups = [jnp.dot(x_ref[b], mup, preferred_element_type=jnp.float32)
           for b in range(n_frames)]
    up = ups[0] if n_frames == 1 else jnp.concatenate(ups, axis=1)  # (Cp, lanes) f32

    # Per-tap border masks (frame-boundary aware).  Loaded ONCE and reused by both
    # convs; row k = mask for tap k = dy*3 + dx (0/1 values in the compute dtype).
    tap_masks = masks_ref[...]

    def conv3x3_bn_lrelu(v, w, s, t):
        # v: (Cp, lanes) activations in the MXU dtype, spatial-on-lanes.
        taps = []
        for dy in range(3):
            for dx in range(3):
                off = (dy - 1) * wo + (dx - 1)
                if off == 0:
                    tap = v
                else:
                    # Lane rotation on the XLU (otherwise idle slot) instead of
                    # misaligned halo-buffer slices; wrapped border lanes (frame
                    # edges and inter-frame boundaries) are zeroed by the mask.
                    tap = pltpu.roll(v, shift=(-off) % lanes, axis=1)
                    tap = tap * tap_masks[dy * 3 + dx]
                taps.append(tap)
        # (9*Cp, lanes): tile-aligned sublane stack -> ONE deep-K MXU matmul.
        patches = jnp.concatenate(taps, axis=0)
        y = jnp.dot(w, patches, preferred_element_type=jnp.float32)
        y = y * s + t                                # folded conv-bias + BN (f32)
        return jnp.where(y > 0, y, LEAKY_SLOPE * y)  # LeakyReLU (f32)

    y1 = conv3x3_bn_lrelu(up.astype(cdt), w1_ref[...], s1_ref[...], t1_ref[...])
    y2 = conv3x3_bn_lrelu(y1.astype(cdt), w2_ref[...], s2_ref[...], t2_ref[...])

    # Lane-dense stores: each frame's slab is (Cout, Ho*Wo); last dim multiple of 128
    # and both slice offsets (8-row channel cut, sl-multiple lane cut) tile-aligned.
    for b in range(n_frames):
        out_ref[b] = y2[:cout, b * sl:(b + 1) * sl].astype(out_ref.dtype)


def upsample_bn_forward(x_nchw, params, compute_dtype=COMPUTE_DTYPE,
                        out_dtype=jnp.float32):
    """Pallas implementation of UpSampleBN.forward.

    x_nchw: (N, Cin, H, W) f32.  `out_dtype=jnp.bfloat16` halves output HBM
    writeback if the downstream consumer tolerates it (default keeps f32).
    """
    n, cin, hi, wi = x_nchw.shape
    ho, wo = 2 * hi, 2 * wi
    cout = params['w1'].shape[-1]
    cdt = jnp.dtype(compute_dtype)

    # Channel counts zero-padded to the sublane tile of the MXU dtype so the
    # per-tap sublane concat in the kernel stays tile-aligned.
    tile = 8 * (4 // cdt.itemsize)
    cin_p = _round_up(cin, tile)
    cout_p = _round_up(cout, tile)
    q = hi * wi
    sl = ho * wo

    # Fold B frames onto the lane axis per grid step (amortizes weight loads, MXU
    # drain and per-step fixed cost); grid has N/B steps.
    b_frames = _pick_frames_per_step(n, sl, max(cin_p, cout_p), cdt.itemsize)
    g = n // b_frames
    lanes = b_frames * sl

    # ---- input: NCHW -> (N, Cin_p, Hi*Wi); spatial flattened onto the lane axis.
    x = x_nchw.reshape(n, cin, q).astype(jnp.float32)
    if cin_p > cin:
        x = jnp.concatenate([x, jnp.zeros((n, cin_p - cin, q), jnp.float32)], axis=1)
    x = x.astype(cdt)

    # ---- fused bilinear interpolation matrix M_up = kron(a.T, b.T)  (glue, f32).
    a = _bilinear_matrix(hi, ho)                               # (Ho, Hi)
    b = _bilinear_matrix(wi, wo)                               # (Wo, Wi)
    mup = jnp.kron(a.T, b.T).astype(cdt)                       # (Hi*Wi, Ho*Wo)

    # ---- per-tap border masks over the folded lane axis (hoisted to the host).
    idx = jnp.arange(lanes, dtype=jnp.int32)
    colx = idx % wo                      # x within a frame row
    rowy = (idx % sl) // wo              # y within a frame
    left = colx > 0
    right = colx < wo - 1
    top = rowy > 0
    bot = rowy < ho - 1
    ones = jnp.ones((lanes,), bool)
    rm = [top, ones, bot]
    cm = [left, ones, right]
    mask_rows = [rm[dy] & cm[dx] for dy in range(3) for dx in range(3)]
    mrows_p = _round_up(9, tile)
    masks = jnp.stack(mask_rows + [ones] * (mrows_p - 9), axis=0).astype(cdt)

    # ---- conv weights -> (Cout_p, 9*Cin_p) for the single im2col matmul.
    def prep_w(w, ci, co, ci_p, co_p):
        wp = jnp.zeros((3, 3, ci_p, co_p), jnp.float32).at[:, :, :ci, :co].set(w)
        return jnp.transpose(wp, (3, 0, 1, 2)).reshape(co_p, 9 * ci_p).astype(cdt)

    w1t = prep_w(params['w1'], cin, cout, cin_p, cout_p)
    w2t = prep_w(params['w2'], cout, cout, cout_p, cout_p)

    # ---- fold conv bias + eval-mode BatchNorm into per-channel scale/shift (f32).
    def fold(bias, gamma, beta, mean, var):
        s = gamma / jnp.sqrt(var + BN_EPS)
        t = (bias - mean) * s + beta
        sp = jnp.zeros((cout_p, 1), jnp.float32).at[:cout, 0].set(s)
        tp = jnp.zeros((cout_p, 1), jnp.float32).at[:cout, 0].set(t)
        return sp, tp

    s1, t1 = fold(params['b1'], params['g1'], params['be1'],
                  params['m1'], params['v1'])
    s2, t2 = fold(params['b2'], params['g2'], params['be2'],
                  params['m2'], params['v2'])

    kernel = functools.partial(_upsample_bn_kernel, wo=wo, sl=sl,
                               n_frames=b_frames, cout=cout)

    out = pl.pallas_call(
        kernel,
        out_shape=jax.ShapeDtypeStruct((n, cout, sl), out_dtype),
        grid_spec=pltpu.PrefetchScalarGridSpec(
            num_scalar_prefetch=0,
            grid=(g,),
            in_specs=[
                pl.BlockSpec((b_frames, cin_p, q), lambda i: (i, 0, 0)),   # x
                pl.BlockSpec((q, sl), lambda i: (0, 0)),                   # M_up
                pl.BlockSpec((mrows_p, lanes), lambda i: (0, 0)),          # tap masks
                pl.BlockSpec((cout_p, 9 * cin_p), lambda i: (0, 0)),       # w1
                pl.BlockSpec((cout_p, 1), lambda i: (0, 0)),               # s1
                pl.BlockSpec((cout_p, 1), lambda i: (0, 0)),               # t1
                pl.BlockSpec((cout_p, 9 * cout_p), lambda i: (0, 0)),      # w2
                pl.BlockSpec((cout_p, 1), lambda i: (0, 0)),               # s2
                pl.BlockSpec((cout_p, 1), lambda i: (0, 0)),               # t2
            ],
            out_specs=pl.BlockSpec((b_frames, cout, sl), lambda i: (i, 0, 0)),
        ),
        compiler_params=pltpu.CompilerParams(
            dimension_semantics=("parallel",),
            vmem_limit_bytes=32 * 1024 * 1024),
    )(x, mup, masks, w1t, s1, t1, w2t, s2, t2)

    # (N, Cout, Ho*Wo) -> NCHW: pure metadata reshape, no transpose needed.
    return out.reshape(n, cout, ho, wo)


def _reference(x_nchw, params):
    """Pure-JAX f32 reference (standard XLA ops; PyTorch-equivalent forward)."""
    x = jnp.transpose(x_nchw, (0, 2, 3, 1)).astype(jnp.float32)   # NHWC
    n, hi, wi, cin = x.shape
    ho, wo = 2 * hi, 2 * wi
    a = _bilinear_matrix(hi, ho)
    b = _bilinear_matrix(wi, wo)

    # bilinear 2x upsample (align_corners=True): W interp then H interp.
    t = jnp.einsum('pw,nhwc->nhpc', b, x, preferred_element_type=jnp.float32)
    up = jnp.einsum('oh,nhpc->nopc', a, t, preferred_element_type=jnp.float32)

    def conv(v, w, bias):
        out = jax.lax.conv_general_dilated(
            v, w, window_strides=(1, 1), padding='SAME',
            dimension_numbers=('NHWC', 'HWIO', 'NHWC'),
            preferred_element_type=jnp.float32)
        return out + bias

    def bn(v, g, be, m, var):
        return (v - m) / jnp.sqrt(var + BN_EPS) * g + be

    y = conv(up, params['w1'], params['b1'])
    y = bn(y, params['g1'], params['be1'], params['m1'], params['v1'])
    y = jnp.where(y > 0, y, LEAKY_SLOPE * y)
    y = conv(y, params['w2'], params['b2'])
    y = bn(y, params['g2'], params['be2'], params['m2'], params['v2'])
    y = jnp.where(y > 0, y, LEAKY_SLOPE * y)
    return jnp.transpose(y, (0, 3, 1, 2))


def init_params(key, in_channels, out_channels):
    ks = jax.random.split(key, 8)
    return {
        'w1': 0.1 * jax.random.normal(ks[0], (3, 3, in_channels, out_channels), jnp.float32),
        'b1': 0.1 * jax.random.normal(ks[1], (out_channels,), jnp.float32),
        'g1': 1.0 + 0.1 * jax.random.normal(ks[2], (out_channels,), jnp.float32),
        'be1': 0.1 * jax.random.normal(ks[3], (out_channels,), jnp.float32),
        'm1': jnp.zeros((out_channels,), jnp.float32),
        'v1': jnp.ones((out_channels,), jnp.float32),
        'w2': 0.1 * jax.random.normal(ks[4], (3, 3, out_channels, out_channels), jnp.float32),
        'b2': 0.1 * jax.random.normal(ks[5], (out_channels,), jnp.float32),
        'g2': 1.0 + 0.1 * jax.random.normal(ks[6], (out_channels,), jnp.float32),
        'be2': 0.1 * jax.random.normal(ks[7], (out_channels,), jnp.float32),
        'm2': jnp.zeros((out_channels,), jnp.float32),
        'v2': jnp.ones((out_channels,), jnp.float32),
    }


if __name__ == "__main__":
    key = jax.random.PRNGKey(0)
    k_x, k_p = jax.random.split(key)

    N, CIN, COUT, H, W = 2, 4, 8, 16, 16
    x = jax.random.normal(k_x, (N, CIN, H, W), jnp.float32)   # NCHW, like PyTorch
    params = init_params(k_p, CIN, COUT)

    ref = _reference(x, params)   # exact f32 PyTorch-equivalent forward

    # Full-f32 kernel path: tight structural check (fused kron upsample, roll taps,
    # border/frame masks and batch folding are exercised identically to bf16).
    out_f32 = jax.block_until_ready(
        upsample_bn_forward(x, params, compute_dtype=jnp.float32))
    assert out_f32.shape == (N, COUT, 2 * H, 2 * W), out_f32.shape
    err_f32 = float(jnp.max(jnp.abs(out_f32 - ref)))
    assert err_f32 < 1e-3, f"f32 path max abs error {err_f32}"

    # Default bf16-MXU path (f32 accumulation): numeric sanity vs the f32 reference
    # (bf16 rounding on activations, conv weights and the interpolation matrix).
    out = jax.block_until_ready(upsample_bn_forward(x, params))
    assert out.shape == (N, COUT, 2 * H, 2 * W), out.shape
    err_bf16 = float(jnp.max(jnp.abs(out - ref)))
    assert err_bf16 < 1e-1, f"bf16 path max abs error {err_bf16}"

    print("KERNEL_OK")
</pallas_src>

<mosaic_0001>
module attributes {stable_mosaic.version = 11 : i64} {
  func.func @_upsample_bn_kernel(%arg0: i32, %arg1: memref<2x8x256xf32, #tpu.memory_space<vmem>>, %arg2: memref<256x1024xf32, #tpu.memory_space<vmem>>, %arg3: memref<16x2048xf32, #tpu.memory_space<vmem>>, %arg4: memref<8x72xf32, #tpu.memory_space<vmem>>, %arg5: memref<8x1xf32, #tpu.memory_space<vmem>>, %arg6: memref<8x1xf32, #tpu.memory_space<vmem>>, %arg7: memref<8x72xf32, #tpu.memory_space<vmem>>, %arg8: memref<8x1xf32, #tpu.memory_space<vmem>>, %arg9: memref<8x1xf32, #tpu.memory_space<vmem>>, %arg10: memref<2x8x1024xf32, #tpu.memory_space<vmem>>) attributes {dimension_semantics = [#tpu.dimension_semantics<parallel>], iteration_bounds = array<i64: 1>, scalar_prefetch = 0 : i64, scratch_operands = 0 : i64, tpu.core_type = #tpu.core_type<tc>, window_params = [{transform_indices = @transform_0, window_bounds = array<i64: 2, 8, 256>}, {pipeline_mode = #tpu.pipeline_mode<synchronous>, transform_indices = @transform_1, window_bounds = array<i64: 256, 1024>}, {pipeline_mode = #tpu.pipeline_mode<synchronous>, transform_indices = @transform_2, window_bounds = array<i64: 16, 2048>}, {pipeline_mode = #tpu.pipeline_mode<synchronous>, transform_indices = @transform_3, window_bounds = array<i64: 8, 72>}, {pipeline_mode = #tpu.pipeline_mode<synchronous>, transform_indices = @transform_4, window_bounds = array<i64: 8, 1>}, {pipeline_mode = #tpu.pipeline_mode<synchronous>, transform_indices = @transform_5, window_bounds = array<i64: 8, 1>}, {pipeline_mode = #tpu.pipeline_mode<synchronous>, transform_indices = @transform_6, window_bounds = array<i64: 8, 72>}, {pipeline_mode = #tpu.pipeline_mode<synchronous>, transform_indices = @transform_7, window_bounds = array<i64: 8, 1>}, {pipeline_mode = #tpu.pipeline_mode<synchronous>, transform_indices = @transform_8, window_bounds = array<i64: 8, 1>}, {transform_indices = @transform_9, window_bounds = array<i64: 2, 8, 1024>}]} {
    %c0 = arith.constant 0 : index
    %c0_0 = arith.constant 0 : index
    %0 = vector.load %arg2[%c0, %c0_0] : memref<256x1024xf32, #tpu.memory_space<vmem>>, vector<256x1024xf32>
    %c0_1 = arith.constant 0 : index
    %c0_2 = arith.constant 0 : index
    %c0_3 = arith.constant 0 : index
    %1 = vector.load %arg1[%c0_1, %c0_2, %c0_3] : memref<2x8x256xf32, #tpu.memory_space<vmem>>, vector<1x8x256xf32>
    %2 = vector.shape_cast %1 : vector<1x8x256xf32> to vector<8x256xf32>
    %cst = arith.constant dense<0.000000e+00> : vector<8x1024xf32>
    %3 = tpu.matmul %2, %0, %cst {dimension_numbers = #tpu.dot_dimension_numbers<[1], [0], [0], [1], [0, 0, 1, 1], [], []>} : vector<8x256xf32>, vector<256x1024xf32>, vector<8x1024xf32> -> vector<8x1024xf32>
    %c1 = arith.constant 1 : index
    %c0_4 = arith.constant 0 : index
    %c0_5 = arith.constant 0 : index
    %4 = vector.load %arg1[%c1, %c0_4, %c0_5] : memref<2x8x256xf32, #tpu.memory_space<vmem>>, vector<1x8x256xf32>
    %5 = vector.shape_cast %4 : vector<1x8x256xf32> to vector<8x256xf32>
    %cst_6 = arith.constant dense<0.000000e+00> : vector<8x1024xf32>
    %6 = tpu.matmul %5, %0, %cst_6 {dimension_numbers = #tpu.dot_dimension_numbers<[1], [0], [0], [1], [0, 0, 1, 1], [], []>} : vector<8x256xf32>, vector<256x1024xf32>, vector<8x1024xf32> -> vector<8x1024xf32>
    %7 = tpu.concatenate %3, %6 in 1 : vector<8x1024xf32>, vector<8x1024xf32> -> vector<8x2048xf32>
    %c0_7 = arith.constant 0 : index
    %c0_8 = arith.constant 0 : index
    %8 = vector.load %arg3[%c0_7, %c0_8] : memref<16x2048xf32, #tpu.memory_space<vmem>>, vector<16x2048xf32>
    %c0_9 = arith.constant 0 : index
    %c0_10 = arith.constant 0 : index
    %9 = vector.load %arg4[%c0_9, %c0_10] : memref<8x72xf32, #tpu.memory_space<vmem>>, vector<8x72xf32>
    %c0_11 = arith.constant 0 : index
    %c0_12 = arith.constant 0 : index
    %10 = vector.load %arg5[%c0_11, %c0_12] : memref<8x1xf32, #tpu.memory_space<vmem>>, vector<8x1xf32>
    %c0_13 = arith.constant 0 : index
    %c0_14 = arith.constant 0 : index
    %11 = vector.load %arg6[%c0_13, %c0_14] : memref<8x1xf32, #tpu.memory_space<vmem>>, vector<8x1xf32>
    %c33_i32 = arith.constant 33 : i32
    %12 = tpu.dynamic_rotate %7 by %c33_i32 dim 1 : vector<8x2048xf32>, i32 -> vector<8x2048xf32>
    %13 = vector.extract_strided_slice %8 {offsets = [0, 0], sizes = [1, 2048], strides = [1, 1]} : vector<16x2048xf32> to vector<1x2048xf32>
    %14 = vector.shape_cast %13 : vector<1x2048xf32> to vector<2048xf32>
    %15 = vector.shape_cast %14 : vector<2048xf32> to vector<1x2048xf32>
    %16 = vector.broadcast %15 : vector<1x2048xf32> to vector<8x2048xf32>
    %17 = arith.mulf %12, %16 : vector<8x2048xf32>
    %c32_i32 = arith.constant 32 : i32
    %18 = tpu.dynamic_rotate %7 by %c32_i32 dim 1 : vector<8x2048xf32>, i32 -> vector<8x2048xf32>
    %19 = vector.extract_strided_slice %8 {offsets = [1, 0], sizes = [1, 2048], strides = [1, 1]} : vector<16x2048xf32> to vector<1x2048xf32>
    %20 = vector.shape_cast %19 : vector<1x2048xf32> to vector<2048xf32>
    %21 = vector.shape_cast %20 : vector<2048xf32> to vector<1x2048xf32>
    %22 = vector.broadcast %21 : vector<1x2048xf32> to vector<8x2048xf32>
    %23 = arith.mulf %18, %22 : vector<8x2048xf32>
    %c31_i32 = arith.constant 31 : i32
    %24 = tpu.dynamic_rotate %7 by %c31_i32 dim 1 : vector<8x2048xf32>, i32 -> vector<8x2048xf32>
    %25 = vector.extract_strided_slice %8 {offsets = [2, 0], sizes = [1, 2048], strides = [1, 1]} : vector<16x2048xf32> to vector<1x2048xf32>
    %26 = vector.shape_cast %25 : vector<1x2048xf32> to vector<2048xf32>
    %27 = vector.shape_cast %26 : vector<2048xf32> to vector<1x2048xf32>
    %28 = vector.broadcast %27 : vector<1x2048xf32> to vector<8x2048xf32>
    %29 = arith.mulf %24, %28 : vector<8x2048xf32>
    %c1_i32 = arith.constant 1 : i32
    %30 = tpu.dynamic_rotate %7 by %c1_i32 dim 1 : vector<8x2048xf32>, i32 -> vector<8x2048xf32>
    %31 = vector.extract_strided_slice %8 {offsets = [3, 0], sizes = [1, 2048], strides = [1, 1]} : vector<16x2048xf32> to vector<1x2048xf32>
    %32 = vector.shape_cast %31 : vector<1x2048xf32> to vector<2048xf32>
    %33 = vector.shape_cast %32 : vector<2048xf32> to vector<1x2048xf32>
    %34 = vector.broadcast %33 : vector<1x2048xf32> to vector<8x2048xf32>
    %35 = arith.mulf %30, %34 : vector<8x2048xf32>
    %c2047_i32 = arith.constant 2047 : i32
    %36 = tpu.dynamic_rotate %7 by %c2047_i32 dim 1 : vector<8x2048xf32>, i32 -> vector<8x2048xf32>
    %37 = vector.extract_strided_slice %8 {offsets = [5, 0], sizes = [1, 2048], strides = [1, 1]} : vector<16x2048xf32> to vector<1x2048xf32>
    %38 = vector.shape_cast %37 : vector<1x2048xf32> to vector<2048xf32>
    %39 = vector.shape_cast %38 : vector<2048xf32> to vector<1x2048xf32>
    %40 = vector.broadcast %39 : vector<1x2048xf32> to vector<8x2048xf32>
    %41 = arith.mulf %36, %40 : vector<8x2048xf32>
    %c2017_i32 = arith.constant 2017 : i32
    %42 = tpu.dynamic_rotate %7 by %c2017_i32 dim 1 : vector<8x2048xf32>, i32 -> vector<8x2048xf32>
    %43 = vector.extract_strided_slice %8 {offsets = [6, 0], sizes = [1, 2048], strides = [1, 1]} : vector<16x2048xf32> to vector<1x2048xf32>
    %44 = vector.shape_cast %43 : vector<1x2048xf32> to vector<2048xf32>
    %45 = vector.shape_cast %44 : vector<2048xf32> to vector<1x2048xf32>
    %46 = vector.broadcast %45 : vector<1x2048xf32> to vector<8x2048xf32>
    %47 = arith.mulf %42, %46 : vector<8x2048xf32>
    %c2016_i32 = arith.constant 2016 : i32
    %48 = tpu.dynamic_rotate %7 by %c2016_i32 dim 1 : vector<8x2048xf32>, i32 -> vector<8x2048xf32>
    %49 = vector.extract_strided_slice %8 {offsets = [7, 0], sizes = [1, 2048], strides = [1, 1]} : vector<16x2048xf32> to vector<1x2048xf32>
    %50 = vector.shape_cast %49 : vector<1x2048xf32> to vector<2048xf32>
    %51 = vector.shape_cast %50 : vector<2048xf32> to vector<1x2048xf32>
    %52 = vector.broadcast %51 : vector<1x2048xf32> to vector<8x2048xf32>
    %53 = arith.mulf %48, %52 : vector<8x2048xf32>
    %c2015_i32 = arith.constant 2015 : i32
    %54 = tpu.dynamic_rotate %7 by %c2015_i32 dim 1 : vector<8x2048xf32>, i32 -> vector<8x2048xf32>
    %55 = vector.extract_strided_slice %8 {offsets = [8, 0], sizes = [1, 2048], strides = [1, 1]} : vector<16x2048xf32> to vector<1x2048xf32>
    %56 = vector.shape_cast %55 : vector<1x2048xf32> to vector<2048xf32>
    %57 = vector.shape_cast %56 : vector<2048xf32> to vector<1x2048xf32>
    %58 = vector.broadcast %57 : vector<1x2048xf32> to vector<8x2048xf32>
    %59 = arith.mulf %54, %58 : vector<8x2048xf32>
    %60 = tpu.concatenate %17, %23, %29, %35, %7, %41, %47, %53, %59 in 0 : vector<8x2048xf32>, vector<8x2048xf32>, vector<8x2048xf32>, vector<8x2048xf32>, vector<8x2048xf32>, vector<8x2048xf32>, vector<8x2048xf32>, vector<8x2048xf32>, vector<8x2048xf32> -> vector<72x2048xf32>
    %cst_15 = arith.constant dense<0.000000e+00> : vector<8x2048xf32>
    %61 = tpu.matmul %9, %60, %cst_15 {dimension_numbers = #tpu.dot_dimension_numbers<[1], [0], [0], [1], [0, 0, 1, 1], [], []>} : vector<8x72xf32>, vector<72x2048xf32>, vector<8x2048xf32> -> vector<8x2048xf32>
    %62 = vector.broadcast %10 : vector<8x1xf32> to vector<8x2048xf32>
    %63 = arith.mulf %61, %62 : vector<8x2048xf32>
    %64 = vector.broadcast %11 : vector<8x1xf32> to vector<8x2048xf32>
    %65 = arith.addf %63, %64 : vector<8x2048xf32>
    %cst_16 = arith.constant 0.000000e+00 : f32
    %66 = vector.broadcast %cst_16 : f32 to vector<8x2048xf32>
    %67 = arith.cmpf ogt, %65, %66 : vector<8x2048xf32>
    %cst_17 = arith.constant 0.00999999977 : f32
    %68 = vector.broadcast %cst_17 : f32 to vector<8x2048xf32>
    %69 = arith.mulf %68, %65 : vector<8x2048xf32>
    %70 = arith.select %67, %65, %69 : vector<8x2048xi1>, vector<8x2048xf32>
    %c0_18 = arith.constant 0 : index
    %c0_19 = arith.constant 0 : index
    %71 = vector.load %arg7[%c0_18, %c0_19] : memref<8x72xf32, #tpu.memory_space<vmem>>, vector<8x72xf32>
    %c0_20 = arith.constant 0 : index
    %c0_21 = arith.constant 0 : index
    %72 = vector.load %arg8[%c0_20, %c0_21] : memref<8x1xf32, #tpu.memory_space<vmem>>, vector<8x1xf32>
    %c0_22 = arith.constant 0 : index
    %c0_23 = arith.constant 0 : index
    %73 = vector.load %arg9[%c0_22, %c0_23] : memref<8x1xf32, #tpu.memory_space<vmem>>, vector<8x1xf32>
    %c33_i32_24 = arith.constant 33 : i32
    %74 = tpu.dynamic_rotate %70 by %c33_i32_24 dim 1 : vector<8x2048xf32>, i32 -> vector<8x2048xf32>
    %75 = vector.extract_strided_slice %8 {offsets = [0, 0], sizes = [1, 2048], strides = [1, 1]} : vector<16x2048xf32> to vector<1x2048xf32>
    %76 = vector.shape_cast %75 : vector<1x2048xf32> to vector<2048xf32>
    %77 = vector.shape_cast %76 : vector<2048xf32> to vector<1x2048xf32>
    %78 = vector.broadcast %77 : vector<1x2048xf32> to vector<8x2048xf32>
    %79 = arith.mulf %74, %78 : vector<8x2048xf32>
    %c32_i32_25 = arith.constant 32 : i32
    %80 = tpu.dynamic_rotate %70 by %c32_i32_25 dim 1 : vector<8x2048xf32>, i32 -> vector<8x2048xf32>
    %81 = vector.extract_strided_slice %8 {offsets = [1, 0], sizes = [1, 2048], strides = [1, 1]} : vector<16x2048xf32> to vector<1x2048xf32>
    %82 = vector.shape_cast %81 : vector<1x2048xf32> to vector<2048xf32>
    %83 = vector.shape_cast %82 : vector<2048xf32> to vector<1x2048xf32>
    %84 = vector.broadcast %83 : vector<1x2048xf32> to vector<8x2048xf32>
    %85 = arith.mulf %80, %84 : vector<8x2048xf32>
    %c31_i32_26 = arith.constant 31 : i32
    %86 = tpu.dynamic_rotate %70 by %c31_i32_26 dim 1 : vector<8x2048xf32>, i32 -> vector<8x2048xf32>
    %87 = vector.extract_strided_slice %8 {offsets = [2, 0], sizes = [1, 2048], strides = [1, 1]} : vector<16x2048xf32> to vector<1x2048xf32>
    %88 = vector.shape_cast %87 : vector<1x2048xf32> to vector<2048xf32>
    %89 = vector.shape_cast %88 : vector<2048xf32> to vector<1x2048xf32>
    %90 = vector.broadcast %89 : vector<1x2048xf32> to vector<8x2048xf32>
    %91 = arith.mulf %86, %90 : vector<8x2048xf32>
    %c1_i32_27 = arith.constant 1 : i32
    %92 = tpu.dynamic_rotate %70 by %c1_i32_27 dim 1 : vector<8x2048xf32>, i32 -> vector<8x2048xf32>
    %93 = vector.extract_strided_slice %8 {offsets = [3, 0], sizes = [1, 2048], strides = [1, 1]} : vector<16x2048xf32> to vector<1x2048xf32>
    %94 = vector.shape_cast %93 : vector<1x2048xf32> to vector<2048xf32>
    %95 = vector.shape_cast %94 : vector<2048xf32> to vector<1x2048xf32>
    %96 = vector.broadcast %95 : vector<1x2048xf32> to vector<8x2048xf32>
    %97 = arith.mulf %92, %96 : vector<8x2048xf32>
    %c2047_i32_28 = arith.constant 2047 : i32
    %98 = tpu.dynamic_rotate %70 by %c2047_i32_28 dim 1 : vector<8x2048xf32>, i32 -> vector<8x2048xf32>
    %99 = vector.extract_strided_slice %8 {offsets = [5, 0], sizes = [1, 2048], strides = [1, 1]} : vector<16x2048xf32> to vector<1x2048xf32>
    %100 = vector.shape_cast %99 : vector<1x2048xf32> to vector<2048xf32>
    %101 = vector.shape_cast %100 : vector<2048xf32> to vector<1x2048xf32>
    %102 = vector.broadcast %101 : vector<1x2048xf32> to vector<8x2048xf32>
    %103 = arith.mulf %98, %102 : vector<8x2048xf32>
    %c2017_i32_29 = arith.constant 2017 : i32
    %104 = tpu.dynamic_rotate %70 by %c2017_i32_29 dim 1 : vector<8x2048xf32>, i32 -> vector<8x2048xf32>
    %105 = vector.extract_strided_slice %8 {offsets = [6, 0], sizes = [1, 2048], strides = [1, 1]} : vector<16x2048xf32> to vector<1x2048xf32>
    %106 = vector.shape_cast %105 : vector<1x2048xf32> to vector<2048xf32>
    %107 = vector.shape_cast %106 : vector<2048xf32> to vector<1x2048xf32>
    %108 = vector.broadcast %107 : vector<1x2048xf32> to vector<8x2048xf32>
    %109 = arith.mulf %104, %108 : vector<8x2048xf32>
    %c2016_i32_30 = arith.constant 2016 : i32
    %110 = tpu.dynamic_rotate %70 by %c2016_i32_30 dim 1 : vector<8x2048xf32>, i32 -> vector<8x2048xf32>
    %111 = vector.extract_strided_slice %8 {offsets = [7, 0], sizes = [1, 2048], strides = [1, 1]} : vector<16x2048xf32> to vector<1x2048xf32>
    %112 = vector.shape_cast %111 : vector<1x2048xf32> to vector<2048xf32>
    %113 = vector.shape_cast %112 : vector<2048xf32> to vector<1x2048xf32>
    %114 = vector.broadcast %113 : vector<1x2048xf32> to vector<8x2048xf32>
    %115 = arith.mulf %110, %114 : vector<8x2048xf32>
    %c2015_i32_31 = arith.constant 2015 : i32
    %116 = tpu.dynamic_rotate %70 by %c2015_i32_31 dim 1 : vector<8x2048xf32>, i32 -> vector<8x2048xf32>
    %117 = vector.extract_strided_slice %8 {offsets = [8, 0], sizes = [1, 2048], strides = [1, 1]} : vector<16x2048xf32> to vector<1x2048xf32>
    %118 = vector.shape_cast %117 : vector<1x2048xf32> to vector<2048xf32>
    %119 = vector.shape_cast %118 : vector<2048xf32> to vector<1x2048xf32>
    %120 = vector.broadcast %119 : vector<1x2048xf32> to vector<8x2048xf32>
    %121 = arith.mulf %116, %120 : vector<8x2048xf32>
    %122 = tpu.concatenate %79, %85, %91, %97, %70, %103, %109, %115, %121 in 0 : vector<8x2048xf32>, vector<8x2048xf32>, vector<8x2048xf32>, vector<8x2048xf32>, vector<8x2048xf32>, vector<8x2048xf32>, vector<8x2048xf32>, vector<8x2048xf32>, vector<8x2048xf32> -> vector<72x2048xf32>
    %cst_32 = arith.constant dense<0.000000e+00> : vector<8x2048xf32>
    %123 = tpu.matmul %71, %122, %cst_32 {dimension_numbers = #tpu.dot_dimension_numbers<[1], [0], [0], [1], [0, 0, 1, 1], [], []>} : vector<8x72xf32>, vector<72x2048xf32>, vector<8x2048xf32> -> vector<8x2048xf32>
    %124 = vector.broadcast %72 : vector<8x1xf32> to vector<8x2048xf32>
    %125 = arith.mulf %123, %124 : vector<8x2048xf32>
    %126 = vector.broadcast %73 : vector<8x1xf32> to vector<8x2048xf32>
    %127 = arith.addf %125, %126 : vector<8x2048xf32>
    %cst_33 = arith.constant 0.000000e+00 : f32
    %128 = vector.broadcast %cst_33 : f32 to vector<8x2048xf32>
    %129 = arith.cmpf ogt, %127, %128 : vector<8x2048xf32>
    %cst_34 = arith.constant 0.00999999977 : f32
    %130 = vector.broadcast %cst_34 : f32 to vector<8x2048xf32>
    %131 = arith.mulf %130, %127 : vector<8x2048xf32>
    %132 = arith.select %129, %127, %131 : vector<8x2048xi1>, vector<8x2048xf32>
    %133 = vector.extract_strided_slice %132 {offsets = [0, 0], sizes = [8, 1024], strides = [1, 1]} : vector<8x2048xf32> to vector<8x1024xf32>
    %c0_35 = arith.constant 0 : index
    %c0_36 = arith.constant 0 : index
    %c0_37 = arith.constant 0 : index
    %134 = vector.load %arg10[%c0_35, %c0_36, %c0_37] : memref<2x8x1024xf32, #tpu.memory_space<vmem>>, vector<1x8x1024xf32>
    %135 = vector.shape_cast %134 : vector<1x8x1024xf32> to vector<8x1024xf32>
    %136 = vector.shape_cast %133 : vector<8x1024xf32> to vector<1x8x1024xf32>
    tpu.vector_store %arg10[%c0_35, %c0_36, %c0_37], %136 {strides = array<i32>} : memref<2x8x1024xf32, #tpu.memory_space<vmem>>, vector<1x8x1024xf32>,
    %137 = vector.extract_strided_slice %132 {offsets = [0, 1024], sizes = [8, 1024], strides = [1, 1]} : vector<8x2048xf32> to vector<8x1024xf32>
    %c1_38 = arith.constant 1 : index
    %c0_39 = arith.constant 0 : index
    %c0_40 = arith.constant 0 : index
    %138 = vector.load %arg10[%c1_38, %c0_39, %c0_40] : memref<2x8x1024xf32, #tpu.memory_space<vmem>>, vector<1x8x1024xf32>
    %139 = vector.shape_cast %138 : vector<1x8x1024xf32> to vector<8x1024xf32>
    %140 = vector.shape_cast %137 : vector<8x1024xf32> to vector<1x8x1024xf32>
    tpu.vector_store %arg10[%c1_38, %c0_39, %c0_40], %140 {strides = array<i32>} : memref<2x8x1024xf32, #tpu.memory_space<vmem>>, vector<1x8x1024xf32>,
    return
  }
  func.func @transform_0(%arg0: i32) -> (i32, i32, i32) {
    %c0_i32 = arith.constant 0 : i32
    %c0_i32_0 = arith.constant 0 : i32
    %c0_i32_1 = arith.constant 0 : i32
    return %arg0, %c0_i32, %c0_i32_0 : i32, i32, i32
  }
  func.func @transform_1(%arg0: i32) -> (i32, i32) {
    %c0_i32 = arith.constant 0 : i32
    %c0_i32_0 = arith.constant 0 : i32
    %c0_i32_1 = arith.constant 0 : i32
    return %c0_i32, %c0_i32_0 : i32, i32
  }
  func.func @transform_2(%arg0: i32) -> (i32, i32) {
    %c0_i32 = arith.constant 0 : i32
    %c0_i32_0 = arith.constant 0 : i32
    %c0_i32_1 = arith.constant 0 : i32
    return %c0_i32, %c0_i32_0 : i32, i32
  }
  func.func @transform_3(%arg0: i32) -> (i32, i32) {
    %c0_i32 = arith.constant 0 : i32
    %c0_i32_0 = arith.constant 0 : i32
    %c0_i32_1 = arith.constant 0 : i32
    return %c0_i32, %c0_i32_0 : i32, i32
  }
  func.func @transform_4(%arg0: i32) -> (i32, i32) {
    %c0_i32 = arith.constant 0 : i32
    %c0_i32_0 = arith.constant 0 : i32
    %c0_i32_1 = arith.constant 0 : i32
    return %c0_i32, %c0_i32_0 : i32, i32
  }
  func.func @transform_5(%arg0: i32) -> (i32, i32) {
    %c0_i32 = arith.constant 0 : i32
    %c0_i32_0 = arith.constant 0 : i32
    %c0_i32_1 = arith.constant 0 : i32
    return %c0_i32, %c0_i32_0 : i32, i32
  }
  func.func @transform_6(%arg0: i32) -> (i32, i32) {
    %c0_i32 = arith.constant 0 : i32
    %c0_i32_0 = arith.constant 0 : i32
    %c0_i32_1 = arith.constant 0 : i32
    return %c0_i32, %c0_i32_0 : i32, i32
  }
  func.func @transform_7(%arg0: i32) -> (i32, i32) {
    %c0_i32 = arith.constant 0 : i32
    %c0_i32_0 = arith.constant 0 : i32
    %c0_i32_1 = arith.constant 0 : i32
    return %c0_i32, %c0_i32_0 : i32, i32
  }
  func.func @transform_8(%arg0: i32) -> (i32, i32) {
    %c0_i32 = arith.constant 0 : i32
    %c0_i32_0 = arith.constant 0 : i32
    %c0_i32_1 = arith.constant 0 : i32
    return %c0_i32, %c0_i32_0 : i32, i32
  }
  func.func @transform_9(%arg0: i32) -> (i32, i32, i32) {
    %c0_i32 = arith.constant 0 : i32
    %c0_i32_0 = arith.constant 0 : i32
    %c0_i32_1 = arith.constant 0 : i32
    return %arg0, %c0_i32, %c0_i32_0 : i32, i32, i32
  }
}

</mosaic_0001>

<bundles_post_ra>
// kernel: tpu_custom_call.1
= control target key start
LH: loop header
LB: loop body
LE: loop exit
PB: predicated region body
PF: predicated region fallthrough
CT: control target
= control target key end

     0   :  { %14 = vsyncpa [#allocation3], 0  ;;  %s7238_s0 = inlined_call_operand.hbm [shape: f32[2,8,256], index: 0, kind: input, shape index: {}]   ;;  %s7239_s1 = inlined_call_operand.hbm [shape: f32[256,1024], index: 1, kind: input, shape index: {}]   ;;  %s7240_s2 = inlined_call_operand.hbm [shape: f32[16,2048], index: 2, kind: input, shape index: {}]   ;;  %s7241_s3 = inlined_call_operand.vmem [shape: f32[8,72], index: 3, kind: input, shape index: {}]   ;;  %s7242_s4 = inlined_call_operand.vmem [shape: f32[8,1], index: 4, kind: input, shape index: {}]   ;;  %s7243_s5 = inlined_call_operand.vmem [shape: f32[8,1], index: 5, kind: input, shape index: {}]   ;;  %s7244_s6 = inlined_call_operand.vmem [shape: f32[8,72], index: 6, kind: input, shape index: {}]   ;;  %s7245_s7 = inlined_call_operand.vmem [shape: f32[8,1], index: 7, kind: input, shape index: {}]   ;;  %s7246_s8 = inlined_call_operand.vmem [shape: f32[8,1], index: 8, kind: input, shape index: {}]   ;;  %s7247_s9 = inlined_call_operand.hbm [shape: f32[2,8,1024], index: 9, kind: output, shape index: {}]  }
   0x1   :  { %15 = vsyncpa [#allocation6], 0  ;;  %s34_s11 = sshll.u32 %s7239_s1, 4  ;;  %s35_s11 = int_to_ptr.hbm [resolvable:$true] %s34_s11 }
   0x2   :  { %16 = vsyncpa [#allocation4], 0  ;;  %s3232_s12 = smov [#allocation5]   ;;  %s21_s16 = sshll.u32 %s7238_s0, 4  ;;  %s22_s16 = int_to_ptr.hbm [resolvable:$true] %s21_s16 }
   0x3   :  { %s36_s13 = sshll.u32 %s3232_s12, 4  ;;  %s3233_s17 = smov 1024   ;;  %s37_s13 = int_to_ptr.vmem [resolvable:$true] %s36_s13 }
   0x4   :  { %s3234_s18 = smov 64   ;;  %s3235_s19 = smov [#allocation2]  }
   0x5   :  { %42 = dma.hbm_to_vmem [thread:$0]  %s35_s11, 32768, %s37_s13, [#allocation6], %s3233_s17, %s3233_s17, %s3234_s18  }
   0x6   :  { %s23_s20 = sshll.u32 %s3235_s19, 4  ;;  %s3236_s1 = smov 256   ;;  %s24_s20 = int_to_ptr.vmem [resolvable:$true] %s23_s20 }
   0x7   :  { %s3237_s21 = smov 16   ;;  %s47_s24 = sshll.u32 %s7240_s2, 4  ;;  %s48_s24 = int_to_ptr.hbm [resolvable:$true] %s47_s24 }
   0x8   :  { %29 = dma.hbm_to_vmem [thread:$0]  %s22_s16, 512, %s24_s20, [#allocation3], %s3236_s1, %s3236_s1, %s3237_s21  }
   0x9   :  { %s3238_s25 = smov [#allocation7]   ;;  %s3239_s26 = smov 2048  }
   0xa   :  { %s49_s0 = sshll.u32 %s3238_s25, 4  ;;  %s3240_s27 = smov 128   ;;  %s50_s0 = int_to_ptr.vmem [resolvable:$true] %s49_s0 }
   0xb   :  { %55 = dma.hbm_to_vmem [thread:$0]  %s48_s24, 4096, %s50_s0, [#allocation6], %s3239_s26, %s3239_s26, %s3240_s27  }
   0xc   :  { %3226 = dma.done.wait [#allocation3], 512  }
   0xd   :  { %3227 = vsyncadd [#allocation3], 4294966784 }
   0xe   :  { %3228 = dma.done.wait [#allocation6], 36864  }
   0xf   :  { %3229 = vsyncadd [#allocation6], 4294930432  ;;  %v200_v0 = vld [vmem:[#allocation5 + $0x3c0] sm:$0xff]  ;;  %v201_v8 = vld [vmem:[#allocation5 + $0x3c8] sm:$0xff]  ;;  %s3241_s2 = smov 31   ;;  %s3242_s28 = smov 32  }
  0x10   :  { %v328_v1 = vld [vmem:[#allocation5 + $0x7c0] sm:$0xff]  ;;  %338 = vmatpush.msra.mxu0 %v200_v0  ;;  %v329_v9 = vld [vmem:[#allocation5 + $0x7c8] sm:$0xff]  ;;  %378 = vmatpush.msra.mxu2 %v201_v8  ;;  %v3394_v60 = vld [vmem:[#allocation5 + $0x3d0] sm:$0xff]  ;;  %s3243_s29 = smov 33   ;;  %s3244_s30 = smov 97   ;;  %vm1666_vm8 = vcmask 588800  }
  0x11   :  { %v192_v2 = vld [vmem:[#allocation5 + $0x380] sm:$0xff]  ;;  %358 = vmatpush.msra.mxu1 %v328_v1  ;;  %v193_v10 = vld [vmem:[#allocation5 + $0x388] sm:$0xff]  ;;  %398 = vmatpush.msra.mxu3 %v329_v9  ;;  %v3396_v61 = vld [vmem:[#allocation5 + $0x7d0] sm:$0xff]  ;;  %s3245_s10 = smov 127   ;;  %s3246_s11 = smov 1  }
  0x12   :  { %v320_v3 = vld [vmem:[#allocation5 + $0x780] sm:$0xff]  ;;  %339 = vmatpush.msra.mxu0 %v192_v2  ;;  %v321_v11 = vld [vmem:[#allocation5 + $0x788] sm:$0xff]  ;;  %379 = vmatpush.msra.mxu2 %v193_v10  ;;  %v3408_v0 = vld [vmem:[#allocation5 + $0x390] sm:$0xff]  ;;  %s3247_s12 = smov 96   ;;  %s3248_s13 = smov 95  }
  0x13   :  { %v184_v4 = vld [vmem:[#allocation5 + $0x340] sm:$0xff]  ;;  %359 = vmatpush.msra.mxu1 %v320_v3  ;;  %v185_v14 = vld [vmem:[#allocation5 + $0x348] sm:$0xff]  ;;  %399 = vmatpush.msra.mxu3 %v321_v11  ;;  %v3410_v1 = vld [vmem:[#allocation5 + $0x790] sm:$0xff]  ;;  %s3031_s25 = sshll.u32 %s7247_s9, 4  ;;  %s3032_s25 = int_to_ptr.hbm [resolvable:$true] %s3031_s25 }
  0x14   :  { %v312_v5 = vld [vmem:[#allocation5 + $0x740] sm:$0xff]  ;;  %340 = vmatpush.msra.mxu0 %v184_v4  ;;  %v313_v15 = vld [vmem:[#allocation5 + $0x748] sm:$0xff]  ;;  %380 = vmatpush.msra.mxu2 %v185_v14  ;;  %v3420_v4 = vld [vmem:[#allocation5 + $0x350] sm:$0xff] }
  0x15   :  { %v176_v6 = vld [vmem:[#allocation5 + $0x300] sm:$0xff]  ;;  %360 = vmatpush.msra.mxu1 %v312_v5  ;;  %v177_v18 = vld [vmem:[#allocation5 + $0x308] sm:$0xff]  ;;  %400 = vmatpush.msra.mxu3 %v313_v15  ;;  %v3422_v5 = vld [vmem:[#allocation5 + $0x750] sm:$0xff] }
  0x16   :  { %v304_v7 = vld [vmem:[#allocation5 + $0x700] sm:$0xff]  ;;  %341 = vmatpush.msra.mxu0 %v176_v6  ;;  %v305_v19 = vld [vmem:[#allocation5 + $0x708] sm:$0xff]  ;;  %381 = vmatpush.msra.mxu2 %v177_v18  ;;  %v3432_v8 = vld [vmem:[#allocation5 + $0x310] sm:$0xff] }
  0x17   :  { %v168_v12 = vld [vmem:[#allocation5 + $0x2c0] sm:$0xff]  ;;  %361 = vmatpush.msra.mxu1 %v304_v7  ;;  %v169_v22 = vld [vmem:[#allocation5 + $0x2c8] sm:$0xff]  ;;  %401 = vmatpush.msra.mxu3 %v305_v19  ;;  %v3434_v9 = vld [vmem:[#allocation5 + $0x710] sm:$0xff] }
  0x18   :  { %v296_v13 = vld [vmem:[#allocation5 + $0x6c0] sm:$0xff]  ;;  %342 = vmatpush.msra.mxu0 %v168_v12  ;;  %v297_v23 = vld [vmem:[#allocation5 + $0x6c8] sm:$0xff]  ;;  %382 = vmatpush.msra.mxu2 %v169_v22  ;;  %v3440_v10 = vld [vmem:[#allocation5 + $0x2d0] sm:$0xff] }
  0x19   :  { %v160_v16 = vld [vmem:[#allocation5 + $0x280] sm:$0xff]  ;;  %362 = vmatpush.msra.mxu1 %v296_v13  ;;  %v161_v26 = vld [vmem:[#allocation5 + $0x288] sm:$0xff]  ;;  %402 = vmatpush.msra.mxu3 %v297_v23  ;;  %v3442_v11 = vld [vmem:[#allocation5 + $0x6d0] sm:$0xff] }
  0x1a   :  { %v288_v17 = vld [vmem:[#allocation5 + $0x680] sm:$0xff]  ;;  %343 = vmatpush.msra.mxu0 %v160_v16  ;;  %v289_v27 = vld [vmem:[#allocation5 + $0x688] sm:$0xff]  ;;  %383 = vmatpush.msra.mxu2 %v161_v26  ;;  %v3446_v12 = vld [vmem:[#allocation5 + $0x3d8] sm:$0xff] }
  0x1b   :  { %v3313_v20 = vld [vmem:[#allocation5 + $0x240] sm:$0xff]  ;;  %363 = vmatpush.msra.mxu1 %v288_v17  ;;  %v153_v30 = vld [vmem:[#allocation5 + $0x248] sm:$0xff]  ;;  %403 = vmatpush.msra.mxu3 %v289_v27  ;;  %v3448_v13 = vld [vmem:[#allocation5 + $0x7d8] sm:$0xff] }
  0x1c   :  { %v3315_v21 = vld [vmem:[#allocation5 + $0x640] sm:$0xff]  ;;  %344 = vmatpush.msra.mxu0 %v3313_v20  ;;  %v281_v31 = vld [vmem:[#allocation5 + $0x648] sm:$0xff]  ;;  %384 = vmatpush.msra.mxu2 %v153_v30  ;;  %v3452_v14 = vld [vmem:[#allocation5 + $0x290] sm:$0xff] }
  0x1d   :  { %v3317_v24 = vld [vmem:[#allocation5 + $0x200] sm:$0xff]  ;;  %364 = vmatpush.msra.mxu1 %v3315_v21  ;;  %v145_v34 = vld [vmem:[#allocation5 + $0x208] sm:$0xff]  ;;  %404 = vmatpush.msra.mxu3 %v281_v31  ;;  %v3454_v15 = vld [vmem:[#allocation5 + $0x690] sm:$0xff] }
  0x1e   :  { %v3319_v25 = vld [vmem:[#allocation5 + $0x600] sm:$0xff]  ;;  %345 = vmatpush.msra.mxu0 %v3317_v24  ;;  %v273_v35 = vld [vmem:[#allocation5 + $0x608] sm:$0xff]  ;;  %385 = vmatpush.msra.mxu2 %v145_v34  ;;  %v3458_v16 = vld [vmem:[#allocation5 + $0x398] sm:$0xff] }
  0x1f   :  { %v3323_v28 = vld [vmem:[#allocation5 + $0x1c0] sm:$0xff]  ;;  %365 = vmatpush.msra.mxu1 %v3319_v25  ;;  %v3341_v38 = vld [vmem:[#allocation5 + $0x1c8] sm:$0xff]  ;;  %405 = vmatpush.msra.mxu3 %v273_v35  ;;  %v3460_v17 = vld [vmem:[#allocation5 + $0x798] sm:$0xff] }
  0x20   :  { %v3325_v29 = vld [vmem:[#allocation5 + $0x5c0] sm:$0xff]  ;;  %346 = vmatpush.msra.mxu0 %v3323_v28  ;;  %v265_v39 = vld [vmem:[#allocation5 + $0x5c8] sm:$0xff]  ;;  %386 = vmatpush.msra.mxu2 %v3341_v38  ;;  %7633 = vst [vmem:[#allocation12_spill] sm:$0xff] %v3460_v17  ;;  %v3464_v18 = vld [vmem:[#allocation5 + $0x250] sm:$0xff] }
  0x21   :  { %v3329_v32 = vld [vmem:[#allocation5 + $0x180] sm:$0xff]  ;;  %366 = vmatpush.msra.mxu1 %v3325_v29  ;;  %v3349_v42 = vld [vmem:[#allocation5 + $0x188] sm:$0xff]  ;;  %406 = vmatpush.msra.mxu3 %v265_v39  ;;  %v3466_v19 = vld [vmem:[#allocation5 + $0x650] sm:$0xff] }
  0x22   :  { %v3331_v33 = vld [vmem:[#allocation5 + $0x580] sm:$0xff]  ;;  %347 = vmatpush.msra.mxu0 %v3329_v32  ;;  %v257_v43 = vld [vmem:[#allocation5 + $0x588] sm:$0xff]  ;;  %387 = vmatpush.msra.mxu2 %v3349_v42  ;;  %v3470_v22 = vld [vmem:[#allocation5 + $0x358] sm:$0xff] }
  0x23   :  { %v3335_v36 = vld [vmem:[#allocation5 + $0x140] sm:$0xff]  ;;  %367 = vmatpush.msra.mxu1 %v3331_v33  ;;  %v3358_v46 = vld [vmem:[#allocation5 + $0x148] sm:$0xff]  ;;  %407 = vmatpush.msra.mxu3 %v257_v43  ;;  %7634 = vst [vmem:[#allocation13_spill] sm:$0xff] %v3470_v22  ;;  %v3472_v23 = vld [vmem:[#allocation5 + $0x758] sm:$0xff] }
  0x24   :  { %v3337_v37 = vld [vmem:[#allocation5 + $0x540] sm:$0xff]  ;;  %348 = vmatpush.msra.mxu0 %v3335_v36  ;;  %v249_v47 = vld [vmem:[#allocation5 + $0x548] sm:$0xff]  ;;  %388 = vmatpush.msra.mxu2 %v3358_v46  ;;  %7635 = vst [vmem:[#allocation14_spill] sm:$0xff] %v3472_v23  ;;  %v3476_v26 = vld [vmem:[#allocation5 + $0x210] sm:$0xff] }
  0x25   :  { %v3343_v40 = vld [vmem:[#allocation5 + $0x100] sm:$0xff]  ;;  %368 = vmatpush.msra.mxu1 %v3337_v37  ;;  %v3367_v50 = vld [vmem:[#allocation5 + $0x108] sm:$0xff]  ;;  %408 = vmatpush.msra.mxu3 %v249_v47  ;;  %7636 = vst [vmem:[#allocation15_spill] sm:$0xff] %v3476_v26  ;;  %v3478_v27 = vld [vmem:[#allocation5 + $0x610] sm:$0xff] }
  0x26   :  { %v3345_v41 = vld [vmem:[#allocation5 + $0x500] sm:$0xff]  ;;  %349 = vmatpush.msra.mxu0 %v3343_v40  ;;  %v3369_v51 = vld [vmem:[#allocation5 + $0x508] sm:$0xff]  ;;  %389 = vmatpush.msra.mxu2 %v3367_v50  ;;  %7637 = vst [vmem:[#allocation16_spill] sm:$0xff] %v3478_v27  ;;  %v3482_v30 = vld [vmem:[#allocation5 + $0x318] sm:$0xff] }
  0x27   :  { %v3351_v44 = vld [vmem:[#allocation5 + $0xc0] sm:$0xff]  ;;  %369 = vmatpush.msra.mxu1 %v3345_v41  ;;  %v3378_v54 = vld [vmem:[#allocation5 + $0xc8] sm:$0xff]  ;;  %409 = vmatpush.msra.mxu3 %v3369_v51  ;;  %7638 = vst [vmem:[#allocation17_spill] sm:$0xff] %v3482_v30  ;;  %v3484_v31 = vld [vmem:[#allocation5 + $0x718] sm:$0xff] }
  0x28   :  { %v3353_v45 = vld [vmem:[#allocation5 + $0x4c0] sm:$0xff]  ;;  %350 = vmatpush.msra.mxu0 %v3351_v44  ;;  %v3380_v55 = vld [vmem:[#allocation5 + $0x4c8] sm:$0xff]  ;;  %390 = vmatpush.msra.mxu2 %v3378_v54  ;;  %7639 = vst [vmem:[#allocation18_spill] sm:$0xff] %v3484_v31  ;;  %v3488_v34 = vld [vmem:[#allocation5 + $0x1d0] sm:$0xff] }
  0x29   :  { %v3360_v48 = vld [vmem:[#allocation5 + $0x80] sm:$0xff]  ;;  %370 = vmatpush.msra.mxu1 %v3353_v45  ;;  %v3392_v59 = vld [vmem:[#allocation2 + $0x8] sm:$0xff]  ;;  %410 = vmatpush.msra.mxu3 %v3380_v55  ;;  %7640 = vst [vmem:[#allocation19_spill] sm:$0xff] %v3488_v34  ;;  %v3490_v35 = vld [vmem:[#allocation5 + $0x5d0] sm:$0xff] }
  0x2a   :  { %v3362_v49 = vld [vmem:[#allocation5 + $0x480] sm:$0xff]  ;;  %351 = vmatpush.msra.mxu0 %v3360_v48  ;;  %v3402_v62 = vld [vmem:[#allocation5 + $0x88] sm:$0xff]  ;;  %7641 = vst [vmem:[#allocation20_spill] sm:$0xff] %v3490_v35  ;;  %v3494_v39 = vld [vmem:[#allocation5 + $0x2d8] sm:$0xff] }
  0x2b   :  { %v3371_v52 = vld [vmem:[#allocation5 + $0x40] sm:$0xff]  ;;  %371 = vmatpush.msra.mxu1 %v3362_v49  ;;  %v3404_v63 = vld [vmem:[#allocation5 + $0x488] sm:$0xff]  ;;  %391 = vmatpush.msra.mxu2 %v3402_v62  ;;  %7642 = vst [vmem:[#allocation21_spill] sm:$0xff] %v3494_v39  ;;  %v3496_v43 = vld [vmem:[#allocation5 + $0x6d8] sm:$0xff] }
  0x2c   :  { %v3373_v53 = vld [vmem:[#allocation5 + $0x440] sm:$0xff]  ;;  %352 = vmatpush.msra.mxu0 %v3371_v52  ;;  %v3414_v2 = vld [vmem:[#allocation5 + $0x48] sm:$0xff]  ;;  %411 = vmatpush.msra.mxu3 %v3404_v63  ;;  %7643 = vst [vmem:[#allocation22_spill] sm:$0xff] %v3496_v43  ;;  %v3500_v47 = vld [vmem:[#allocation5 + $0x190] sm:$0xff] }
  0x2d   :  { %v3382_v56 = vld [vmem:[#allocation5] sm:$0xff]  ;;  %372 = vmatpush.msra.mxu1 %v3373_v53  ;;  %v3416_v3 = vld [vmem:[#allocation5 + $0x448] sm:$0xff]  ;;  %392 = vmatpush.msra.mxu2 %v3414_v2  ;;  %7644 = vst [vmem:[#allocation23_spill] sm:$0xff] %v3500_v47 }
  0x2e   :  { %v3384_v57 = vld [vmem:[#allocation5 + $0x400] sm:$0xff]  ;;  %353 = vmatpush.msra.mxu0 %v3382_v56  ;;  %v3426_v6 = vld [vmem:[#allocation5 + $0x8] sm:$0xff]  ;;  %412 = vmatpush.msra.mxu3 %v3416_v3 }
  0x2f   :  { %v3390_v58 = vld [vmem:[#allocation2] sm:$0xff]  ;;  %373 = vmatpush.msra.mxu1 %v3384_v57  ;;  %v3428_v7 = vld [vmem:[#allocation5 + $0x408] sm:$0xff]  ;;  %393 = vmatpush.msra.mxu2 %v3426_v6 }
  0x30   :  { %354 = vmatmul.f32.vlgmr.msra.gmra.mxu0 %v3390_v58  ;;  %374 = vmatmul.f32.vlgmr.msra.gmra.mxu1 %v3392_v59 }
  0x31   :  { %418 = vmatpush.msrb.mxu0 %v3394_v60  ;;  %438 = vmatpush.msrb.mxu1 %v3396_v61 }
  0x32   :  { %413 = vmatpush.msra.mxu3 %v3428_v7  ;;  %394 = vmatmul.f32.vlgmr.msra.gmra.mxu2 %v3390_v58 }
  0x33   :  { %419 = vmatpush.msrb.mxu0 %v3408_v0  ;;  %439 = vmatpush.msrb.mxu1 %v3410_v1 }
  0x34   :  { %414 = vmatmul.f32.vlgmr.msra.gmra.mxu3 %v3392_v59  ;;  %458 = vmatpush.msrb.mxu2 %v3446_v12 }
  0x35   :  { %420 = vmatpush.msrb.mxu0 %v3420_v4  ;;  %440 = vmatpush.msrb.mxu1 %v3422_v5 }
  0x36   :  { %478 = vmatpush.msrb.mxu3 %v3448_v13  ;;  %459 = vmatpush.msrb.mxu2 %v3458_v16 }
  0x37   :  { %421 = vmatpush.msrb.mxu0 %v3432_v8  ;;  %441 = vmatpush.msrb.mxu1 %v3434_v9 }
  0x38   :  { %479 = vmatpush.msrb.mxu3 %v3460_v17  ;;  %460 = vmatpush.msrb.mxu2 %v3470_v22  ;;  %v3502_v22 = vld [vmem:[#allocation5 + $0x590] sm:$0xff]  ;;  %v3678_v17 = vld [vmem:[#allocation5 + $0x5e0] sm:$0xff] }
  0x39   :  { %422 = vmatpush.msrb.mxu0 %v3440_v10  ;;  %442 = vmatpush.msrb.mxu1 %v3442_v11  ;;  %7645 = vst [vmem:[#allocation24_spill] sm:$0xff] %v3502_v22 }
  0x3a   :  { %480 = vmatpush.msrb.mxu3 %v3472_v23  ;;  %461 = vmatpush.msrb.mxu2 %v3482_v30  ;;  %v3506_v23 = vld [vmem:[#allocation5 + $0x298] sm:$0xff]  ;;  %v3514_v30 = vld [vmem:[#allocation5 + $0x550] sm:$0xff]  ;;  %7703 = vst [vmem:[#allocation82_spill] sm:$0xff] %v3678_v17 }
  0x3b   :  { %423 = vmatpush.msrb.mxu0 %v3452_v14  ;;  %443 = vmatpush.msrb.mxu1 %v3454_v15  ;;  %7646 = vst [vmem:[#allocation25_spill] sm:$0xff] %v3506_v23 }
  0x3c   :  { %481 = vmatpush.msrb.mxu3 %v3484_v31  ;;  %462 = vmatpush.msrb.mxu2 %v3494_v39  ;;  %7649 = vst [vmem:[#allocation28_spill] sm:$0xff] %v3514_v30  ;;  %v3518_v31 = vld [vmem:[#allocation5 + $0x258] sm:$0xff]  ;;  %v3526_v39 = vld [vmem:[#allocation5 + $0x510] sm:$0xff] }
  0x3d   :  { %424 = vmatpush.msrb.mxu0 %v3464_v18  ;;  %444 = vmatpush.msrb.mxu1 %v3466_v19  ;;  %7650 = vst [vmem:[#allocation29_spill] sm:$0xff] %v3518_v31 }
  0x3e   :  { %482 = vmatpush.msrb.mxu3 %v3496_v43  ;;  %463 = vmatpush.msrb.mxu2 %v3506_v23  ;;  %7653 = vst [vmem:[#allocation32_spill] sm:$0xff] %v3526_v39  ;;  %v3530_v43 = vld [vmem:[#allocation5 + $0x218] sm:$0xff]  ;;  %v3538_v23 = vld [vmem:[#allocation5 + $0x4d0] sm:$0xff] }
  0x3f   :  { %425 = vmatpush.msrb.mxu0 %v3476_v26  ;;  %445 = vmatpush.msrb.mxu1 %v3478_v27  ;;  %v3508_v26 = vld [vmem:[#allocation5 + $0x698] sm:$0xff]  ;;  %v3512_v27 = vld [vmem:[#allocation5 + $0x150] sm:$0xff]  ;;  %7654 = vst [vmem:[#allocation33_spill] sm:$0xff] %v3530_v43 }
  0x40   :  { %7647 = vst [vmem:[#allocation26_spill] sm:$0xff] %v3508_v26  ;;  %483 = vmatpush.msrb.mxu3 %v3508_v26  ;;  %464 = vmatpush.msrb.mxu2 %v3518_v31  ;;  %v3542_v26 = vld [vmem:[#allocation5 + $0x1d8] sm:$0xff]  ;;  %v3550_v31 = vld [vmem:[#allocation5 + $0x490] sm:$0xff] }
  0x41   :  { %426 = vmatpush.msrb.mxu0 %v3488_v34  ;;  %446 = vmatpush.msrb.mxu1 %v3490_v35  ;;  %7648 = vst [vmem:[#allocation27_spill] sm:$0xff] %v3512_v27  ;;  %v3520_v34 = vld [vmem:[#allocation5 + $0x658] sm:$0xff]  ;;  %v3524_v35 = vld [vmem:[#allocation5 + $0x110] sm:$0xff] }
  0x42   :  { %7651 = vst [vmem:[#allocation30_spill] sm:$0xff] %v3520_v34  ;;  %484 = vmatpush.msrb.mxu3 %v3520_v34  ;;  %465 = vmatpush.msrb.mxu2 %v3530_v43  ;;  %v3554_v34 = vld [vmem:[#allocation5 + $0x198] sm:$0xff]  ;;  %v3562_v43 = vld [vmem:[#allocation5 + $0x450] sm:$0xff] }
  0x43   :  { %427 = vmatpush.msrb.mxu0 %v3500_v47  ;;  %447 = vmatpush.msrb.mxu1 %v3502_v22  ;;  %7652 = vst [vmem:[#allocation31_spill] sm:$0xff] %v3524_v35  ;;  %v3532_v47 = vld [vmem:[#allocation5 + $0x618] sm:$0xff]  ;;  %v3536_v22 = vld [vmem:[#allocation5 + $0xd0] sm:$0xff] }
  0x44   :  { %7655 = vst [vmem:[#allocation34_spill] sm:$0xff] %v3532_v47  ;;  %485 = vmatpush.msrb.mxu3 %v3532_v47  ;;  %466 = vmatpush.msrb.mxu2 %v3542_v26  ;;  %v3566_v47 = vld [vmem:[#allocation5 + $0x158] sm:$0xff] }
  0x45   :  { %428 = vmatpush.msrb.mxu0 %v3512_v27  ;;  %448 = vmatpush.msrb.mxu1 %v3514_v30  ;;  %7656 = vst [vmem:[#allocation35_spill] sm:$0xff] %v3536_v22  ;;  %v3544_v27 = vld [vmem:[#allocation5 + $0x5d8] sm:$0xff]  ;;  %v3548_v30 = vld [vmem:[#allocation5 + $0x90] sm:$0xff] }
  0x46   :  { %7657 = vst [vmem:[#allocation36_spill] sm:$0xff] %v3538_v23  ;;  %486 = vmatpush.msrb.mxu3 %v3544_v27  ;;  %467 = vmatpush.msrb.mxu2 %v3554_v34 }
  0x47   :  { %429 = vmatpush.msrb.mxu0 %v3524_v35  ;;  %449 = vmatpush.msrb.mxu1 %v3526_v39  ;;  %7658 = vst [vmem:[#allocation37_spill] sm:$0xff] %v3542_v26  ;;  %v3556_v35 = vld [vmem:[#allocation5 + $0x598] sm:$0xff]  ;;  %v3560_v39 = vld [vmem:[#allocation5 + $0x50] sm:$0xff] }
  0x48   :  { %7659 = vst [vmem:[#allocation38_spill] sm:$0xff] %v3544_v27  ;;  %487 = vmatpush.msrb.mxu3 %v3556_v35  ;;  %v3574_v26 = vld [vmem:[#allocation5 + $0x410] sm:$0xff]  ;;  %468 = vmatpush.msrb.mxu2 %v3566_v47  ;;  %v3580_v27 = vld [vmem:[#allocation5 + $0x118] sm:$0xff] }
  0x49   :  { %7660 = vst [vmem:[#allocation39_spill] sm:$0xff] %v3548_v30  ;;  %430 = vmatpush.msrb.mxu0 %v3536_v22  ;;  %450 = vmatpush.msrb.mxu1 %v3538_v23  ;;  %v3568_v22 = vld [vmem:[#allocation5 + $0x558] sm:$0xff]  ;;  %v3572_v23 = vld [vmem:[#allocation5 + $0x10] sm:$0xff] }
  0x4a   :  { %7661 = vst [vmem:[#allocation40_spill] sm:$0xff] %v3550_v31  ;;  %488 = vmatpush.msrb.mxu3 %v3568_v22  ;;  %469 = vmatpush.msrb.mxu2 %v3580_v27 }
  0x4b   :  { %7662 = vst [vmem:[#allocation41_spill] sm:$0xff] %v3554_v34  ;;  %431 = vmatpush.msrb.mxu0 %v3548_v30  ;;  %451 = vmatpush.msrb.mxu1 %v3550_v31  ;;  %v3582_v31 = vld [vmem:[#allocation5 + $0x518] sm:$0xff]  ;;  %v3588_v34 = vld [vmem:[#allocation5 + $0x7e0] sm:$0xff] }
  0x4c   :  { %7663 = vst [vmem:[#allocation42_spill] sm:$0xff] %v3556_v35  ;;  %v3586_v35 = vld [vmem:[#allocation5 + $0x3e0] sm:$0xff]  ;;  %489 = vmatpush.msrb.mxu3 %v3582_v31 }
  0x4d   :  { %7664 = vst [vmem:[#allocation43_spill] sm:$0xff] %v3560_v39  ;;  %432 = vmatpush.msrb.mxu0 %v3560_v39  ;;  %452 = vmatpush.msrb.mxu1 %v3562_v43  ;;  %v3606_v39 = vld [vmem:[#allocation5 + $0x498] sm:$0xff]  ;;  %v3610_v30 = vld [vmem:[#allocation5 + $0x360] sm:$0xff] }
  0x4e   :  { %7665 = vst [vmem:[#allocation44_spill] sm:$0xff] %v3562_v43  ;;  %v3592_v43 = vld [vmem:[#allocation5 + $0xd8] sm:$0xff] }
  0x4f   :  { %7666 = vst [vmem:[#allocation45_spill] sm:$0xff] %v3566_v47  ;;  %433 = vmatpush.msrb.mxu0 %v3572_v23  ;;  %453 = vmatpush.msrb.mxu1 %v3574_v26  ;;  %v3594_v47 = vld [vmem:[#allocation5 + $0x4d8] sm:$0xff] }
  0x50   :  { %7667 = vst [vmem:[#allocation46_spill] sm:$0xff] %v3568_v22  ;;  %434 = vmatmul.f32.vlgmr.msrb.gmra.mxu0 %v3390_v58  ;;  %454 = vmatmul.f32.vlgmr.msrb.gmra.mxu1 %v3392_v59  ;;  %v3598_v22 = vld [vmem:[#allocation5 + $0x3a0] sm:$0xff] }
  0x51   :  { %7668 = vst [vmem:[#allocation47_spill] sm:$0xff] %v3572_v23  ;;  %v3600_v23 = vld [vmem:[#allocation5 + $0x7a0] sm:$0xff]  ;;  %498 = vmatpush.msra.mxu0 %v3586_v35  ;;  %518 = vmatpush.msra.mxu1 %v3588_v34 }
  0x52   :  { %7669 = vst [vmem:[#allocation48_spill] sm:$0xff] %v3574_v26  ;;  %v3604_v26 = vld [vmem:[#allocation5 + $0x98] sm:$0xff]  ;;  %470 = vmatpush.msrb.mxu2 %v3592_v43  ;;  %490 = vmatpush.msrb.mxu3 %v3594_v47 }
  0x53   :  { %7670 = vst [vmem:[#allocation49_spill] sm:$0xff] %v3580_v27  ;;  %v3612_v27 = vld [vmem:[#allocation5 + $0x760] sm:$0xff]  ;;  %499 = vmatpush.msra.mxu0 %v3598_v22  ;;  %519 = vmatpush.msra.mxu1 %v3600_v23 }
  0x54   :  { %7671 = vst [vmem:[#allocation50_spill] sm:$0xff] %v3582_v31  ;;  %v3616_v31 = vld [vmem:[#allocation5 + $0x58] sm:$0xff]  ;;  %471 = vmatpush.msrb.mxu2 %v3604_v26  ;;  %491 = vmatpush.msrb.mxu3 %v3606_v39 }
  0x55   :  { %7672 = vst [vmem:[#allocation51_spill] sm:$0xff] %v3586_v35  ;;  %v3618_v35 = vld [vmem:[#allocation5 + $0x458] sm:$0xff]  ;;  %500 = vmatpush.msra.mxu0 %v3610_v30  ;;  %520 = vmatpush.msra.mxu1 %v3612_v27 }
  0x56   :  { %7673 = vst [vmem:[#allocation52_spill] sm:$0xff] %v3588_v34  ;;  %v3622_v34 = vld [vmem:[#allocation5 + $0x320] sm:$0xff]  ;;  %472 = vmatpush.msrb.mxu2 %v3616_v31  ;;  %492 = vmatpush.msrb.mxu3 %v3618_v35 }
  0x57   :  { %7674 = vst [vmem:[#allocation53_spill] sm:$0xff] %v3592_v43  ;;  %v3624_v43 = vld [vmem:[#allocation5 + $0x720] sm:$0xff]  ;;  %501 = vmatpush.msra.mxu0 %v3622_v34 }
  0x58   :  { %7675 = vst [vmem:[#allocation54_spill] sm:$0xff] %v3594_v47  ;;  %v3628_v47 = vld [vmem:[#allocation5 + $0x18] sm:$0xff]  ;;  %521 = vmatpush.msra.mxu1 %v3624_v43 }
  0x59   :  { %7676 = vst [vmem:[#allocation55_spill] sm:$0xff] %v3598_v22  ;;  %v3630_v22 = vld [vmem:[#allocation5 + $0x418] sm:$0xff]  ;;  %473 = vmatpush.msrb.mxu2 %v3628_v47 }
  0x5a   :  { %7677 = vst [vmem:[#allocation56_spill] sm:$0xff] %v3600_v23  ;;  %v3634_v23 = vld [vmem:[#allocation5 + $0x2e0] sm:$0xff]  ;;  %493 = vmatpush.msrb.mxu3 %v3630_v22  ;;  %474 = vmatmul.f32.vlgmr.msrb.gmra.mxu2 %v3390_v58 }
  0x5b   :  { %7678 = vst [vmem:[#allocation57_spill] sm:$0xff] %v3604_v26  ;;  %v3636_v26 = vld [vmem:[#allocation5 + $0x6e0] sm:$0xff]  ;;  %502 = vmatpush.msra.mxu0 %v3634_v23  ;;  %494 = vmatmul.f32.vlgmr.msrb.gmra.mxu3 %v3392_v59 }
  0x5c   :  { %7679 = vst [vmem:[#allocation58_spill] sm:$0xff] %v3606_v39  ;;  %522 = vmatpush.msra.mxu1 %v3636_v26  ;;  %v3672_v39 = vld [vmem:[#allocation5 + $0x368] sm:$0xff] }
  0x5d   :  { %7680 = vst [vmem:[#allocation59_spill] sm:$0xff] %v3610_v30  ;;  %v3644_v30 = vld [vmem:[#allocation5 + $0x6a0] sm:$0xff] }
  0x5e   :  { %7681 = vst [vmem:[#allocation60_spill] sm:$0xff] %v3612_v27  ;;  %v3642_v27 = vld [vmem:[#allocation5 + $0x2a0] sm:$0xff]  ;;  %523 = vmatpush.msra.mxu1 %v3644_v30 }
  0x5f   :  { %7682 = vst [vmem:[#allocation61_spill] sm:$0xff] %v3616_v31  ;;  %v3650_v31 = vld [vmem:[#allocation5 + $0x7e8] sm:$0xff]  ;;  %503 = vmatpush.msra.mxu0 %v3642_v27 }
  0x60   :  { %7683 = vst [vmem:[#allocation62_spill] sm:$0xff] %v3618_v35  ;;  %v3648_v35 = vld [vmem:[#allocation5 + $0x3e8] sm:$0xff]  ;;  %558 = vmatpush.msra.mxu3 %v3650_v31 }
  0x61   :  { %7684 = vst [vmem:[#allocation63_spill] sm:$0xff] %v3622_v34  ;;  %v3666_v34 = vld [vmem:[#allocation5 + $0x620] sm:$0xff]  ;;  %538 = vmatpush.msra.mxu2 %v3648_v35 }
  0x62   :  { %7685 = vst [vmem:[#allocation64_spill] sm:$0xff] %v3624_v43  ;;  %v3654_v43 = vld [vmem:[#allocation5 + $0x260] sm:$0xff] }
  0x63   :  { %7686 = vst [vmem:[#allocation65_spill] sm:$0xff] %v3628_v47  ;;  %v3656_v47 = vld [vmem:[#allocation5 + $0x660] sm:$0xff]  ;;  %504 = vmatpush.msra.mxu0 %v3654_v43 }
  0x64   :  { %7687 = vst [vmem:[#allocation66_spill] sm:$0xff] %v3630_v22  ;;  %v3660_v22 = vld [vmem:[#allocation5 + $0x3a8] sm:$0xff]  ;;  %524 = vmatpush.msra.mxu1 %v3656_v47 }
  0x65   :  { %7688 = vst [vmem:[#allocation67_spill] sm:$0xff] %v3634_v23  ;;  %v3662_v23 = vld [vmem:[#allocation5 + $0x7a8] sm:$0xff]  ;;  %539 = vmatpush.msra.mxu2 %v3660_v22 }
  0x66   :  { %7689 = vst [vmem:[#allocation68_spill] sm:$0xff] %v3636_v26  ;;  %v3664_v26 = vld [vmem:[#allocation5 + $0x220] sm:$0xff]  ;;  %559 = vmatpush.msra.mxu3 %v3662_v23  ;;  %525 = vmatpush.msra.mxu1 %v3666_v34 }
  0x67   :  { %7690 = vst [vmem:[#allocation69_spill] sm:$0xff] %v3642_v27  ;;  %v3674_v27 = vld [vmem:[#allocation5 + $0x768] sm:$0xff]  ;;  %505 = vmatpush.msra.mxu0 %v3664_v26  ;;  %540 = vmatpush.msra.mxu2 %v3672_v39 }
  0x68   :  { %7691 = vst [vmem:[#allocation70_spill] sm:$0xff] %v3644_v30  ;;  %v3676_v30 = vld [vmem:[#allocation5 + $0x1e0] sm:$0xff]  ;;  %560 = vmatpush.msra.mxu3 %v3674_v27  ;;  %526 = vmatpush.msra.mxu1 %v3678_v17 }
  0x69   :  { %7692 = vst [vmem:[#allocation71_spill] sm:$0xff] %v3648_v35  ;;  %v3690_v35 = vld [vmem:[#allocation5 + $0x5a0] sm:$0xff]  ;;  %506 = vmatpush.msra.mxu0 %v3676_v30 }
  0x6a   :  { %7693 = vst [vmem:[#allocation72_spill] sm:$0xff] %v3650_v31  ;;  %v3684_v31 = vld [vmem:[#allocation5 + $0x328] sm:$0xff]  ;;  %527 = vmatpush.msra.mxu1 %v3690_v35  ;;  %v3712_v17 = vld [vmem:[#allocation5 + $0x120] sm:$0xff] }
  0x6b   :  { %7694 = vst [vmem:[#allocation73_spill] sm:$0xff] %v3654_v43  ;;  %v3686_v43 = vld [vmem:[#allocation5 + $0x728] sm:$0xff]  ;;  %541 = vmatpush.msra.mxu2 %v3684_v31 }
  0x6c   :  { %7695 = vst [vmem:[#allocation74_spill] sm:$0xff] %v3656_v47  ;;  %v3688_v47 = vld [vmem:[#allocation5 + $0x1a0] sm:$0xff]  ;;  %561 = vmatpush.msra.mxu3 %v3686_v43 }
  0x6d   :  { %7696 = vst [vmem:[#allocation75_spill] sm:$0xff] %v3660_v22  ;;  %v3702_v22 = vld [vmem:[#allocation5 + $0x560] sm:$0xff]  ;;  %507 = vmatpush.msra.mxu0 %v3688_v47 }
  0x6e   :  { %7697 = vst [vmem:[#allocation76_spill] sm:$0xff] %v3662_v23  ;;  %v3696_v23 = vld [vmem:[#allocation5 + $0x2e8] sm:$0xff]  ;;  %528 = vmatpush.msra.mxu1 %v3702_v22 }
  0x6f   :  { %7698 = vst [vmem:[#allocation77_spill] sm:$0xff] %v3664_v26  ;;  %v3698_v26 = vld [vmem:[#allocation5 + $0x6e8] sm:$0xff]  ;;  %542 = vmatpush.msra.mxu2 %v3696_v23 }
  0x70   :  { %7699 = vst [vmem:[#allocation78_spill] sm:$0xff] %v3666_v34  ;;  %v3700_v34 = vld [vmem:[#allocation5 + $0x160] sm:$0xff]  ;;  %562 = vmatpush.msra.mxu3 %v3698_v26 }
  0x71   :  { %7700 = vst [vmem:[#allocation79_spill] sm:$0xff] %v3672_v39  ;;  %v3714_v39 = vld [vmem:[#allocation5 + $0x520] sm:$0xff]  ;;  %508 = vmatpush.msra.mxu0 %v3700_v34 }
  0x72   :  { %7701 = vst [vmem:[#allocation80_spill] sm:$0xff] %v3674_v27  ;;  %v3708_v27 = vld [vmem:[#allocation5 + $0x2a8] sm:$0xff]  ;;  %529 = vmatpush.msra.mxu1 %v3714_v39 }
  0x73   :  { %7702 = vst [vmem:[#allocation81_spill] sm:$0xff] %v3676_v30  ;;  %v3710_v30 = vld [vmem:[#allocation5 + $0x6a8] sm:$0xff]  ;;  %543 = vmatpush.msra.mxu2 %v3708_v27  ;;  %509 = vmatpush.msra.mxu0 %v3712_v17 }
  0x74   :  { %7704 = vst [vmem:[#allocation83_spill] sm:$0xff] %v3684_v31  ;;  %v3726_v31 = vld [vmem:[#allocation5 + $0x4e0] sm:$0xff]  ;;  %563 = vmatpush.msra.mxu3 %v3710_v30 }
  0x75   :  { %7705 = vst [vmem:[#allocation84_spill] sm:$0xff] %v3686_v43  ;;  %v3720_v43 = vld [vmem:[#allocation5 + $0x268] sm:$0xff]  ;;  %530 = vmatpush.msra.mxu1 %v3726_v31 }
  0x76   :  { %7706 = vst [vmem:[#allocation85_spill] sm:$0xff] %v3688_v47  ;;  %v3722_v47 = vld [vmem:[#allocation5 + $0x668] sm:$0xff]  ;;  %544 = vmatpush.msra.mxu2 %v3720_v43 }
  0x77   :  { %7707 = vst [vmem:[#allocation86_spill] sm:$0xff] %v3690_v35  ;;  %v3724_v35 = vld [vmem:[#allocation5 + $0xe0] sm:$0xff]  ;;  %564 = vmatpush.msra.mxu3 %v3722_v47 }
  0x78   :  { %7708 = vst [vmem:[#allocation87_spill] sm:$0xff] %v3696_v23  ;;  %v3738_v23 = vld [vmem:[#allocation5 + $0x4a0] sm:$0xff]  ;;  %510 = vmatpush.msra.mxu0 %v3724_v35 }
  0x79   :  { %7709 = vst [vmem:[#allocation88_spill] sm:$0xff] %v3698_v26  ;;  %v3732_v26 = vld [vmem:[#allocation5 + $0x228] sm:$0xff]  ;;  %531 = vmatpush.msra.mxu1 %v3738_v23 }
  0x7a   :  { %7710 = vst [vmem:[#allocation89_spill] sm:$0xff] %v3700_v34  ;;  %v3734_v34 = vld [vmem:[#allocation5 + $0x628] sm:$0xff]  ;;  %545 = vmatpush.msra.mxu2 %v3732_v26 }
  0x7b   :  { %7711 = vst [vmem:[#allocation90_spill] sm:$0xff] %v3702_v22  ;;  %v3736_v22 = vld [vmem:[#allocation5 + $0xa0] sm:$0xff]  ;;  %565 = vmatpush.msra.mxu3 %v3734_v34 }
  0x7c   :  { %7712 = vst [vmem:[#allocation91_spill] sm:$0xff] %v3708_v27  ;;  %v3750_v27 = vld [vmem:[#allocation5 + $0x460] sm:$0xff]  ;;  %511 = vmatpush.msra.mxu0 %v3736_v22 }
  0x7d   :  { %7713 = vst [vmem:[#allocation92_spill] sm:$0xff] %v3710_v30  ;;  %v3744_v30 = vld [vmem:[#allocation5 + $0x1e8] sm:$0xff]  ;;  %532 = vmatpush.msra.mxu1 %v3750_v27 }
  0x7e   :  { %7714 = vst [vmem:[#allocation93_spill] sm:$0xff] %v3712_v17  ;;  %v3746_v17 = vld [vmem:[#allocation5 + $0x5e8] sm:$0xff]  ;;  %546 = vmatpush.msra.mxu2 %v3744_v30 }
  0x7f   :  { %7715 = vst [vmem:[#allocation94_spill] sm:$0xff] %v3714_v39  ;;  %v3748_v39 = vld [vmem:[#allocation5 + $0x60] sm:$0xff]  ;;  %566 = vmatpush.msra.mxu3 %v3746_v17 }
  0x80   :  { %7716 = vst [vmem:[#allocation95_spill] sm:$0xff] %v3720_v43  ;;  %v3762_v43 = vld [vmem:[#allocation5 + $0x420] sm:$0xff]  ;;  %512 = vmatpush.msra.mxu0 %v3748_v39 }
  0x81   :  { %7717 = vst [vmem:[#allocation96_spill] sm:$0xff] %v3722_v47  ;;  %v3756_v47 = vld [vmem:[#allocation5 + $0x1a8] sm:$0xff]  ;;  %533 = vmatpush.msra.mxu1 %v3762_v43 }
  0x82   :  { %7718 = vst [vmem:[#allocation97_spill] sm:$0xff] %v3724_v35  ;;  %v3758_v35 = vld [vmem:[#allocation5 + $0x5a8] sm:$0xff]  ;;  %547 = vmatpush.msra.mxu2 %v3756_v47  ;;  %534 = vmatmul.f32.vlgmr.msra.gmra.mxu1 %v3392_v59 }
  0x83   :  { %7719 = vst [vmem:[#allocation98_spill] sm:$0xff] %v3726_v31  ;;  %v3760_v31 = vld [vmem:[#allocation5 + $0x20] sm:$0xff]  ;;  %567 = vmatpush.msra.mxu3 %v3758_v35 }
  0x84   :  { %7720 = vst [vmem:[#allocation99_spill] sm:$0xff] %v3732_v26  ;;  %513 = vmatpush.msra.mxu0 %v3760_v31  ;;  %v3806_v26 = vld [vmem:[#allocation5 + $0x4a8] sm:$0xff] }
  0x85   :  { %7721 = vst [vmem:[#allocation100_spill] sm:$0xff] %v3734_v34  ;;  %v3776_v34 = vld [vmem:[#allocation5 + $0x3f0] sm:$0xff]  ;;  %514 = vmatmul.f32.vlgmr.msra.gmra.mxu0 %v3390_v58 }
  0x86   :  { %7722 = vst [vmem:[#allocation101_spill] sm:$0xff] %v3736_v22  ;;  %v3772_v22 = vld [vmem:[#allocation5 + $0x568] sm:$0xff]  ;;  %578 = vmatpush.msrb.mxu0 %v3776_v34 }
  0x87   :  { %7723 = vst [vmem:[#allocation102_spill] sm:$0xff] %v3738_v23  ;;  %v3770_v23 = vld [vmem:[#allocation5 + $0x168] sm:$0xff]  ;;  %568 = vmatpush.msra.mxu3 %v3772_v22 }
  0x88   :  { %7724 = vst [vmem:[#allocation103_spill] sm:$0xff] %v3744_v30  ;;  %v3778_v30 = vld [vmem:[#allocation5 + $0x7f0] sm:$0xff]  ;;  %548 = vmatpush.msra.mxu2 %v3770_v23 }
  0x89   :  { %7725 = vst [vmem:[#allocation104_spill] sm:$0xff] %v3746_v17  ;;  %598 = vmatpush.msrb.mxu1 %v3778_v30  ;;  %v3800_v17 = vld [vmem:[#allocation5 + $0x370] sm:$0xff] }
  0x8a   :  { %7726 = vst [vmem:[#allocation105_spill] sm:$0xff] %v3748_v39  ;;  %v3794_v39 = vld [vmem:[#allocation5 + $0x4e8] sm:$0xff] }
  0x8b   :  { %7727 = vst [vmem:[#allocation106_spill] sm:$0xff] %v3750_v27  ;;  %v3782_v27 = vld [vmem:[#allocation5 + $0x128] sm:$0xff] }
  0x8c   :  { %7728 = vst [vmem:[#allocation107_spill] sm:$0xff] %v3756_v47  ;;  %v3784_v47 = vld [vmem:[#allocation5 + $0x528] sm:$0xff]  ;;  %549 = vmatpush.msra.mxu2 %v3782_v27 }
  0x8d   :  { %7729 = vst [vmem:[#allocation108_spill] sm:$0xff] %v3758_v35  ;;  %v3788_v35 = vld [vmem:[#allocation5 + $0x3b0] sm:$0xff]  ;;  %569 = vmatpush.msra.mxu3 %v3784_v47 }
  0x8e   :  { %7730 = vst [vmem:[#allocation109_spill] sm:$0xff] %v3760_v31  ;;  %v3790_v31 = vld [vmem:[#allocation5 + $0x7b0] sm:$0xff]  ;;  %579 = vmatpush.msrb.mxu0 %v3788_v35 }
  0x8f   :  { %7731 = vst [vmem:[#allocation110_spill] sm:$0xff] %v3762_v43  ;;  %v3792_v43 = vld [vmem:[#allocation5 + $0xe8] sm:$0xff]  ;;  %599 = vmatpush.msrb.mxu1 %v3790_v31  ;;  %570 = vmatpush.msra.mxu3 %v3794_v39 }
  0x90   :  { %7732 = vst [vmem:[#allocation111_spill] sm:$0xff] %v3770_v23  ;;  %v3802_v23 = vld [vmem:[#allocation5 + $0x770] sm:$0xff]  ;;  %550 = vmatpush.msra.mxu2 %v3792_v43  ;;  %580 = vmatpush.msrb.mxu0 %v3800_v17 }
  0x91   :  { %7733 = vst [vmem:[#allocation112_spill] sm:$0xff] %v3772_v22  ;;  %v3804_v22 = vld [vmem:[#allocation5 + $0xa8] sm:$0xff]  ;;  %600 = vmatpush.msrb.mxu1 %v3802_v23  ;;  %571 = vmatpush.msra.mxu3 %v3806_v26 }
  0x92   :  { %7734 = vst [vmem:[#allocation113_spill] sm:$0xff] %v3776_v34  ;;  %v3814_v34 = vld [vmem:[#allocation5 + $0x730] sm:$0xff]  ;;  %551 = vmatpush.msra.mxu2 %v3804_v22 }
  0x93   :  { %7735 = vst [vmem:[#allocation114_spill] sm:$0xff] %v3778_v30  ;;  %v3812_v30 = vld [vmem:[#allocation5 + $0x330] sm:$0xff]  ;;  %601 = vmatpush.msrb.mxu1 %v3814_v34 }
  0x94   :  { %7736 = vst [vmem:[#allocation115_spill] sm:$0xff] %v3782_v27  ;;  %v3818_v27 = vld [vmem:[#allocation5 + $0x468] sm:$0xff]  ;;  %581 = vmatpush.msrb.mxu0 %v3812_v30 }
  0x95   :  { %7737 = vst [vmem:[#allocation116_spill] sm:$0xff] %v3784_v47  ;;  %v3816_v47 = vld [vmem:[#allocation5 + $0x68] sm:$0xff]  ;;  %572 = vmatpush.msra.mxu3 %v3818_v27 }
  0x96   :  { %7738 = vst [vmem:[#allocation117_spill] sm:$0xff] %v3788_v35  ;;  %v3826_v35 = vld [vmem:[#allocation5 + $0x6f0] sm:$0xff]  ;;  %552 = vmatpush.msra.mxu2 %v3816_v47 }
  0x97   :  { %7739 = vst [vmem:[#allocation118_spill] sm:$0xff] %v3790_v31  ;;  %v3824_v31 = vld [vmem:[#allocation5 + $0x2f0] sm:$0xff]  ;;  %602 = vmatpush.msrb.mxu1 %v3826_v35 }
  0x98   :  { %7740 = vst [vmem:[#allocation119_spill] sm:$0xff] %v3792_v43  ;;  %v3830_v43 = vld [vmem:[#allocation5 + $0x428] sm:$0xff]  ;;  %582 = vmatpush.msrb.mxu0 %v3824_v31 }
  0x99   :  { %7741 = vst [vmem:[#allocation120_spill] sm:$0xff] %v3794_v39  ;;  %v3828_v39 = vld [vmem:[#allocation5 + $0x28] sm:$0xff]  ;;  %573 = vmatpush.msra.mxu3 %v3830_v43 }
  0x9a   :  { %7742 = vst [vmem:[#allocation121_spill] sm:$0xff] %v3800_v17  ;;  %v3840_v17 = vld [vmem:[#allocation5 + $0x6b0] sm:$0xff]  ;;  %553 = vmatpush.msra.mxu2 %v3828_v39  ;;  %574 = vmatmul.f32.vlgmr.msra.gmra.mxu3 %v3392_v59 }
  0x9b   :  { %7743 = vst [vmem:[#allocation122_spill] sm:$0xff] %v3802_v23  ;;  %v3838_v23 = vld [vmem:[#allocation5 + $0x2b0] sm:$0xff]  ;;  %554 = vmatmul.f32.vlgmr.msra.gmra.mxu2 %v3390_v58  ;;  %603 = vmatpush.msrb.mxu1 %v3840_v17 }
  0x9c   :  { %7744 = vst [vmem:[#allocation123_spill] sm:$0xff] %v3806_v26  ;;  %v3844_v26 = vld [vmem:[#allocation5 + $0x3f8] sm:$0xff]  ;;  %583 = vmatpush.msrb.mxu0 %v3838_v23 }
  0x9d   :  { %7745 = vst [vmem:[#allocation124_spill] sm:$0xff] %v3812_v30  ;;  %v3846_v30 = vld [vmem:[#allocation5 + $0x7f8] sm:$0xff]  ;;  %618 = vmatpush.msrb.mxu2 %v3844_v26 }
  0x9e   :  { %7746 = vst [vmem:[#allocation125_spill] sm:$0xff] %v3814_v34  ;;  %v3850_v34 = vld [vmem:[#allocation5 + $0x270] sm:$0xff]  ;;  %638 = vmatpush.msrb.mxu3 %v3846_v30 }
  0x9f   :  { %7747 = vst [vmem:[#allocation126_spill] sm:$0xff] %v3816_v47  ;;  %584 = vmatpush.msrb.mxu0 %v3850_v34  ;;  %v3868_v47 = vld [vmem:[#allocation5 + $0x378] sm:$0xff] }
  0xa0   :  { %7748 = vst [vmem:[#allocation127_spill] sm:$0xff] %v3818_v27  ;;  %v3864_v27 = vld [vmem:[#allocation5 + $0x630] sm:$0xff] }
  0xa1   :  { %7749 = vst [vmem:[#allocation128_spill] sm:$0xff] %v3824_v31  ;;  %v3852_v31 = vld [vmem:[#allocation5 + $0x670] sm:$0xff] }
  0xa2   :  { %7750 = vst [vmem:[#allocation129_spill] sm:$0xff] %v3826_v35  ;;  %v3856_v35 = vld [vmem:[#allocation5 + $0x3b8] sm:$0xff]  ;;  %604 = vmatpush.msrb.mxu1 %v3852_v31 }
  0xa3   :  { %7751 = vst [vmem:[#allocation130_spill] sm:$0xff] %v3828_v39  ;;  %v3858_v39 = vld [vmem:[#allocation5 + $0x7b8] sm:$0xff]  ;;  %619 = vmatpush.msrb.mxu2 %v3856_v35 }
  0xa4   :  { %7752 = vst [vmem:[#allocation131_spill] sm:$0xff] %v3830_v43  ;;  %v3862_v43 = vld [vmem:[#allocation5 + $0x230] sm:$0xff]  ;;  %639 = vmatpush.msrb.mxu3 %v3858_v39  ;;  %605 = vmatpush.msrb.mxu1 %v3864_v27 }
  0xa5   :  { %7753 = vst [vmem:[#allocation132_spill] sm:$0xff] %v3838_v23  ;;  %v3870_v23 = vld [vmem:[#allocation5 + $0x778] sm:$0xff]  ;;  %585 = vmatpush.msrb.mxu0 %v3862_v43  ;;  %620 = vmatpush.msrb.mxu2 %v3868_v47 }
  0xa6   :  { %7754 = vst [vmem:[#allocation133_spill] sm:$0xff] %v3840_v17  ;;  %v3874_v17 = vld [vmem:[#allocation5 + $0x1f0] sm:$0xff]  ;;  %640 = vmatpush.msrb.mxu3 %v3870_v23 }
  0xa7   :  { %7755 = vst [vmem:[#allocation134_spill] sm:$0xff] %v3844_v26  ;;  %v3876_v26 = vld [vmem:[#allocation5 + $0x5f0] sm:$0xff]  ;;  %586 = vmatpush.msrb.mxu0 %v3874_v17 }
  0xa8   :  { %7756 = vst [vmem:[#allocation135_spill] sm:$0xff] %v3846_v30  ;;  %v3880_v30 = vld [vmem:[#allocation5 + $0x338] sm:$0xff]  ;;  %606 = vmatpush.msrb.mxu1 %v3876_v26 }
  0xa9   :  { %7757 = vst [vmem:[#allocation136_spill] sm:$0xff] %v3850_v34  ;;  %v3882_v34 = vld [vmem:[#allocation5 + $0x738] sm:$0xff]  ;;  %621 = vmatpush.msrb.mxu2 %v3880_v30 }
  0xaa   :  { %7758 = vst [vmem:[#allocation137_spill] sm:$0xff] %v3852_v31  ;;  %v3886_v31 = vld [vmem:[#allocation5 + $0x1b0] sm:$0xff]  ;;  %641 = vmatpush.msrb.mxu3 %v3882_v34 }
  0xab   :  { %7759 = vst [vmem:[#allocation138_spill] sm:$0xff] %v3856_v35  ;;  %v3888_v35 = vld [vmem:[#allocation5 + $0x5b0] sm:$0xff]  ;;  %587 = vmatpush.msrb.mxu0 %v3886_v31 }
  0xac   :  { %7760 = vst [vmem:[#allocation139_spill] sm:$0xff] %v3858_v39  ;;  %v3892_v39 = vld [vmem:[#allocation5 + $0x2f8] sm:$0xff]  ;;  %607 = vmatpush.msrb.mxu1 %v3888_v35 }
  0xad   :  { %7761 = vst [vmem:[#allocation140_spill] sm:$0xff] %v3862_v43  ;;  %v3894_v43 = vld [vmem:[#allocation5 + $0x6f8] sm:$0xff]  ;;  %622 = vmatpush.msrb.mxu2 %v3892_v39 }
  0xae   :  { %7762 = vst [vmem:[#allocation141_spill] sm:$0xff] %v3864_v27  ;;  %v3898_v27 = vld [vmem:[#allocation5 + $0x170] sm:$0xff]  ;;  %642 = vmatpush.msrb.mxu3 %v3894_v43 }
  0xaf   :  { %7763 = vst [vmem:[#allocation142_spill] sm:$0xff] %v3868_v47  ;;  %v3900_v47 = vld [vmem:[#allocation5 + $0x570] sm:$0xff]  ;;  %588 = vmatpush.msrb.mxu0 %v3898_v27 }
  0xb0   :  { %7764 = vst [vmem:[#allocation143_spill] sm:$0xff] %v3870_v23  ;;  %v3904_v23 = vld [vmem:[#allocation5 + $0x2b8] sm:$0xff]  ;;  %608 = vmatpush.msrb.mxu1 %v3900_v47 }
  0xb1   :  { %7765 = vst [vmem:[#allocation144_spill] sm:$0xff] %v3874_v17  ;;  %v3906_v17 = vld [vmem:[#allocation5 + $0x6b8] sm:$0xff]  ;;  %623 = vmatpush.msrb.mxu2 %v3904_v23 }
  0xb2   :  { %7766 = vst [vmem:[#allocation145_spill] sm:$0xff] %v3876_v26  ;;  %v3910_v26 = vld [vmem:[#allocation5 + $0x130] sm:$0xff]  ;;  %643 = vmatpush.msrb.mxu3 %v3906_v17 }
  0xb3   :  { %7767 = vst [vmem:[#allocation146_spill] sm:$0xff] %v3880_v30  ;;  %v3912_v30 = vld [vmem:[#allocation5 + $0x530] sm:$0xff]  ;;  %589 = vmatpush.msrb.mxu0 %v3910_v26 }
  0xb4   :  { %7768 = vst [vmem:[#allocation147_spill] sm:$0xff] %v3882_v34  ;;  %v3916_v34 = vld [vmem:[#allocation5 + $0x278] sm:$0xff]  ;;  %609 = vmatpush.msrb.mxu1 %v3912_v30 }
  0xb5   :  { %7769 = vst [vmem:[#allocation148_spill] sm:$0xff] %v3886_v31  ;;  %v3918_v31 = vld [vmem:[#allocation5 + $0x678] sm:$0xff]  ;;  %624 = vmatpush.msrb.mxu2 %v3916_v34 }
  0xb6   :  { %7770 = vst [vmem:[#allocation149_spill] sm:$0xff] %v3888_v35  ;;  %v3922_v35 = vld [vmem:[#allocation5 + $0xf0] sm:$0xff]  ;;  %644 = vmatpush.msrb.mxu3 %v3918_v31 }
  0xb7   :  { %7771 = vst [vmem:[#allocation150_spill] sm:$0xff] %v3892_v39  ;;  %v3924_v39 = vld [vmem:[#allocation5 + $0x4f0] sm:$0xff]  ;;  %590 = vmatpush.msrb.mxu0 %v3922_v35 }
  0xb8   :  { %7772 = vst [vmem:[#allocation151_spill] sm:$0xff] %v3894_v43  ;;  %v3928_v43 = vld [vmem:[#allocation5 + $0x238] sm:$0xff]  ;;  %610 = vmatpush.msrb.mxu1 %v3924_v39 }
  0xb9   :  { %7773 = vst [vmem:[#allocation152_spill] sm:$0xff] %v3898_v27  ;;  %v3930_v27 = vld [vmem:[#allocation5 + $0x638] sm:$0xff]  ;;  %625 = vmatpush.msrb.mxu2 %v3928_v43 }
  0xba   :  { %7774 = vst [vmem:[#allocation153_spill] sm:$0xff] %v3900_v47  ;;  %v3934_v47 = vld [vmem:[#allocation5 + $0xb0] sm:$0xff]  ;;  %645 = vmatpush.msrb.mxu3 %v3930_v27 }
  0xbb   :  { %7775 = vst [vmem:[#allocation154_spill] sm:$0xff] %v3904_v23  ;;  %v3936_v23 = vld [vmem:[#allocation5 + $0x4b0] sm:$0xff]  ;;  %591 = vmatpush.msrb.mxu0 %v3934_v47 }
  0xbc   :  { %7776 = vst [vmem:[#allocation155_spill] sm:$0xff] %v3906_v17  ;;  %v3940_v17 = vld [vmem:[#allocation5 + $0x1f8] sm:$0xff]  ;;  %611 = vmatpush.msrb.mxu1 %v3936_v23 }
  0xbd   :  { %7777 = vst [vmem:[#allocation156_spill] sm:$0xff] %v3910_v26  ;;  %v3942_v26 = vld [vmem:[#allocation5 + $0x5f8] sm:$0xff]  ;;  %626 = vmatpush.msrb.mxu2 %v3940_v17 }
  0xbe   :  { %7778 = vst [vmem:[#allocation157_spill] sm:$0xff] %v3912_v30  ;;  %v3946_v30 = vld [vmem:[#allocation5 + $0x70] sm:$0xff]  ;;  %646 = vmatpush.msrb.mxu3 %v3942_v26 }
  0xbf   :  { %7779 = vst [vmem:[#allocation158_spill] sm:$0xff] %v3916_v34  ;;  %v3948_v34 = vld [vmem:[#allocation5 + $0x470] sm:$0xff]  ;;  %592 = vmatpush.msrb.mxu0 %v3946_v30 }
  0xc0   :  { %7780 = vst [vmem:[#allocation159_spill] sm:$0xff] %v3918_v31  ;;  %v3952_v31 = vld [vmem:[#allocation5 + $0x1b8] sm:$0xff]  ;;  %612 = vmatpush.msrb.mxu1 %v3948_v34 }
  0xc1   :  { %7781 = vst [vmem:[#allocation160_spill] sm:$0xff] %v3922_v35  ;;  %v3954_v35 = vld [vmem:[#allocation5 + $0x5b8] sm:$0xff]  ;;  %627 = vmatpush.msrb.mxu2 %v3952_v31 }
  0xc2   :  { %7782 = vst [vmem:[#allocation161_spill] sm:$0xff] %v3924_v39  ;;  %v3958_v39 = vld [vmem:[#allocation5 + $0x30] sm:$0xff]  ;;  %647 = vmatpush.msrb.mxu3 %v3954_v35 }
  0xc3   :  { %7783 = vst [vmem:[#allocation162_spill] sm:$0xff] %v3928_v43  ;;  %v3960_v43 = vld [vmem:[#allocation5 + $0x430] sm:$0xff]  ;;  %593 = vmatpush.msrb.mxu0 %v3958_v39 }
  0xc4   :  { %7784 = vst [vmem:[#allocation163_spill] sm:$0xff] %v3930_v27  ;;  %v3964_v27 = vld [vmem:[#allocation5 + $0x178] sm:$0xff]  ;;  %613 = vmatpush.msrb.mxu1 %v3960_v43  ;;  %594 = vmatmul.f32.vlgmr.msrb.gmra.mxu0 %v3390_v58 }
  0xc5   :  { %7785 = vst [vmem:[#allocation164_spill] sm:$0xff] %v3934_v47  ;;  %v3966_v47 = vld [vmem:[#allocation5 + $0x578] sm:$0xff]  ;;  %628 = vmatpush.msrb.mxu2 %v3964_v27  ;;  %614 = vmatmul.f32.vlgmr.msrb.gmra.mxu1 %v3392_v59 }
  0xc6   :  { %7786 = vst [vmem:[#allocation165_spill] sm:$0xff] %v3936_v23  ;;  %648 = vmatpush.msrb.mxu3 %v3966_v47  ;;  %v3992_v23 = vld [vmem:[#allocation5 + $0x78] sm:$0xff] }
  0xc7   :  { %7787 = vst [vmem:[#allocation166_spill] sm:$0xff] %v3940_v17  ;;  %v3974_v17 = vld [vmem:[#allocation5 + $0x538] sm:$0xff] }
  0xc8   :  { %7788 = vst [vmem:[#allocation167_spill] sm:$0xff] %v3942_v26  ;;  %v3972_v26 = vld [vmem:[#allocation5 + $0x138] sm:$0xff]  ;;  %649 = vmatpush.msrb.mxu3 %v3974_v17 }
  0xc9   :  { %7789 = vst [vmem:[#allocation168_spill] sm:$0xff] %v3946_v30  ;;  %629 = vmatpush.msrb.mxu2 %v3972_v26  ;;  %v3102_v30 = vld [vmem:[#allocation5 + $0x780] sm:$0xff] }
  0xca   :  { %7790 = vst [vmem:[#allocation169_spill] sm:$0xff] %v3948_v34  ;;  %v3980_v34 = vld [vmem:[#allocation5 + $0xf8] sm:$0xff] }
  0xcb   :  { %7791 = vst [vmem:[#allocation170_spill] sm:$0xff] %v3952_v31  ;;  %v3982_v31 = vld [vmem:[#allocation5 + $0x4f8] sm:$0xff]  ;;  %630 = vmatpush.msrb.mxu2 %v3980_v34 }
  0xcc   :  { %7792 = vst [vmem:[#allocation171_spill] sm:$0xff] %v3954_v35  ;;  %v3986_v35 = vld [vmem:[#allocation5 + $0xb8] sm:$0xff]  ;;  %650 = vmatpush.msrb.mxu3 %v3982_v31 }
  0xcd   :  { %7793 = vst [vmem:[#allocation172_spill] sm:$0xff] %v3958_v39  ;;  %v3100_v39 = vld [vmem:[#allocation5 + $0x7c0] sm:$0xff]  ;;  %631 = vmatpush.msrb.mxu2 %v3986_v35 }
  0xce   :  { %7794 = vst [vmem:[#allocation173_spill] sm:$0xff] %v3960_v43  ;;  %v3099_v43 = vld [vmem:[#allocation5 + $0x3c0] sm:$0xff]  ;;  %681 = vmatpush.msra.mxu1 %v3100_v39 }
  0xcf   :  { %7795 = vst [vmem:[#allocation174_spill] sm:$0xff] %v3964_v27  ;;  %661 = vmatpush.msra.mxu0 %v3099_v43  ;;  %v3988_v27 = vld [vmem:[#allocation5 + $0x4b8] sm:$0xff]  ;;  %v3103_v39 = vld [vmem:[#allocation5 + $0x340] sm:$0xff]  ;;  %632 = vmatpush.msrb.mxu2 %v3992_v23 }
  0xd0   :  { %7796 = vst [vmem:[#allocation175_spill] sm:$0xff] %v3966_v47  ;;  %v3101_v47 = vld [vmem:[#allocation5 + $0x380] sm:$0xff]  ;;  %682 = vmatpush.msra.mxu1 %v3102_v30  ;;  %651 = vmatpush.msrb.mxu3 %v3988_v27 }
  0xd1   :  { %7797 = vst [vmem:[#allocation176_spill] sm:$0xff] %v3972_v26  ;;  %662 = vmatpush.msra.mxu0 %v3101_v47  ;;  %v3994_v26 = vld [vmem:[#allocation5 + $0x478] sm:$0xff]  ;;  %v3104_v43 = vld [vmem:[#allocation5 + $0x740] sm:$0xff] }
  0xd2   :  { %7798 = vst [vmem:[#allocation177_spill] sm:$0xff] %v3974_v17  ;;  %683 = vmatpush.msra.mxu1 %v3104_v43  ;;  %v3998_v17 = vld [vmem:[#allocation5 + $0x38] sm:$0xff]  ;;  %652 = vmatpush.msrb.mxu3 %v3994_v26  ;;  %v3105_v30 = vld [vmem:[#allocation5 + $0x300] sm:$0xff] }
  0xd3   :  { %7799 = vst [vmem:[#allocation178_spill] sm:$0xff] %v3980_v34  ;;  %663 = vmatpush.msra.mxu0 %v3103_v39  ;;  %v4000_v34 = vld [vmem:[#allocation5 + $0x438] sm:$0xff]  ;;  %v3106_v47 = vld [vmem:[#allocation5 + $0x700] sm:$0xff]  ;;  %633 = vmatpush.msrb.mxu2 %v3998_v17 }
  0xd4   :  { %7800 = vst [vmem:[#allocation179_spill] sm:$0xff] %v3988_v27  ;;  %684 = vmatpush.msra.mxu1 %v3106_v47  ;;  %653 = vmatpush.msrb.mxu3 %v4000_v34  ;;  %v3107_v27 = vld [vmem:[#allocation5 + $0x2c0] sm:$0xff]  ;;  %v3113_v47 = vld [vmem:[#allocation5 + $0x388] sm:$0xff] }
  0xd5   :  { %7801 = vst [vmem:[#allocation180_spill] sm:$0xff] %v3992_v23  ;;  %664 = vmatpush.msra.mxu0 %v3105_v30  ;;  %v3108_v39 = vld [vmem:[#allocation5 + $0x6c0] sm:$0xff]  ;;  %634 = vmatmul.f32.vlgmr.msrb.gmra.mxu2 %v3390_v58  ;;  %v3112_v30 = vld [vmem:[#allocation5 + $0x7c8] sm:$0xff] }
  0xd6   :  { %7802 = vst [vmem:[#allocation181_spill] sm:$0xff] %v3994_v26  ;;  %685 = vmatpush.msra.mxu1 %v3108_v39  ;;  %654 = vmatmul.f32.vlgmr.msrb.gmra.mxu3 %v3392_v59  ;;  %v3109_v43 = vld [vmem:[#allocation5 + $0x280] sm:$0xff]  ;;  %v3111_v26 = vld [vmem:[#allocation5 + $0x3c8] sm:$0xff] }
  0xd7   :  { %665 = vmatpush.msra.mxu0 %v3107_v27  ;;  %v3110_v23 = vld [vmem:[#allocation5 + $0x680] sm:$0xff]  ;;  %701 = vmatpush.msra.mxu2 %v3111_v26  ;;  %v3114_v27 = vld [vmem:[#allocation5 + $0x788] sm:$0xff] }
  0xd8   :  { %686 = vmatpush.msra.mxu1 %v3110_v23  ;;  %721 = vmatpush.msra.mxu3 %v3112_v30  ;;  %v3115_v58 = vld [vmem:[#allocation5 + $0x348] sm:$0xff]  ;;  %v7835_v30 = vld [vmem:[#allocation44_spill] sm:$0xff] }
  0xd9   :  { %666 = vmatpush.msra.mxu0 %v3109_v43  ;;  %702 = vmatpush.msra.mxu2 %v3113_v47  ;;  %v3116_v59 = vld [vmem:[#allocation5 + $0x748] sm:$0xff]  ;;  %v7834_v43 = vld [vmem:[#allocation43_spill] sm:$0xff] }
  0xda   :  { %687 = vmatpush.msra.mxu1 %v3315_v21  ;;  %722 = vmatpush.msra.mxu3 %v3114_v27  ;;  %v3117_v23 = vld [vmem:[#allocation5 + $0x308] sm:$0xff] }
  0xdb   :  { %667 = vmatpush.msra.mxu0 %v3313_v20  ;;  %703 = vmatpush.msra.mxu2 %v3115_v58  ;;  %v3118_v20 = vld [vmem:[#allocation5 + $0x708] sm:$0xff] }
  0xdc   :  { %688 = vmatpush.msra.mxu1 %v3319_v25  ;;  %723 = vmatpush.msra.mxu3 %v3116_v59  ;;  %v3119_v21 = vld [vmem:[#allocation5 + $0x2c8] sm:$0xff]  ;;  %v7837_v59 = vld [vmem:[#allocation42_spill] sm:$0xff] }
  0xdd   :  { %668 = vmatpush.msra.mxu0 %v3317_v24  ;;  %704 = vmatpush.msra.mxu2 %v3117_v23  ;;  %v3120_v24 = vld [vmem:[#allocation5 + $0x6c8] sm:$0xff] }
  0xde   :  { %689 = vmatpush.msra.mxu1 %v3325_v29  ;;  %724 = vmatpush.msra.mxu3 %v3118_v20  ;;  %v3121_v25 = vld [vmem:[#allocation5 + $0x288] sm:$0xff]  ;;  %v355_v29 = vpop.f32.mrf.mxu0  ;;  %v7838_v20 = vld [vmem:[#allocation47_spill] sm:$0xff] }
  0xdf   :  { %669 = vmatpush.msra.mxu0 %v3323_v28  ;;  %705 = vmatpush.msra.mxu2 %v3119_v21  ;;  %v3122_v28 = vld [vmem:[#allocation5 + $0x688] sm:$0xff]  ;;  %v7839_v21 = vld [vmem:[#allocation48_spill] sm:$0xff] }
  0xe0   :  { %690 = vmatpush.msra.mxu1 %v3331_v33  ;;  %725 = vmatpush.msra.mxu3 %v3120_v24  ;;  %v3123_v26 = vld [vmem:[#allocation5 + $0x248] sm:$0xff] }
  0xe1   :  { %670 = vmatpush.msra.mxu0 %v3329_v32  ;;  %706 = vmatpush.msra.mxu2 %v3121_v25  ;;  %v375_v32 = vpop.f32.mrf.mxu1  ;;  %v3124_v33 = vld [vmem:[#allocation5 + $0x648] sm:$0xff]  ;;  %v7841_v25 = vld [vmem:[#allocation46_spill] sm:$0xff] }
  0xe2   :  { %691 = vmatpush.msra.mxu1 %v3337_v37  ;;  %726 = vmatpush.msra.mxu3 %v3122_v28  ;;  %v4020_v39 = vadd.f32 %v375_v32, %v355_v29  ;;  %v3126_v37 = vld [vmem:[#allocation5 + $0x608] sm:$0xff]  ;;  %v7843_v29 = vld [vmem:[#allocation50_spill] sm:$0xff]  ;;  %v7844_v32 = vld [vmem:[#allocation51_spill] sm:$0xff] }
  0xe3   :  { %671 = vmatpush.msra.mxu0 %v3335_v36  ;;  %707 = vmatpush.msra.mxu2 %v3123_v26  ;;  %v3125_v36 = vld [vmem:[#allocation5 + $0x208] sm:$0xff]  ;;  %v7845_v26 = vld [vmem:[#allocation52_spill] sm:$0xff] }
  0xe4   :  { %692 = vmatpush.msra.mxu1 %v3345_v41  ;;  %727 = vmatpush.msra.mxu3 %v3124_v33  ;;  %v3127_v41 = vld [vmem:[#allocation5 + $0x5c8] sm:$0xff] }
  0xe5   :  { %672 = vmatpush.msra.mxu0 %v3343_v40  ;;  %708 = vmatpush.msra.mxu2 %v3125_v36  ;;  %v4034_v40 = vld [vmem:[#allocation2 + $0x10] sm:$0xff]  ;;  %v7836_v58 = vld [vmem:[#allocation41_spill] sm:$0xff] }
  0xe6   :  { %693 = vmatpush.msra.mxu1 %v3353_v45  ;;  %728 = vmatpush.msra.mxu3 %v3126_v37  ;;  %v3128_v45 = vld [vmem:[#allocation5 + $0x588] sm:$0xff]  ;;  %v7847_v36 = vld [vmem:[#allocation54_spill] sm:$0xff]  ;;  %v7848_v37 = vld [vmem:[#allocation55_spill] sm:$0xff] }
  0xe7   :  { %673 = vmatpush.msra.mxu0 %v3351_v44  ;;  %1180 = vrot.lane.b32.xlu2 %v4020_v39, %s3241_s2  ;;  %v4037_v44 = vld [vmem:[#allocation2 + $0x18] sm:$0xff]  ;;  %v7840_v24 = vld [vmem:[#allocation45_spill] sm:$0xff] }
  0xe8   :  { %1099 = vrot.lane.b32.xlu1 %v4020_v39, %s3242_s28  ;;  %1016 = vrot.lane.b32.xlu0 %v4020_v39, %s3243_s29  ;;  %v7842_v28 = vld [vmem:[#allocation49_spill] sm:$0xff] }
  0xe9   :  { %674 = vmatpush.msra.mxu0 %v3360_v48  ;;  %694 = vmatpush.msra.mxu1 %v3362_v49  ;;  %v7804_v49 = vld [vmem:[#allocation12_spill] sm:$0xff]  ;;  %v7846_v33 = vld [vmem:[#allocation53_spill] sm:$0xff] }
  0xea   :  { %709 = vmatpush.msra.mxu2 %v3341_v38  ;;  %729 = vmatpush.msra.mxu3 %v3127_v41  ;;  %v3129_v38 = vld [vmem:[#allocation5 + $0x548] sm:$0xff]  ;;  %v7849_v41 = vld [vmem:[#allocation56_spill] sm:$0xff] }
  0xeb   :  { %675 = vmatpush.msra.mxu0 %v3371_v52  ;;  %695 = vmatpush.msra.mxu1 %v3373_v53  ;;  %v435_v52 = vpop.f32.mrf.mxu0  ;;  %v455_v53 = vpop.f32.mrf.mxu1 }
  0xec   :  { %710 = vmatpush.msra.mxu2 %v3349_v42  ;;  %730 = vmatpush.msra.mxu3 %v3128_v45  ;;  %v395_v42 = vpop.f32.mrf.mxu2  ;;  %v7850_v45 = vld [vmem:[#allocation57_spill] sm:$0xff] }
  0xed   :  { %676 = vmatpush.msra.mxu0 %v3382_v56  ;;  %696 = vmatpush.msra.mxu1 %v3384_v57  ;;  %v4099_v56 = vadd.f32 %v455_v53, %v435_v52  ;;  %v7810_v57 = vld [vmem:[#allocation19_spill] sm:$0xff]  ;;  %v7857_v52 = vld [vmem:[#allocation64_spill] sm:$0xff]  ;;  %v7858_v53 = vld [vmem:[#allocation65_spill] sm:$0xff] }
  0xee   :  { %677 = vmatmul.f32.vlgmr.msra.gmra.mxu0 %v4034_v40  ;;  %697 = vmatmul.f32.vlgmr.msra.gmra.mxu1 %v4037_v44 }
  0xef   :  { %711 = vmatpush.msra.mxu2 %v3358_v46  ;;  %1423 = vrot.lane.b32.xlu2 %v4020_v39, %s3244_s30  ;;  %v415_v46 = vpop.f32.mrf.mxu3  ;;  %7809 = vst [vmem:[#allocation12_spill] sm:$0xff] %v4099_v56 }
  0xf0   :  { %1342 = vrot.lane.b32.xlu1 %v4020_v39, %s3245_s10  ;;  %1261 = vrot.lane.b32.xlu0 %v4020_v39, %s3246_s11  ;;  %v4055_v48 = vadd.f32 %v415_v46, %v395_v42  ;;  %v7852_v42 = vld [vmem:[#allocation59_spill] sm:$0xff]  ;;  %v7853_v46 = vld [vmem:[#allocation60_spill] sm:$0xff] }
  0xf1   :  { %731 = vmatpush.msra.mxu3 %v3129_v38  ;;  %712 = vmatpush.msra.mxu2 %v3367_v50  ;;  %v7805_v50 = vld [vmem:[#allocation15_spill] sm:$0xff]  ;;  %v7851_v38 = vld [vmem:[#allocation58_spill] sm:$0xff] }
  0xf2   :  { %741 = vmatpush.msrb.mxu0 %v3394_v60  ;;  %761 = vmatpush.msrb.mxu1 %v3396_v61  ;;  %7803 = vst [vmem:[#allocation182_spill] sm:$0xff] %v4055_v48  ;;  %v7811_v60 = vld [vmem:[#allocation20_spill] sm:$0xff]  ;;  %v7812_v61 = vld [vmem:[#allocation17_spill] sm:$0xff] }
  0xf3   :  { %732 = vmatpush.msra.mxu3 %v3369_v51  ;;  %713 = vmatpush.msra.mxu2 %v3378_v54  ;;  %v7806_v51 = vld [vmem:[#allocation16_spill] sm:$0xff]  ;;  %v7807_v54 = vld [vmem:[#allocation13_spill] sm:$0xff] }
  0xf4   :  { %742 = vmatpush.msrb.mxu0 %v3408_v0  ;;  %762 = vmatpush.msrb.mxu1 %v3410_v1  ;;  %v7815_v0 = vld [vmem:[#allocation24_spill] sm:$0xff]  ;;  %v7816_v1 = vld [vmem:[#allocation21_spill] sm:$0xff]  ;;  %v475_v47 = vpop.f32.mrf.mxu2 }
  0xf5   :  { %733 = vmatpush.msra.mxu3 %v3380_v55  ;;  %714 = vmatpush.msra.mxu2 %v3402_v62  ;;  %v7808_v55 = vld [vmem:[#allocation14_spill] sm:$0xff] }
  0xf6   :  { %743 = vmatpush.msrb.mxu0 %v3420_v4  ;;  %763 = vmatpush.msrb.mxu1 %v3422_v5  ;;  %v7813_v62 = vld [vmem:[#allocation18_spill] sm:$0xff]  ;;  %v7819_v4 = vld [vmem:[#allocation28_spill] sm:$0xff]  ;;  %v7820_v5 = vld [vmem:[#allocation25_spill] sm:$0xff] }
  0xf7   :  { %734 = vmatpush.msra.mxu3 %v3404_v63  ;;  %1101 = vrot.lane.b32.xlu2 %v4055_v48, %s3242_s28  ;;  %v7814_v63 = vld [vmem:[#allocation23_spill] sm:$0xff]  ;;  %v495_v27 = vpop.f32.mrf.mxu3 }
  0xf8   :  { %1263 = vrot.lane.b32.xlu1 %v4055_v48, %s3246_s11  ;;  %1504 = vrot.lane.b32.xlu0 %v4020_v39, %s3247_s12  ;;  %v4141_v23 = vadd.f32 %v495_v27, %v475_v47  ;;  %v7885_v47 = vld [vmem:[#allocation91_spill] sm:$0xff]  ;;  %v7886_v27 = vld [vmem:[#allocation92_spill] sm:$0xff] }
  0xf9   :  { %715 = vmatpush.msra.mxu2 %v3414_v2  ;;  %735 = vmatpush.msra.mxu3 %v3416_v3  ;;  %v7817_v2 = vld [vmem:[#allocation22_spill] sm:$0xff]  ;;  %v7818_v3 = vld [vmem:[#allocation27_spill] sm:$0xff] }
  0xfa   :  { %744 = vmatpush.msrb.mxu0 %v3432_v8  ;;  %764 = vmatpush.msrb.mxu1 %v3434_v9  ;;  %v7823_v8 = vld [vmem:[#allocation32_spill] sm:$0xff]  ;;  %v7824_v9 = vld [vmem:[#allocation29_spill] sm:$0xff] }
  0xfb   :  { %716 = vmatpush.msra.mxu2 %v3426_v6  ;;  %736 = vmatpush.msra.mxu3 %v3428_v7  ;;  %v7821_v6 = vld [vmem:[#allocation26_spill] sm:$0xff]  ;;  %v7822_v7 = vld [vmem:[#allocation31_spill] sm:$0xff] }
  0xfc   :  { %745 = vmatpush.msrb.mxu0 %v3440_v10  ;;  %765 = vmatpush.msrb.mxu1 %v3442_v11  ;;  %v7825_v10 = vld [vmem:[#allocation30_spill] sm:$0xff]  ;;  %v7826_v11 = vld [vmem:[#allocation35_spill] sm:$0xff] }
  0xfd   :  { %717 = vmatmul.f32.vlgmr.msra.gmra.mxu2 %v4034_v40  ;;  %737 = vmatmul.f32.vlgmr.msra.gmra.mxu3 %v4037_v44 }
  0xfe   :  { %746 = vmatpush.msrb.mxu0 %v3452_v14  ;;  %766 = vmatpush.msrb.mxu1 %v3454_v15  ;;  %v7829_v14 = vld [vmem:[#allocation34_spill] sm:$0xff]  ;;  %v7830_v15 = vld [vmem:[#allocation39_spill] sm:$0xff] }
  0xff   :  { %781 = vmatpush.msrb.mxu2 %v3446_v12  ;;  %1344 = vrot.lane.b32.xlu2 %v4055_v48, %s3245_s10  ;;  %v7827_v12 = vld [vmem:[#allocation36_spill] sm:$0xff] }
 0x100   :  { %1506 = vrot.lane.b32.xlu1 %v4055_v48, %s3247_s12  ;;  %1018 = vrot.lane.b32.xlu0 %v4055_v48, %s3243_s29 }
 0x101   :  { %801 = vmatpush.msrb.mxu3 %v3448_v13  ;;  %747 = vmatpush.msrb.mxu0 %v3464_v18  ;;  %v7828_v13 = vld [vmem:[#allocation33_spill] sm:$0xff] }
 0x102   :  { %767 = vmatpush.msrb.mxu1 %v3466_v19  ;;  %782 = vmatpush.msrb.mxu2 %v3458_v16  ;;  %v7831_v16 = vld [vmem:[#allocation40_spill] sm:$0xff]  ;;  %v7832_v18 = vld [vmem:[#allocation37_spill] sm:$0xff]  ;;  %v7833_v19 = vld [vmem:[#allocation38_spill] sm:$0xff] }
 0x103   :  { %802 = vmatpush.msrb.mxu3 %v7804_v49  ;;  %748 = vmatpush.msrb.mxu0 %v7805_v50  ;;  %v7854_v49 = vld [vmem:[#allocation61_spill] sm:$0xff]  ;;  %v7855_v50 = vld [vmem:[#allocation62_spill] sm:$0xff] }
 0x104   :  { %768 = vmatpush.msrb.mxu1 %v7806_v51  ;;  %783 = vmatpush.msrb.mxu2 %v7807_v54  ;;  %v7856_v51 = vld [vmem:[#allocation63_spill] sm:$0xff]  ;;  %v7859_v54 = vld [vmem:[#allocation66_spill] sm:$0xff] }
 0x105   :  { %803 = vmatpush.msrb.mxu3 %v7808_v55  ;;  %749 = vmatpush.msrb.mxu0 %v7810_v57  ;;  %v515_v55 = vpop.f32.mrf.mxu0  ;;  %v535_v57 = vpop.f32.mrf.mxu1 }
 0x106   :  { %769 = vmatpush.msrb.mxu1 %v7811_v60  ;;  %784 = vmatpush.msrb.mxu2 %v7812_v61  ;;  %v7860_v60 = vld [vmem:[#allocation67_spill] sm:$0xff]  ;;  %v7861_v61 = vld [vmem:[#allocation68_spill] sm:$0xff] }
 0x107   :  { %804 = vmatpush.msrb.mxu3 %v7813_v62  ;;  %1265 = vrot.lane.b32.xlu2 %v4099_v56, %s3246_s11  ;;  %v4181_v62 = vadd.f32 %v535_v57, %v515_v55  ;;  %v7908_v55 = vld [vmem:[#allocation115_spill] sm:$0xff]  ;;  %v7909_v57 = vld [vmem:[#allocation116_spill] sm:$0xff] }
 0x108   :  { %1020 = vrot.lane.b32.xlu1 %v4099_v56, %s3243_s29  ;;  %1182 = vrot.lane.b32.xlu0 %v4055_v48, %s3241_s2 }
 0x109   :  { %750 = vmatpush.msrb.mxu0 %v7814_v63  ;;  %770 = vmatpush.msrb.mxu1 %v7815_v0  ;;  %7862 = vst [vmem:[#allocation15_spill] sm:$0xff] %v4181_v62  ;;  %v7863_v63 = vld [vmem:[#allocation69_spill] sm:$0xff]  ;;  %v7864_v0 = vld [vmem:[#allocation70_spill] sm:$0xff] }
 0x10a   :  { %785 = vmatpush.msrb.mxu2 %v7816_v1  ;;  %805 = vmatpush.msrb.mxu3 %v7817_v2  ;;  %v7865_v1 = vld [vmem:[#allocation71_spill] sm:$0xff]  ;;  %v7866_v2 = vld [vmem:[#allocation72_spill] sm:$0xff] }
 0x10b   :  { %751 = vmatpush.msrb.mxu0 %v7818_v3  ;;  %771 = vmatpush.msrb.mxu1 %v7819_v4  ;;  %v7867_v3 = vld [vmem:[#allocation73_spill] sm:$0xff]  ;;  %v7868_v4 = vld [vmem:[#allocation74_spill] sm:$0xff] }
 0x10c   :  { %786 = vmatpush.msrb.mxu2 %v7820_v5  ;;  %806 = vmatpush.msrb.mxu3 %v7821_v6  ;;  %v7869_v5 = vld [vmem:[#allocation75_spill] sm:$0xff]  ;;  %v7870_v6 = vld [vmem:[#allocation76_spill] sm:$0xff] }
 0x10d   :  { %752 = vmatpush.msrb.mxu0 %v7822_v7  ;;  %772 = vmatpush.msrb.mxu1 %v7823_v8  ;;  %v7871_v7 = vld [vmem:[#allocation77_spill] sm:$0xff]  ;;  %v7872_v8 = vld [vmem:[#allocation78_spill] sm:$0xff] }
 0x10e   :  { %787 = vmatpush.msrb.mxu2 %v7824_v9  ;;  %807 = vmatpush.msrb.mxu3 %v7825_v10  ;;  %v7873_v9 = vld [vmem:[#allocation79_spill] sm:$0xff]  ;;  %v7874_v10 = vld [vmem:[#allocation80_spill] sm:$0xff] }
 0x10f   :  { %753 = vmatpush.msrb.mxu0 %v7826_v11  ;;  %1508 = vrot.lane.b32.xlu2 %v4099_v56, %s3247_s12  ;;  %v7875_v11 = vld [vmem:[#allocation81_spill] sm:$0xff] }
 0x110   :  { %1184 = vrot.lane.b32.xlu1 %v4099_v56, %s3241_s2  ;;  %1425 = vrot.lane.b32.xlu0 %v4055_v48, %s3244_s30 }
 0x111   :  { %773 = vmatpush.msrb.mxu1 %v7827_v12  ;;  %788 = vmatpush.msrb.mxu2 %v7828_v13  ;;  %v7876_v12 = vld [vmem:[#allocation82_spill] sm:$0xff]  ;;  %v7877_v13 = vld [vmem:[#allocation83_spill] sm:$0xff] }
 0x112   :  { %808 = vmatpush.msrb.mxu3 %v7829_v14  ;;  %754 = vmatpush.msrb.mxu0 %v7830_v15  ;;  %v7878_v14 = vld [vmem:[#allocation84_spill] sm:$0xff]  ;;  %v7879_v15 = vld [vmem:[#allocation85_spill] sm:$0xff] }
 0x113   :  { %774 = vmatpush.msrb.mxu1 %v7831_v16  ;;  %789 = vmatpush.msrb.mxu2 %v7832_v18  ;;  %v7880_v16 = vld [vmem:[#allocation86_spill] sm:$0xff]  ;;  %v7881_v18 = vld [vmem:[#allocation87_spill] sm:$0xff] }
 0x114   :  { %809 = vmatpush.msrb.mxu3 %v7833_v19  ;;  %755 = vmatpush.msrb.mxu0 %v7834_v43  ;;  %v7882_v19 = vld [vmem:[#allocation88_spill] sm:$0xff]  ;;  %v7883_v43 = vld [vmem:[#allocation89_spill] sm:$0xff] }
 0x115   :  { %775 = vmatpush.msrb.mxu1 %v7835_v30  ;;  %790 = vmatpush.msrb.mxu2 %v7836_v58  ;;  %v7884_v30 = vld [vmem:[#allocation90_spill] sm:$0xff]  ;;  %v7887_v58 = vld [vmem:[#allocation93_spill] sm:$0xff] }
 0x116   :  { %810 = vmatpush.msrb.mxu3 %v7837_v59  ;;  %756 = vmatpush.msrb.mxu0 %v7838_v20  ;;  %v7888_v59 = vld [vmem:[#allocation94_spill] sm:$0xff]  ;;  %v7889_v20 = vld [vmem:[#allocation95_spill] sm:$0xff] }
 0x117   :  { %776 = vmatpush.msrb.mxu1 %v7839_v21  ;;  %791 = vmatpush.msrb.mxu2 %v7840_v24  ;;  %v7890_v21 = vld [vmem:[#allocation96_spill] sm:$0xff]  ;;  %v7891_v24 = vld [vmem:[#allocation97_spill] sm:$0xff] }
 0x118   :  { %1427 = vrot.lane.b32.xlu1 %v4099_v56, %s3244_s30  ;;  %1186 = vrot.lane.b32.xlu2 %v4141_v23, %s3241_s2 }
 0x119   :  { %1103 = vrot.lane.b32.xlu0 %v4099_v56, %s3242_s28  ;;  %811 = vmatpush.msrb.mxu3 %v7841_v25  ;;  %v7892_v25 = vld [vmem:[#allocation98_spill] sm:$0xff] }
 0x11a   :  { %757 = vmatmul.f32.vlgmr.msrb.gmra.mxu0 %v4034_v40  ;;  %777 = vmatmul.f32.vlgmr.msrb.gmra.mxu1 %v4037_v44 }
 0x11b   :  { %792 = vmatpush.msrb.mxu2 %v7842_v28  ;;  %812 = vmatpush.msrb.mxu3 %v7843_v29  ;;  %v7893_v28 = vld [vmem:[#allocation99_spill] sm:$0xff]  ;;  %v7894_v29 = vld [vmem:[#allocation100_spill] sm:$0xff] }
 0x11c   :  { %821 = vmatpush.msra.mxu0 %v7844_v32  ;;  %841 = vmatpush.msra.mxu1 %v7845_v26  ;;  %v7895_v32 = vld [vmem:[#allocation101_spill] sm:$0xff] }
 0x11d   :  { %793 = vmatpush.msrb.mxu2 %v7846_v33  ;;  %813 = vmatpush.msrb.mxu3 %v7847_v36  ;;  %v575_v33 = vpop.f32.mrf.mxu3  ;;  %v7896_v36 = vld [vmem:[#allocation102_spill] sm:$0xff] }
 0x11e   :  { %822 = vmatpush.msra.mxu0 %v7848_v37  ;;  %842 = vmatpush.msra.mxu1 %v7849_v41  ;;  %v555_v26 = vpop.f32.mrf.mxu2  ;;  %v7897_v37 = vld [vmem:[#allocation103_spill] sm:$0xff]  ;;  %v7898_v41 = vld [vmem:[#allocation104_spill] sm:$0xff] }
 0x11f   :  { %794 = vmatpush.msrb.mxu2 %v7850_v45  ;;  %814 = vmatpush.msrb.mxu3 %v7851_v38  ;;  %v7899_v45 = vld [vmem:[#allocation105_spill] sm:$0xff]  ;;  %v4240_v38 = vadd.f32 %v575_v33, %v555_v26  ;;  %v7943_v26 = vld [vmem:[#allocation147_spill] sm:$0xff] }
 0x120   :  { %1022 = vrot.lane.b32.xlu1 %v4141_v23, %s3243_s29  ;;  %1429 = vrot.lane.b32.xlu2 %v4141_v23, %s3244_s30 }
 0x121   :  { %1346 = vrot.lane.b32.xlu0 %v4099_v56, %s3245_s10  ;;  %823 = vmatpush.msra.mxu0 %v7852_v42  ;;  %7900 = vst [vmem:[#allocation16_spill] sm:$0xff] %v4240_v38  ;;  %v7901_v42 = vld [vmem:[#allocation106_spill] sm:$0xff] }
 0x122   :  { %843 = vmatpush.msra.mxu1 %v7853_v46  ;;  %795 = vmatpush.msrb.mxu2 %v7854_v49  ;;  %v7902_v46 = vld [vmem:[#allocation107_spill] sm:$0xff]  ;;  %v7903_v49 = vld [vmem:[#allocation108_spill] sm:$0xff] }
 0x123   :  { %815 = vmatpush.msrb.mxu3 %v7855_v50  ;;  %824 = vmatpush.msra.mxu0 %v7856_v51  ;;  %v7904_v50 = vld [vmem:[#allocation109_spill] sm:$0xff]  ;;  %v7905_v51 = vld [vmem:[#allocation110_spill] sm:$0xff] }
 0x124   :  { %844 = vmatpush.msra.mxu1 %v7857_v52  ;;  %796 = vmatpush.msrb.mxu2 %v7858_v53  ;;  %v7906_v52 = vld [vmem:[#allocation111_spill] sm:$0xff]  ;;  %v7907_v53 = vld [vmem:[#allocation112_spill] sm:$0xff] }
 0x125   :  { %816 = vmatpush.msrb.mxu3 %v7859_v54  ;;  %825 = vmatpush.msra.mxu0 %v7860_v60  ;;  %v7910_v60 = vld [vmem:[#allocation113_spill] sm:$0xff] }
 0x126   :  { %845 = vmatpush.msra.mxu1 %v7861_v61  ;;  %797 = vmatmul.f32.vlgmr.msrb.gmra.mxu2 %v4034_v40  ;;  %v7911_v61 = vld [vmem:[#allocation114_spill] sm:$0xff] }
 0x127   :  { %817 = vmatmul.f32.vlgmr.msrb.gmra.mxu3 %v4037_v44  ;;  %826 = vmatpush.msra.mxu0 %v7863_v63  ;;  %v7912_v63 = vld [vmem:[#allocation119_spill] sm:$0xff] }
 0x128   :  { %1105 = vrot.lane.b32.xlu1 %v4141_v23, %s3242_s28  ;;  %1024 = vrot.lane.b32.xlu2 %v4181_v62, %s3243_s29 }
 0x129   :  { %1267 = vrot.lane.b32.xlu0 %v4141_v23, %s3246_s11  ;;  %846 = vmatpush.msra.mxu1 %v7864_v0  ;;  %v7913_v0 = vld [vmem:[#allocation120_spill] sm:$0xff] }
 0x12a   :  { %861 = vmatpush.msra.mxu2 %v7865_v1  ;;  %881 = vmatpush.msra.mxu3 %v7866_v2  ;;  %v7914_v1 = vld [vmem:[#allocation117_spill] sm:$0xff]  ;;  %v7915_v2 = vld [vmem:[#allocation118_spill] sm:$0xff] }
 0x12b   :  { %827 = vmatpush.msra.mxu0 %v7867_v3  ;;  %847 = vmatpush.msra.mxu1 %v7868_v4  ;;  %v7916_v3 = vld [vmem:[#allocation123_spill] sm:$0xff]  ;;  %v7917_v4 = vld [vmem:[#allocation121_spill] sm:$0xff] }
 0x12c   :  { %862 = vmatpush.msra.mxu2 %v7869_v5  ;;  %882 = vmatpush.msra.mxu3 %v7870_v6  ;;  %v7918_v5 = vld [vmem:[#allocation122_spill] sm:$0xff] }
 0x12d   :  { %828 = vmatpush.msra.mxu0 %v7871_v7  ;;  %848 = vmatpush.msra.mxu1 %v7872_v8  ;;  %v7920_v7 = vld [vmem:[#allocation126_spill] sm:$0xff]  ;;  %v7921_v8 = vld [vmem:[#allocation127_spill] sm:$0xff] }
 0x12e   :  { %863 = vmatpush.msra.mxu2 %v7873_v9  ;;  %883 = vmatpush.msra.mxu3 %v7874_v10  ;;  %v7922_v9 = vld [vmem:[#allocation124_spill] sm:$0xff]  ;;  %v7923_v10 = vld [vmem:[#allocation125_spill] sm:$0xff] }
 0x12f   :  { %829 = vmatpush.msra.mxu0 %v7875_v11  ;;  %849 = vmatpush.msra.mxu1 %v7876_v12  ;;  %v7925_v11 = vld [vmem:[#allocation131_spill] sm:$0xff]  ;;  %v7926_v12 = vld [vmem:[#allocation128_spill] sm:$0xff] }
 0x130   :  { %1348 = vrot.lane.b32.xlu1 %v4141_v23, %s3245_s10  ;;  %1107 = vrot.lane.b32.xlu2 %v4181_v62, %s3242_s28 }
 0x131   :  { %1510 = vrot.lane.b32.xlu0 %v4141_v23, %s3247_s12  ;;  %864 = vmatpush.msra.mxu2 %v7877_v13  ;;  %v7927_v13 = vld [vmem:[#allocation129_spill] sm:$0xff] }
 0x132   :  { %884 = vmatpush.msra.mxu3 %v7878_v14  ;;  %830 = vmatpush.msra.mxu0 %v7879_v15  ;;  %v7928_v14 = vld [vmem:[#allocation132_spill] sm:$0xff]  ;;  %v7929_v15 = vld [vmem:[#allocation133_spill] sm:$0xff] }
 0x133   :  { %850 = vmatpush.msra.mxu1 %v7880_v16  ;;  %865 = vmatpush.msra.mxu2 %v7881_v18  ;;  %v7930_v16 = vld [vmem:[#allocation134_spill] sm:$0xff] }
 0x134   :  { %885 = vmatpush.msra.mxu3 %v7882_v19  ;;  %831 = vmatpush.msra.mxu0 %v7883_v43  ;;  %v7931_v19 = vld [vmem:[#allocation135_spill] sm:$0xff]  ;;  %v7932_v43 = vld [vmem:[#allocation136_spill] sm:$0xff] }
 0x135   :  { %851 = vmatpush.msra.mxu1 %v7884_v30  ;;  %866 = vmatpush.msra.mxu2 %v7885_v47  ;;  %v7933_v30 = vld [vmem:[#allocation137_spill] sm:$0xff]  ;;  %v7934_v47 = vld [vmem:[#allocation138_spill] sm:$0xff] }
 0x136   :  { %886 = vmatpush.msra.mxu3 %v7886_v27  ;;  %832 = vmatpush.msra.mxu0 %v7887_v58  ;;  %v7935_v27 = vld [vmem:[#allocation139_spill] sm:$0xff]  ;;  %v7936_v58 = vld [vmem:[#allocation140_spill] sm:$0xff] }
 0x137   :  { %852 = vmatpush.msra.mxu1 %v7888_v59  ;;  %867 = vmatpush.msra.mxu2 %v7889_v20  ;;  %v7937_v59 = vld [vmem:[#allocation141_spill] sm:$0xff]  ;;  %v7938_v20 = vld [vmem:[#allocation142_spill] sm:$0xff] }
 0x138   :  { %887 = vmatpush.msra.mxu3 %v7890_v21  ;;  %1350 = vrot.lane.b32.xlu2 %v4181_v62, %s3245_s10  ;;  %v7939_v21 = vld [vmem:[#allocation143_spill] sm:$0xff] }
 0x139   :  { %1269 = vrot.lane.b32.xlu1 %v4181_v62, %s3246_s11  ;;  %1188 = vrot.lane.b32.xlu0 %v4181_v62, %s3241_s2 }
 0x13a   :  { %833 = vmatpush.msra.mxu0 %v7891_v24  ;;  %853 = vmatpush.msra.mxu1 %v7892_v25  ;;  %v7940_v24 = vld [vmem:[#allocation144_spill] sm:$0xff]  ;;  %v7941_v25 = vld [vmem:[#allocation145_spill] sm:$0xff] }
 0x13b   :  { %868 = vmatpush.msra.mxu2 %v7893_v28  ;;  %888 = vmatpush.msra.mxu3 %v7894_v29 }
 0x13c   :  { %834 = vmatpush.msra.mxu0 %v7895_v32  ;;  %854 = vmatpush.msra.mxu1 %v7896_v36  ;;  %v7942_v32 = vld [vmem:[#allocation146_spill] sm:$0xff] }
 0x13d   :  { %869 = vmatpush.msra.mxu2 %v7897_v37  ;;  %889 = vmatpush.msra.mxu3 %v7898_v41  ;;  %v7944_v37 = vld [vmem:[#allocation148_spill] sm:$0xff]  ;;  %v7945_v41 = vld [vmem:[#allocation149_spill] sm:$0xff] }
 0x13e   :  { %835 = vmatpush.msra.mxu0 %v7899_v45  ;;  %855 = vmatpush.msra.mxu1 %v7901_v42  ;;  %v7946_v42 = vld [vmem:[#allocation150_spill] sm:$0xff] }
 0x13f   :  { %870 = vmatpush.msra.mxu2 %v7902_v46  ;;  %890 = vmatpush.msra.mxu3 %v7903_v49  ;;  %v7947_v46 = vld [vmem:[#allocation151_spill] sm:$0xff] }
 0x140   :  { %836 = vmatpush.msra.mxu0 %v7904_v50  ;;  %856 = vmatpush.msra.mxu1 %v7905_v51  ;;  %v7949_v50 = vld [vmem:[#allocation152_spill] sm:$0xff]  ;;  %v7950_v51 = vld [vmem:[#allocation153_spill] sm:$0xff] }
 0x141   :  { %871 = vmatpush.msra.mxu2 %v7906_v52  ;;  %891 = vmatpush.msra.mxu3 %v7907_v53  ;;  %v4250_v54 = vpop.permute.xlu2 %1180  ;;  %v595_v28 = vpop.f32.mrf.mxu0  ;;  %v7951_v52 = vld [vmem:[#allocation154_spill] sm:$0xff]  ;;  %v7952_v53 = vld [vmem:[#allocation155_spill] sm:$0xff] }
 0x142   :  { %837 = vmatmul.f32.vlgmr.msra.gmra.mxu0 %v4034_v40  ;;  %857 = vmatmul.f32.vlgmr.msra.gmra.mxu1 %v4037_v44  ;;  %v615_v29 = vpop.f32.mrf.mxu1 }
 0x143   :  { %1026 = vrot.lane.b32.xlu2 %v4240_v38, %s3243_s29  ;;  %1512 = vrot.lane.b32.xlu1 %v4181_v62, %s3247_s12  ;;  %v4323_v49 = vadd.f32 %v615_v29, %v595_v28  ;;  %v7980_v29 = vld [vmem:[#allocation180_spill] sm:$0xff] }
 0x144   :  { %1431 = vrot.lane.b32.xlu0 %v4181_v62, %s3244_s30  ;;  %872 = vmatpush.msra.mxu2 %v7908_v55  ;;  %v7953_v55 = vld [vmem:[#allocation156_spill] sm:$0xff] }
 0x145   :  { %892 = vmatpush.msra.mxu3 %v7909_v57  ;;  %901 = vmatpush.msrb.mxu0 %v7910_v60  ;;  %7948 = vst [vmem:[#allocation14_spill] sm:$0xff] %v4323_v49  ;;  %v7954_v57 = vld [vmem:[#allocation157_spill] sm:$0xff]  ;;  %v7955_v60 = vld [vmem:[#allocation158_spill] sm:$0xff] }
 0x146   :  { %921 = vmatpush.msrb.mxu1 %v7911_v61  ;;  %873 = vmatpush.msra.mxu2 %v7912_v63  ;;  %v7956_v61 = vld [vmem:[#allocation159_spill] sm:$0xff]  ;;  %v7957_v63 = vld [vmem:[#allocation160_spill] sm:$0xff] }
 0x147   :  { %893 = vmatpush.msra.mxu3 %v7913_v0  ;;  %902 = vmatpush.msrb.mxu0 %v7914_v1 }
 0x148   :  { %922 = vmatpush.msrb.mxu1 %v7915_v2  ;;  %874 = vmatpush.msra.mxu2 %v3804_v22  ;;  %v7924_v22 = vld [vmem:[#allocation130_spill] sm:$0xff]  ;;  %v7959_v2 = vld [vmem:[#allocation161_spill] sm:$0xff] }
 0x149   :  { %894 = vmatpush.msra.mxu3 %v7916_v3  ;;  %903 = vmatpush.msrb.mxu0 %v7917_v4  ;;  %v4271_v6 = vpop.permute.xlu2 %1423  ;;  %v7960_v3 = vld [vmem:[#allocation162_spill] sm:$0xff] }
 0x14a   :  { %923 = vmatpush.msrb.mxu1 %v7918_v5  ;;  %7919 = vst [vmem:[#allocation13_spill] sm:$0xff] %v4271_v6  ;;  %875 = vmatpush.msra.mxu2 %v7920_v7  ;;  %v7961_v5 = vld [vmem:[#allocation163_spill] sm:$0xff]  ;;  %v7962_v7 = vld [vmem:[#allocation164_spill] sm:$0xff] }
 0x14b   :  { %895 = vmatpush.msra.mxu3 %v7921_v8  ;;  %904 = vmatpush.msrb.mxu0 %v7922_v9  ;;  %v7963_v8 = vld [vmem:[#allocation165_spill] sm:$0xff]  ;;  %v7964_v9 = vld [vmem:[#allocation166_spill] sm:$0xff] }
 0x14c   :  { %924 = vmatpush.msrb.mxu1 %v7923_v10  ;;  %1271 = vrot.lane.b32.xlu2 %v4240_v38, %s3246_s11  ;;  %v7965_v10 = vld [vmem:[#allocation167_spill] sm:$0xff] }
 0x14d   :  { %1190 = vrot.lane.b32.xlu1 %v4240_v38, %s3241_s2  ;;  %1109 = vrot.lane.b32.xlu0 %v4240_v38, %s3242_s28 }
 0x14e   :  { %876 = vmatpush.msra.mxu2 %v7924_v22  ;;  %896 = vmatpush.msra.mxu3 %v7925_v11  ;;  %v7966_v22 = vld [vmem:[#allocation168_spill] sm:$0xff]  ;;  %v7967_v11 = vld [vmem:[#allocation169_spill] sm:$0xff] }
 0x14f   :  { %905 = vmatpush.msrb.mxu0 %v7926_v12  ;;  %925 = vmatpush.msrb.mxu1 %v7927_v13  ;;  %v7968_v12 = vld [vmem:[#allocation170_spill] sm:$0xff]  ;;  %v7969_v13 = vld [vmem:[#allocation171_spill] sm:$0xff] }
 0x150   :  { %877 = vmatmul.f32.vlgmr.msra.gmra.mxu2 %v4034_v40  ;;  %897 = vmatmul.f32.vlgmr.msra.gmra.mxu3 %v4037_v44 }
 0x151   :  { %906 = vmatpush.msrb.mxu0 %v7928_v14  ;;  %926 = vmatpush.msrb.mxu1 %v7929_v15  ;;  %v4292_v18 = vpop.permute.xlu2 %1101  ;;  %v7970_v14 = vld [vmem:[#allocation172_spill] sm:$0xff]  ;;  %v7971_v15 = vld [vmem:[#allocation173_spill] sm:$0xff] }
 0x152   :  { %941 = vmatpush.msrb.mxu2 %v7930_v16  ;;  %961 = vmatpush.msrb.mxu3 %v7931_v19  ;;  %v7972_v16 = vld [vmem:[#allocation174_spill] sm:$0xff]  ;;  %v7973_v19 = vld [vmem:[#allocation175_spill] sm:$0xff] }
 0x153   :  { %907 = vmatpush.msrb.mxu0 %v7932_v43  ;;  %927 = vmatpush.msrb.mxu1 %v7933_v30 }
 0x154   :  { %942 = vmatpush.msrb.mxu2 %v7934_v47  ;;  %962 = vmatpush.msrb.mxu3 %v7935_v27  ;;  %v7975_v27 = vld [vmem:[#allocation176_spill] sm:$0xff] }
 0x155   :  { %908 = vmatpush.msrb.mxu0 %v7936_v58  ;;  %928 = vmatpush.msrb.mxu1 %v7937_v59  ;;  %v7976_v58 = vld [vmem:[#allocation177_spill] sm:$0xff] }
 0x156   :  { %943 = vmatpush.msrb.mxu2 %v7938_v20  ;;  %963 = vmatpush.msrb.mxu3 %v7939_v21  ;;  %v7977_v21 = vld [vmem:[#allocation178_spill] sm:$0xff] }
 0x157   :  { %1514 = vrot.lane.b32.xlu2 %v4240_v38, %s3247_s12  ;;  %1433 = vrot.lane.b32.xlu1 %v4240_v38, %s3244_s30 }
 0x158   :  { %1352 = vrot.lane.b32.xlu0 %v4240_v38, %s3245_s10  ;;  %909 = vmatpush.msrb.mxu0 %v7940_v24  ;;  %v635_v59 = vpop.f32.mrf.mxu2 }
 0x159   :  { %929 = vmatpush.msrb.mxu1 %v7941_v25  ;;  %944 = vmatpush.msrb.mxu2 %v7942_v32  ;;  %v4313_v33 = vpop.permute.xlu2 %1344  ;;  %v655_v20 = vpop.f32.mrf.mxu3  ;;  %v7979_v25 = vld [vmem:[#allocation179_spill] sm:$0xff]  ;;  %v7981_v32 = vld [vmem:[#allocation181_spill] sm:$0xff] }
 0x15a   :  { %964 = vmatpush.msrb.mxu3 %v7943_v26  ;;  %v4315_v36 = vpop.permute.xlu1 %1099  ;;  %910 = vmatpush.msrb.mxu0 %v7944_v37  ;;  %v4319_v45 = vpop.permute.xlu0 %1016  ;;  %v4379_v24 = vadd.f32 %v655_v20, %v635_v59 }
 0x15b   :  { %930 = vmatpush.msrb.mxu1 %v7945_v41  ;;  %945 = vmatpush.msrb.mxu2 %v7946_v42 }
 0x15c   :  { %965 = vmatpush.msrb.mxu3 %v7947_v46  ;;  %911 = vmatpush.msrb.mxu0 %v7949_v50  ;;  %7978 = vst [vmem:[#allocation17_spill] sm:$0xff] %v4379_v24 }
 0x15d   :  { %931 = vmatpush.msrb.mxu1 %v7950_v51  ;;  %946 = vmatpush.msrb.mxu2 %v7951_v52 }
 0x15e   :  { %966 = vmatpush.msrb.mxu3 %v7952_v53  ;;  %912 = vmatpush.msrb.mxu0 %v7953_v55 }
 0x15f   :  { %932 = vmatpush.msrb.mxu1 %v7954_v57  ;;  %947 = vmatpush.msrb.mxu2 %v7955_v60 }
 0x160   :  { %967 = vmatpush.msrb.mxu3 %v7956_v61  ;;  %1192 = vrot.lane.b32.xlu2 %v4323_v49, %s3241_s2 }
 0x161   :  { %1111 = vrot.lane.b32.xlu1 %v4323_v49, %s3242_s28  ;;  %1028 = vrot.lane.b32.xlu0 %v4323_v49, %s3243_s29  ;;  %v4340_v0 = vpop.permute.xlu2 %1265 }
 0x162   :  { %913 = vmatpush.msrb.mxu0 %v7957_v63  ;;  %v4342_v1 = vpop.permute.xlu1 %1342  ;;  %933 = vmatpush.msrb.mxu1 %v7959_v2  ;;  %v4346_v4 = vpop.permute.xlu0 %1261 }
 0x163   :  { %7958 = vst [vmem:[#allocation19_spill] sm:$0xff] %v4342_v1  ;;  %948 = vmatpush.msrb.mxu2 %v7960_v3  ;;  %968 = vmatpush.msrb.mxu3 %v7961_v5 }
 0x164   :  { %914 = vmatpush.msrb.mxu0 %v7962_v7  ;;  %934 = vmatpush.msrb.mxu1 %v7963_v8 }
 0x165   :  { %949 = vmatpush.msrb.mxu2 %v7964_v9  ;;  %969 = vmatpush.msrb.mxu3 %v7965_v10 }
 0x166   :  { %915 = vmatpush.msrb.mxu0 %v7966_v22  ;;  %935 = vmatpush.msrb.mxu1 %v7967_v11 }
 0x167   :  { %950 = vmatpush.msrb.mxu2 %v7968_v12  ;;  %970 = vmatpush.msrb.mxu3 %v7969_v13 }
 0x168   :  { %916 = vmatpush.msrb.mxu0 %v7970_v14  ;;  %936 = vmatpush.msrb.mxu1 %v7971_v15 }
 0x169   :  { %951 = vmatpush.msrb.mxu2 %v7972_v16  ;;  %971 = vmatpush.msrb.mxu3 %v7973_v19  ;;  %v4362_v43 = vpop.permute.xlu2 %1508 }
 0x16a   :  { %917 = vmatmul.f32.vlgmr.msrb.gmra.mxu0 %v4034_v40  ;;  %v4364_v30 = vpop.permute.xlu1 %1263  ;;  %937 = vmatmul.f32.vlgmr.msrb.gmra.mxu1 %v4037_v44  ;;  %v4369_v47 = vpop.permute.xlu0 %1504 }
 0x16b   :  { %1435 = vrot.lane.b32.xlu2 %v4323_v49, %s3244_s30  ;;  %7974 = vst [vmem:[#allocation20_spill] sm:$0xff] %v4369_v47  ;;  %1354 = vrot.lane.b32.xlu1 %v4323_v49, %s3245_s10 }
 0x16c   :  { %1273 = vrot.lane.b32.xlu0 %v4323_v49, %s3246_s11  ;;  %952 = vmatpush.msrb.mxu2 %v7975_v27 }
 0x16d   :  { %972 = vmatpush.msrb.mxu3 %v7976_v58 }
 0x16e   :  { %953 = vmatpush.msrb.mxu2 %v7977_v21 }
 0x16f   :  { %973 = vmatpush.msrb.mxu3 %v3982_v31 }
 0x170   :  { %954 = vmatpush.msrb.mxu2 %v3986_v35 }
 0x171   :  { %974 = vmatpush.msrb.mxu3 %v7979_v25 }
 0x172   :  { %v4383_v28 = vpop.permute.xlu1 %1506  ;;  %955 = vmatpush.msrb.mxu2 %v7980_v29  ;;  %v4387_v26 = vpop.permute.xlu2 %1186 }
 0x173   :  { %975 = vmatpush.msrb.mxu3 %v7981_v32  ;;  %v4389_v37 = vpop.permute.xlu0 %1018  ;;  %1113 = vrot.lane.b32.xlu2 %v4379_v24, %s3242_s28 }
 0x174   :  { %1030 = vrot.lane.b32.xlu1 %v4379_v24, %s3243_s29  ;;  %1516 = vrot.lane.b32.xlu0 %v4323_v49, %s3247_s12 }
 0x175   :  { %956 = vmatpush.msrb.mxu2 %v3998_v17  ;;  %976 = vmatpush.msrb.mxu3 %v4000_v34  ;;  %v678_v17 = vpop.f32.mrf.mxu0  ;;  %v698_v34 = vpop.f32.mrf.mxu1 }
 0x176   :  { %957 = vmatmul.f32.vlgmr.msrb.gmra.mxu2 %v4034_v40  ;;  %977 = vmatmul.f32.vlgmr.msrb.gmra.mxu3 %v4037_v44  ;;  %v4413_v40 = vadd.f32 %v698_v34, %v678_v17 }
 0x178   :  { %7982 = vst [vmem:[#allocation18_spill] sm:$0xff] %v4413_v40 }
 0x17a   :  { %v4401_v31 = vpop.permute.xlu1 %1020  ;;  %v4403_v35 = vpop.permute.xlu2 %1429 }
 0x17b   :  { %v4405_v41 = vpop.permute.xlu0 %1182  ;;  %1356 = vrot.lane.b32.xlu2 %v4379_v24, %s3245_s10 }
 0x17c   :  { %1275 = vrot.lane.b32.xlu1 %v4379_v24, %s3246_s11  ;;  %1194 = vrot.lane.b32.xlu0 %v4379_v24, %s3241_s2 }
 0x180   :  { %v718_v60 = vpop.f32.mrf.mxu2  ;;  %v738_v61 = vpop.f32.mrf.mxu3 }
 0x181   :  { %v4451_v63 = vadd.f32 %v738_v61, %v718_v60 }
 0x182   :  { %v4415_v44 = vpop.permute.xlu1 %1184  ;;  %v4417_v42 = vpop.permute.xlu2 %1024 }
 0x183   :  { %v4419_v46 = vpop.permute.xlu0 %1425  ;;  %1032 = vrot.lane.b32.xlu2 %v4413_v40, %s3243_s29  ;;  %7983 = vst [vmem:[#allocation23_spill] sm:$0xff] %v4451_v63 }
 0x184   :  { %1518 = vrot.lane.b32.xlu1 %v4379_v24, %s3247_s12  ;;  %1437 = vrot.lane.b32.xlu0 %v4379_v24, %s3244_s30 }
 0x18a   :  { %v4427_v50 = vpop.permute.xlu1 %1427  ;;  %v4429_v51 = vpop.permute.xlu2 %1107 }
 0x18b   :  { %v4431_v52 = vpop.permute.xlu0 %1103  ;;  %1277 = vrot.lane.b32.xlu2 %v4413_v40, %s3246_s11 }
 0x18c   :  { %1196 = vrot.lane.b32.xlu1 %v4413_v40, %s3241_s2  ;;  %1115 = vrot.lane.b32.xlu0 %v4413_v40, %s3242_s28 }
 0x192   :  { %v4439_v53 = vpop.permute.xlu1 %1022  ;;  %v4441_v55 = vpop.permute.xlu2 %1350 }
 0x193   :  { %v4443_v57 = vpop.permute.xlu0 %1346  ;;  %1520 = vrot.lane.b32.xlu2 %v4413_v40, %s3247_s12 }
 0x194   :  { %1439 = vrot.lane.b32.xlu1 %v4413_v40, %s3244_s30  ;;  %1358 = vrot.lane.b32.xlu0 %v4413_v40, %s3245_s10 }
 0x197   :  { %v758_v9 = vpop.f32.mrf.mxu0  ;;  %v778_v10 = vpop.f32.mrf.mxu1 }
 0x198   :  { %v4477_v11 = vadd.f32 %v778_v10, %v758_v9 }
 0x19a   :  { %v4453_v2 = vpop.permute.xlu1 %1105  ;;  %7984 = vst [vmem:[#allocation24_spill] sm:$0xff] %v4477_v11 }
 0x19b   :  { %v4455_v3 = vpop.permute.xlu0 %1267  ;;  %1198 = vrot.lane.b32.xlu2 %v4451_v63, %s3241_s2 }
 0x19c   :  { %1117 = vrot.lane.b32.xlu1 %v4451_v63, %s3242_s28  ;;  %1034 = vrot.lane.b32.xlu0 %v4451_v63, %s3243_s29 }
 0x19d   :  { %v4463_v5 = vpop.permute.xlu2 %1026 }
 0x1a2   :  { %v4465_v7 = vpop.permute.xlu1 %1348 }
 0x1a3   :  { %v4467_v8 = vpop.permute.xlu0 %1510  ;;  %1441 = vrot.lane.b32.xlu2 %v4451_v63, %s3244_s30 }
 0x1a4   :  { %1360 = vrot.lane.b32.xlu1 %v4451_v63, %s3245_s10  ;;  %1279 = vrot.lane.b32.xlu0 %v4451_v63, %s3246_s11 }
 0x1a6   :  { %v4475_v22 = vpop.permute.xlu2 %1271 }
 0x1a9   :  { %v798_v15 = vpop.f32.mrf.mxu2 }
 0x1aa   :  { %v818_v16 = vpop.f32.mrf.mxu3 }
 0x1ab   :  { %1119 = vrot.lane.b32.xlu2 %v4477_v11, %s3242_s28  ;;  %v4483_v12 = vpop.permute.xlu1 %1269  ;;  %v4487_v13 = vpop.permute.xlu0 %1188  ;;  %v4501_v58 = vadd.f32 %v818_v16, %v798_v15 }
 0x1ac   :  { %1036 = vrot.lane.b32.xlu1 %v4477_v11, %s3243_s29  ;;  %1200 = vrot.lane.b32.xlu0 %v4477_v11, %s3241_s2 }
 0x1ad   :  { %7985 = vst [vmem:[#allocation21_spill] sm:$0xff] %v4501_v58 }
 0x1b1   :  { %v4489_v14 = vpop.permute.xlu2 %1514 }
 0x1b3   :  { %1362 = vrot.lane.b32.xlu2 %v4477_v11, %s3245_s10 }
 0x1b4   :  { %1281 = vrot.lane.b32.xlu1 %v4477_v11, %s3246_s11  ;;  %1443 = vrot.lane.b32.xlu0 %v4477_v11, %s3244_s30 }
 0x1b5   :  { %v4497_v19 = vpop.permute.xlu1 %1512 }
 0x1b6   :  { %v4499_v27 = vpop.permute.xlu0 %1431 }
 0x1ba   :  { %v4503_v59 = vpop.permute.xlu2 %1192 }
 0x1bb   :  { %7986 = vst [vmem:[#allocation22_spill] sm:$0xff] %v4503_v59  ;;  %1038 = vrot.lane.b32.xlu2 %v4501_v58, %s3243_s29 }
 0x1bc   :  { %1202 = vrot.lane.b32.xlu1 %v4501_v58, %s3241_s2  ;;  %1121 = vrot.lane.b32.xlu0 %v4501_v58, %s3242_s28 }
 0x1bf   :  { %v4511_v20 = vpop.permute.xlu1 %1190  ;;  %v4513_v21 = vpop.permute.xlu0 %1109 }
 0x1c0   :  { %7987 = vst [vmem:[#allocation27_spill] sm:$0xff] %v4513_v21  ;;  %v838_v25 = vpop.f32.mrf.mxu0  ;;  %v858_v32 = vpop.f32.mrf.mxu1 }
 0x1c1   :  { %v4523_v17 = vadd.f32 %v858_v32, %v838_v25 }
 0x1c3   :  { %1283 = vrot.lane.b32.xlu2 %v4501_v58, %s3246_s11  ;;  %7989 = vst [vmem:[#allocation25_spill] sm:$0xff] %v4523_v17 }
 0x1c4   :  { %1445 = vrot.lane.b32.xlu1 %v4501_v58, %s3244_s30  ;;  %1364 = vrot.lane.b32.xlu0 %v4501_v58, %s3245_s10 }
 0x1c5   :  { %v4521_v29 = vpop.permute.xlu2 %1435 }
 0x1c6   :  { %7988 = vst [vmem:[#allocation28_spill] sm:$0xff] %v4521_v29 }
 0x1c9   :  { %v4525_v34 = vpop.permute.xlu1 %1433 }
 0x1ca   :  { %v4527_v60 = vpop.permute.xlu0 %1352 }
 0x1cb   :  { %7990 = vst [vmem:[#allocation26_spill] sm:$0xff] %v4527_v60  ;;  %1204 = vrot.lane.b32.xlu2 %v4523_v17, %s3241_s2 }
 0x1cc   :  { %1123 = vrot.lane.b32.xlu1 %v4523_v17, %s3242_s28  ;;  %1040 = vrot.lane.b32.xlu0 %v4523_v17, %s3243_s29 }
 0x1cd   :  { %v4535_v61 = vpop.permute.xlu2 %1113 }
 0x1ce   :  { %7991 = vst [vmem:[#allocation31_spill] sm:$0xff] %v4535_v61 }
 0x1d3   :  { %1447 = vrot.lane.b32.xlu2 %v4523_v17, %s3244_s30  ;;  %v4541_v9 = vpop.permute.xlu1 %1111  ;;  %v878_v10 = vpop.f32.mrf.mxu2 }
 0x1d4   :  { %1366 = vrot.lane.b32.xlu1 %v4523_v17, %s3245_s10  ;;  %7992 = vst [vmem:[#allocation32_spill] sm:$0xff] %v4541_v9  ;;  %1285 = vrot.lane.b32.xlu0 %v4523_v17, %s3246_s11  ;;  %v4545_v15 = vpop.permute.xlu0 %1028  ;;  %v898_v16 = vpop.f32.mrf.mxu3 }
 0x1d5   :  { %7993 = vst [vmem:[#allocation29_spill] sm:$0xff] %v4545_v15  ;;  %v4547_v25 = vpop.permute.xlu2 %1356  ;;  %v4549_v32 = vadd.f32 %v898_v16, %v878_v10 }
 0x1d6   :  { %7994 = vst [vmem:[#allocation30_spill] sm:$0xff] %v4547_v25 }
 0x1d7   :  { %7995 = vst [vmem:[#allocation35_spill] sm:$0xff] %v4549_v32 }
 0x1db   :  { %1125 = vrot.lane.b32.xlu2 %v4549_v32, %s3242_s28 }
 0x1dc   :  { %1042 = vrot.lane.b32.xlu1 %v4549_v32, %s3243_s29  ;;  %1206 = vrot.lane.b32.xlu0 %v4549_v32, %s3241_s2 }
 0x1dd   :  { %v4557_v9 = vpop.permute.xlu2 %1032  ;;  %v4559_v61 = vpop.permute.xlu1 %1354 }
 0x1de   :  { %7996 = vst [vmem:[#allocation36_spill] sm:$0xff] %v4557_v9  ;;  %v4561_v29 = vpop.permute.xlu0 %1273 }
 0x1df   :  { %7997 = vst [vmem:[#allocation33_spill] sm:$0xff] %v4559_v61 }
 0x1e0   :  { %7998 = vst [vmem:[#allocation34_spill] sm:$0xff] %v4561_v29 }
 0x1e3   :  { %1368 = vrot.lane.b32.xlu2 %v4549_v32, %s3245_s10 }
 0x1e4   :  { %1287 = vrot.lane.b32.xlu1 %v4549_v32, %s3246_s11  ;;  %1449 = vrot.lane.b32.xlu0 %v4549_v32, %s3244_s30 }
 0x1e5   :  { %v4569_v10 = vpop.permute.xlu2 %1277 }
 0x1e6   :  { %7999 = vst [vmem:[#allocation39_spill] sm:$0xff] %v4569_v10  ;;  %v4571_v16 = vpop.permute.xlu1 %1030  ;;  %v4573_v25 = vpop.permute.xlu0 %1516 }
 0x1e7   :  { %8000 = vst [vmem:[#allocation40_spill] sm:$0xff] %v4571_v16  ;;  %v918_v9 = vpop.f32.mrf.mxu0  ;;  %v938_v15 = vpop.f32.mrf.mxu1 }
 0x1e8   :  { %8001 = vst [vmem:[#allocation37_spill] sm:$0xff] %v4573_v25  ;;  %v4575_v61 = vadd.f32 %v938_v15, %v918_v9 }
 0x1ea   :  { %8002 = vst [vmem:[#allocation38_spill] sm:$0xff] %v4575_v61 }
 0x1eb   :  { %1044 = vrot.lane.b32.xlu2 %v4575_v61, %s3243_s29 }
 0x1ec   :  { %1208 = vrot.lane.b32.xlu1 %v4575_v61, %s3241_s2  ;;  %1127 = vrot.lane.b32.xlu0 %v4575_v61, %s3242_s28 }
 0x1ed   :  { %v4583_v29 = vpop.permute.xlu2 %1520 }
 0x1ee   :  { %8003 = vst [vmem:[#allocation43_spill] sm:$0xff] %v4583_v29  ;;  %v4585_v10 = vpop.permute.xlu1 %1275  ;;  %v4587_v16 = vpop.permute.xlu0 %1194 }
 0x1ef   :  { %8004 = vst [vmem:[#allocation44_spill] sm:$0xff] %v4585_v10 }
 0x1f0   :  { %8005 = vst [vmem:[#allocation41_spill] sm:$0xff] %v4587_v16 }
 0x1f3   :  { %1289 = vrot.lane.b32.xlu2 %v4575_v61, %s3246_s11 }
 0x1f4   :  { %1451 = vrot.lane.b32.xlu1 %v4575_v61, %s3244_s30  ;;  %1370 = vrot.lane.b32.xlu0 %v4575_v61, %s3245_s10 }
 0x1f5   :  { %v4595_v9 = vpop.permute.xlu2 %1198 }
 0x1f6   :  { %8006 = vst [vmem:[#allocation42_spill] sm:$0xff] %v4595_v9  ;;  %v4597_v15 = vpop.permute.xlu1 %1518  ;;  %v4599_v25 = vpop.permute.xlu0 %1437 }
 0x1f7   :  { %8007 = vst [vmem:[#allocation47_spill] sm:$0xff] %v4597_v15 }
 0x1f8   :  { %8008 = vst [vmem:[#allocation48_spill] sm:$0xff] %v4599_v25 }
 0x1f9   :  { %v958_v29 = vpop.f32.mrf.mxu2  ;;  %v978_v60 = vpop.f32.mrf.mxu3 }
 0x1fa   :  { %v4601_v10 = vadd.f32 %v978_v60, %v958_v29 }
 0x1fc   :  { %8009 = vst [vmem:[#allocation45_spill] sm:$0xff] %v4601_v10  ;;  %1210 = vrot.lane.b32.xlu2 %v4601_v10, %s3241_s2  ;;  %1129 = vrot.lane.b32.xlu1 %v4601_v10, %s3242_s28 }
 0x1fd   :  { %1046 = vrot.lane.b32.xlu0 %v4601_v10, %s3243_s29  ;;  %v4609_v16 = vpop.permute.xlu2 %1441 }
 0x1fe   :  { %8010 = vst [vmem:[#allocation46_spill] sm:$0xff] %v4609_v16  ;;  %v4611_v9 = vpop.permute.xlu1 %1196  ;;  %v4613_v15 = vpop.permute.xlu0 %1115 }
 0x1ff   :  { %8011 = vst [vmem:[#allocation49_spill] sm:$0xff] %v4611_v9 }
 0x200   :  { %8012 = vst [vmem:[#allocation50_spill] sm:$0xff] %v4613_v15 }
 0x204   :  { %1453 = vrot.lane.b32.xlu2 %v4601_v10, %s3244_s30  ;;  %1372 = vrot.lane.b32.xlu1 %v4601_v10, %s3245_s10 }
 0x205   :  { %1291 = vrot.lane.b32.xlu0 %v4601_v10, %s3246_s11  ;;  %v4621_v29 = vpop.permute.xlu2 %1119 }
 0x206   :  { %8013 = vst [vmem:[#allocation51_spill] sm:$0xff] %v4621_v29  ;;  %v4623_v60 = vpop.permute.xlu1 %1439  ;;  %v4625_v25 = vpop.permute.xlu0 %1358 }
 0x207   :  { %8014 = vst [vmem:[#allocation52_spill] sm:$0xff] %v4623_v60 }
 0x208   :  { %8015 = vst [vmem:[#allocation53_spill] sm:$0xff] %v4625_v25 }
 0x20c   :  { %1526 = vrot.lane.b32.xlu2 %v4501_v58, %s3247_s12  ;;  %1524 = vrot.lane.b32.xlu1 %v4477_v11, %s3247_s12 }
 0x20d   :  { %1522 = vrot.lane.b32.xlu0 %v4451_v63, %s3247_s12  ;;  %v4633_v15 = vpop.permute.xlu2 %1362 }
 0x20e   :  { %8016 = vst [vmem:[#allocation54_spill] sm:$0xff] %v4633_v15  ;;  %v4635_v9 = vpop.permute.xlu1 %1117  ;;  %v4637_v16 = vpop.permute.xlu0 %1034 }
 0x20f   :  { %8017 = vst [vmem:[#allocation55_spill] sm:$0xff] %v4635_v9 }
 0x210   :  { %8018 = vst [vmem:[#allocation56_spill] sm:$0xff] %v4637_v16 }
 0x214   :  { %1532 = vrot.lane.b32.xlu2 %v4575_v61, %s3247_s12  ;;  %1530 = vrot.lane.b32.xlu1 %v4549_v32, %s3247_s12 }
 0x215   :  { %1528 = vrot.lane.b32.xlu0 %v4523_v17, %s3247_s12  ;;  %v4645_v29 = vpop.permute.xlu2 %1038 }
 0x216   :  { %8019 = vst [vmem:[#allocation57_spill] sm:$0xff] %v4645_v29  ;;  %v4647_v25 = vpop.permute.xlu1 %1360  ;;  %v4649_v60 = vpop.permute.xlu0 %1279 }
 0x217   :  { %8020 = vst [vmem:[#allocation58_spill] sm:$0xff] %v4647_v25 }
 0x218   :  { %8021 = vst [vmem:[#allocation59_spill] sm:$0xff] %v4649_v60 }
 0x21c   :  { %1587 = vrot.lane.b32.xlu2 %v4055_v48, %s3248_s13  ;;  %1585 = vrot.lane.b32.xlu1 %v4020_v39, %s3248_s13 }
 0x21d   :  { %1534 = vrot.lane.b32.xlu0 %v4601_v10, %s3247_s12  ;;  %v4659_v15 = vpop.permute.xlu2 %1283 }
 0x21e   :  { %v4657_v16 = vpop.permute.xlu1 %1036  ;;  %8023 = vst [vmem:[#allocation61_spill] sm:$0xff] %v4659_v15  ;;  %v4661_v9 = vpop.permute.xlu0 %1200 }
 0x21f   :  { %8022 = vst [vmem:[#allocation60_spill] sm:$0xff] %v4657_v16 }
 0x220   :  { %8024 = vst [vmem:[#allocation62_spill] sm:$0xff] %v4661_v9 }
 0x224   :  { %1593 = vrot.lane.b32.xlu2 %v4181_v62, %s3248_s13  ;;  %1591 = vrot.lane.b32.xlu1 %v4141_v23, %s3248_s13 }
 0x225   :  { %1589 = vrot.lane.b32.xlu0 %v4099_v56, %s3248_s13  ;;  %v4673_v25 = vpop.permute.xlu2 %1204 }
 0x226   :  { %v4669_v29 = vpop.permute.xlu1 %1281  ;;  %v4671_v60 = vpop.permute.xlu0 %1443  ;;  %8027 = vst [vmem:[#allocation65_spill] sm:$0xff] %v4673_v25 }
 0x227   :  { %8025 = vst [vmem:[#allocation63_spill] sm:$0xff] %v4669_v29 }
 0x228   :  { %8026 = vst [vmem:[#allocation64_spill] sm:$0xff] %v4671_v60 }
 0x22c   :  { %1599 = vrot.lane.b32.xlu2 %v4379_v24, %s3248_s13  ;;  %1597 = vrot.lane.b32.xlu1 %v4323_v49, %s3248_s13 }
 0x22d   :  { %1595 = vrot.lane.b32.xlu0 %v4240_v38, %s3248_s13  ;;  %v4685_v15 = vpop.permute.xlu2 %1447 }
 0x22e   :  { %v4681_v9 = vpop.permute.xlu1 %1202  ;;  %v4683_v16 = vpop.permute.xlu0 %1121  ;;  %8030 = vst [vmem:[#allocation68_spill] sm:$0xff] %v4685_v15  ;;  %v4773_v15 = vld [vmem:[#allocation7 + $0x10] sm:$0xff] }
 0x22f   :  { %8028 = vst [vmem:[#allocation66_spill] sm:$0xff] %v4681_v9 }
 0x230   :  { %8029 = vst [vmem:[#allocation67_spill] sm:$0xff] %v4683_v16 }
 0x234   :  { %1605 = vrot.lane.b32.xlu2 %v4477_v11, %s3248_s13  ;;  %1603 = vrot.lane.b32.xlu1 %v4451_v63, %s3248_s13 }
 0x235   :  { %1601 = vrot.lane.b32.xlu0 %v4413_v40, %s3248_s13  ;;  %v4697_v60 = vpop.permute.xlu2 %1125 }
 0x236   :  { %v4693_v25 = vpop.permute.xlu1 %1445  ;;  %v4695_v29 = vpop.permute.xlu0 %1364  ;;  %8033 = vst [vmem:[#allocation71_spill] sm:$0xff] %v4697_v60 }
 0x237   :  { %8031 = vst [vmem:[#allocation69_spill] sm:$0xff] %v4693_v25 }
 0x238   :  { %8032 = vst [vmem:[#allocation70_spill] sm:$0xff] %v4695_v29 }
 0x23c   :  { %1611 = vrot.lane.b32.xlu2 %v4549_v32, %s3248_s13  ;;  %1609 = vrot.lane.b32.xlu1 %v4523_v17, %s3248_s13 }
 0x23d   :  { %1607 = vrot.lane.b32.xlu0 %v4501_v58, %s3248_s13  ;;  %v4715_v9 = vpop.permute.xlu2 %1368 }
 0x23e   :  { %v4705_v16 = vpop.permute.xlu1 %1123  ;;  %v4707_v11 = vpop.permute.xlu0 %1040  ;;  %8037 = vst [vmem:[#allocation75_spill] sm:$0xff] %v4715_v9 }
 0x23f   :  { %8034 = vst [vmem:[#allocation72_spill] sm:$0xff] %v4705_v16 }
 0x240   :  { %8035 = vst [vmem:[#allocation73_spill] sm:$0xff] %v4707_v11 }
 0x244   :  { %1615 = vrot.lane.b32.xlu1 %v4601_v10, %s3248_s13 }
 0x245   :  { %1613 = vrot.lane.b32.xlu0 %v4575_v61, %s3248_s13  ;;  %v4723_v58 = vpop.permute.xlu2 %1044 }
 0x246   :  { %v4713_v60 = vpop.permute.xlu1 %1366  ;;  %v4717_v32 = vpop.permute.xlu0 %1285  ;;  %8041 = vst [vmem:[#allocation79_spill] sm:$0xff] %v4723_v58 }
 0x247   :  { %8036 = vst [vmem:[#allocation74_spill] sm:$0xff] %v4713_v60 }
 0x248   :  { %8038 = vst [vmem:[#allocation76_spill] sm:$0xff] %v4717_v32 }
 0x24d   :  { %v4729_v10 = vpop.permute.xlu2 %1289 }
 0x24e   :  { %v4719_v17 = vpop.permute.xlu1 %1042  ;;  %v4721_v63 = vpop.permute.xlu0 %1206  ;;  %8044 = vst [vmem:[#allocation82_spill] sm:$0xff] %v4729_v10 }
 0x24f   :  { %8039 = vst [vmem:[#allocation77_spill] sm:$0xff] %v4719_v17 }
 0x250   :  { %8040 = vst [vmem:[#allocation78_spill] sm:$0xff] %v4721_v63 }
 0x256   :  { %v4725_v16 = vpop.permute.xlu1 %1287  ;;  %v4727_v11 = vpop.permute.xlu0 %1449 }
 0x257   :  { %8042 = vst [vmem:[#allocation80_spill] sm:$0xff] %v4725_v16  ;;  %v4735_v60 = vpop.permute.xlu2 %1210 }
 0x258   :  { %8043 = vst [vmem:[#allocation81_spill] sm:$0xff] %v4727_v11  ;;  %v1048_v11 = vlaneseq }
 0x25e   :  { %v4731_v29 = vpop.permute.xlu1 %1208  ;;  %v4733_v61 = vpop.permute.xlu0 %1127 }
 0x25f   :  { %8045 = vst [vmem:[#allocation83_spill] sm:$0xff] %v4731_v29  ;;  %v4741_v17 = vpop.permute.xlu2 %1453 }
 0x260   :  { %8046 = vst [vmem:[#allocation84_spill] sm:$0xff] %v4733_v61  ;;  %v4753_v61 = vand.u32 127, %v1048_v11 }
 0x261   :  { %8049 = vst [vmem:[#allocation87_spill] sm:$0xff] %v4741_v17  ;;  %v4762_v17 = vld [vmem:[#allocation7] sm:$0xff] }
 0x262   :  { %vm1131_vm0 = vcmp.lt.s32.totalorder %v4753_v61, 32  ;;  %vm1374_vm1 = vcmp.lt.s32.totalorder %v4753_v61, 127  ;;  %vm1293_vm2 = vcmp.lt.s32.totalorder %v4753_v61, 1  ;;  %vm1536_vm3 = vcmp.lt.s32.totalorder %v4753_v61, 96 }
 0x263   :  { %v1146_v11 = vsel %vm1131_vm0, %v4315_v36, %v4292_v18  ;;  %v1308_v24 = vsel %vm1293_vm2, %v4346_v4, %v4364_v30  ;;  %vm1050_vm4 = vcmp.lt.s32.totalorder %v4753_v61, 33  ;;  %vm1212_vm5 = vcmp.lt.s32.totalorder %v4753_v61, 31 }
 0x264   :  { %v1550_v62 = vsel %vm1536_vm3, %v4383_v28, %v4362_v43  ;;  %vm1455_vm6 = vcmp.lt.s32.totalorder %v4753_v61, 97  ;;  %vm1617_vm7 = vcmp.lt.s32.totalorder %v4753_v61, 95  ;;  %v8079_v48 = vperm.slane %v4762_v17, 6 }
 0x266   :  { %v4737_v9 = vpop.permute.xlu1 %1451  ;;  %v4739_v32 = vpop.permute.xlu0 %1370 }
 0x267   :  { %8047 = vst [vmem:[#allocation85_spill] sm:$0xff] %v4737_v9  ;;  %v4751_v29 = vpop.permute.xlu2 %1526  ;;  %v4757_v9 = vld [vmem:[#allocation7 + $0x8] sm:$0xff] }
 0x268   :  { %8048 = vst [vmem:[#allocation86_spill] sm:$0xff] %v4739_v32  ;;  %v8068_v59 = vperm.slane %v4757_v9, 0 }
 0x269   :  { %8051 = vst [vmem:[#allocation89_spill] sm:$0xff] %v4751_v29  ;;  %v8055_v29 = vperm.slane %v4757_v9, 1 }
 0x26b   :  { %v4790_v49 = vmul.f32 %v8055_v29, %v1146_v11  ;;  %v8059_v11 = vperm.slane %v4762_v17, 5 }
 0x26d   :  { %8056 = vst [vmem:[#allocation93_spill] sm:$0xff] %v4790_v49  ;;  %v8063_v49 = vperm.slane %v4773_v15, 3 }
 0x26e   :  { %v4743_v63 = vpop.permute.xlu1 %1129 }
 0x26f   :  { %v4745_v58 = vpop.permute.xlu0 %1046  ;;  %v4771_v25 = vpop.permute.xlu2 %1532 }
 0x270   :  { %8054 = vst [vmem:[#allocation92_spill] sm:$0xff] %v4771_v25  ;;  %v1551_v25 = vsel %vm1536_vm3, %v4369_v47, %v4383_v28  ;;  %v8060_v47 = vperm.slane %v4757_v9, 3 }
 0x276   :  { %v4747_v16 = vpop.permute.xlu1 %1372 }
 0x277   :  { %8050 = vst [vmem:[#allocation88_spill] sm:$0xff] %v4747_v16  ;;  %v4749_v10 = vpop.permute.xlu0 %1291 }
 0x27e   :  { %v4755_v40 = vpop.permute.xlu1 %1524 }
 0x27f   :  { %8052 = vst [vmem:[#allocation90_spill] sm:$0xff] %v4755_v40  ;;  %v4760_v32 = vpop.permute.xlu0 %1522  ;;  %v1389_v40 = vsel %vm1374_vm1, %v4342_v1, %v4313_v33  ;;  %v1307_v1 = vsel %vm1293_vm2, %v4364_v30, %v4340_v0 }
 0x280   :  { %8053 = vst [vmem:[#allocation91_spill] sm:$0xff] %v4760_v32  ;;  %v4810_v30 = vmul.f32 %v8059_v11, %v1389_v40  ;;  %v1065_v32 = vsel %vm1050_vm4, %v4319_v45, %v4389_v37  ;;  %v4829_v11 = vld [vmem:[#allocation7 + $0x80] sm:$0xff]  ;;  %v4834_v28 = vmul.f32 %v8063_v49, %v1307_v1  ;;  %v8065_v40 = vperm.slane %v4762_v17, 7 }
 0x281   :  { %8062 = vst [vmem:[#allocation97_spill] sm:$0xff] %v4829_v11  ;;  %v1226_v49 = vsel %vm1212_vm5, %v4405_v41, %v4415_v44  ;;  %v8066_v1 = vperm.slane %v4757_v9, 7  ;;  %v4861_v56 = vmul.f32 %v8068_v59, %v1065_v32  ;;  %v1470_v59 = vsel %vm1455_vm6, %v4271_v6, %v4419_v46 }
 0x282   :  { %8064 = vst [vmem:[#allocation98_spill] sm:$0xff] %v4834_v28  ;;  %v4857_v28 = vld [vmem:[#allocation7 + $0x20] sm:$0xff]  ;;  %v8070_v32 = vperm.slane %v4757_v9, 2  ;;  %v1488_v16 = vmul.f32 %v8079_v48, %v1470_v59  ;;  %v1388_v48 = vsel %vm1374_vm1, %v4313_v33, %v4443_v57  ;;  %v4935_v59 = vld [vmem:[#allocation7 + $0x98] sm:$0xff] }
 0x283   :  { %v4854_v21 = vmul.f32 %v8066_v1, %v1550_v62  ;;  %8067 = vst [vmem:[#allocation99_spill] sm:$0xff] %v4857_v28  ;;  %v1225_v62 = vsel %vm1212_vm5, %v4415_v44, %v4387_v26 }
 0x284   :  { %8069 = vst [vmem:[#allocation100_spill] sm:$0xff] %v4861_v56  ;;  %v8075_v56 = vperm.slane %v4773_v15, 2 }
 0x286   :  { %v4796_v38 = vpop.permute.xlu1 %1530  ;;  %v4890_v44 = vmul.f32 %v8075_v56, %v1226_v49  ;;  %v1145_v56 = vsel %vm1131_vm0, %v4292_v18, %v4431_v52  ;;  %v4921_v18 = vld [vmem:[#allocation7 + $0x28] sm:$0xff] }
 0x287   :  { %8057 = vst [vmem:[#allocation94_spill] sm:$0xff] %v4796_v38  ;;  %v4806_v29 = vpop.permute.xlu0 %1528  ;;  %v4812_v38 = vld [vmem:[#allocation7 + $0x18] sm:$0xff] }
 0x288   :  { %8058 = vst [vmem:[#allocation95_spill] sm:$0xff] %v4806_v29  ;;  %v4825_v29 = vmul.f32 %v8060_v47, %v1308_v24  ;;  %v1064_v47 = vsel %vm1050_vm4, %v4389_v37, %v4401_v31  ;;  %v1227_v24 = vsel %vm1212_vm5, %v4250_v54, %v4405_v41  ;;  %v8072_v37 = vperm.slane %v4773_v15, 0 }
 0x289   :  { %v4879_v1 = vmul.f32 %v8070_v32, %v1227_v24  ;;  %8076 = vst [vmem:[#allocation104_spill] sm:$0xff] %v4890_v44  ;;  %v1468_v24 = vsel %vm1455_vm6, %v4427_v50, %v4403_v35  ;;  %v8078_v32 = vperm.slane %v4829_v11, 0 }
 0x28a   :  { %8061 = vst [vmem:[#allocation96_spill] sm:$0xff] %v4825_v29  ;;  %v1569_v29 = vmul.f32 %v8065_v40, %v1551_v25  ;;  %v4863_v25 = vpop.permute.xlu2 %1587  ;;  %v4883_v40 = vmul.f32 %v8072_v37, %v1064_v47  ;;  %v1469_v47 = vsel %vm1455_vm6, %v4419_v46, %v4427_v50  ;;  %v8080_v50 = vperm.slane %v4812_v38, 2 }
 0x28b   :  { %8071 = vst [vmem:[#allocation101_spill] sm:$0xff] %v4879_v1  ;;  %v8083_v46 = vperm.slane %v4757_v9, 6 }
 0x28c   :  { %8073 = vst [vmem:[#allocation102_spill] sm:$0xff] %v4883_v40  ;;  %v4919_v40 = vmul.f32 %v8080_v50, %v1225_v62  ;;  %v4940_v50 = vld [vmem:[#allocation7 + $0x90] sm:$0xff] }
 0x28d   :  { %8082 = vst [vmem:[#allocation107_spill] sm:$0xff] %v4921_v18  ;;  %v4944_v11 = vmul.f32 %v8083_v46, %v1469_v47  ;;  %v7505_v47 = vperm.slane %v4935_v59, 0 }
 0x28e   :  { %v4885_v41 = vpop.permute.xlu1 %1585  ;;  %8081 = vst [vmem:[#allocation106_spill] sm:$0xff] %v4919_v40  ;;  %v1143_v40 = vsel %vm1131_vm0, %v4453_v2, %v4429_v51 }
 0x28f   :  { %8074 = vst [vmem:[#allocation103_spill] sm:$0xff] %v4885_v41  ;;  %v1632_v49 = vsel %vm1617_vm7, %v4885_v41, %v4863_v25  ;;  %v4910_v37 = vpop.permute.xlu0 %1534  ;;  %v1062_v41 = vsel %vm1050_vm4, %v4439_v53, %v4417_v42 }
 0x290   :  { %8077 = vst [vmem:[#allocation105_spill] sm:$0xff] %v4910_v37  ;;  %v1650_v6 = vmul.f32 %v8078_v32, %v1632_v49  ;;  %v1063_v49 = vsel %vm1050_vm4, %v4401_v31, %v4439_v53  ;;  %v4938_v32 = vld [vmem:[#allocation7 + $0x88] sm:$0xff]  ;;  %v8084_v31 = vperm.slane %v4773_v15, 6  ;;  %v8085_v37 = vperm.slane %v4773_v15, 1 }
 0x292   :  { %1677 = vmatpush.msra.mxu0 %v1650_v6  ;;  %v4948_v53 = vmul.f32 %v8084_v31, %v1468_v24  ;;  %v4952_v33 = vmul.f32 %v8085_v37, %v1145_v56  ;;  %v8086_v24 = vperm.slane %v4757_v9, 5  ;;  %v8087_v56 = vperm.slane %v4812_v38, 0 }
 0x293   :  { %v8088_v31 = vperm.slane %v4857_v28, 0 }
 0x294   :  { %1678 = vmatpush.msra.mxu0 %v1569_v29  ;;  %v4962_v46 = vmul.f32 %v8086_v24, %v1388_v48  ;;  %v4966_v37 = vmul.f32 %v8087_v56, %v1063_v49  ;;  %v1144_v29 = vsel %vm1131_vm0, %v4431_v52, %v4453_v2  ;;  %v7521_v48 = vperm.slane %v4938_v32, 0  ;;  %v1594_v49 = vpop.permute.xlu2 %1593 }
 0x295   :  { %v4970_v44 = vmul.f32 %v8088_v31, %v1062_v41  ;;  %v7518_v24 = vperm.slane %v4940_v50, 0  ;;  %v1306_v41 = vsel %vm1293_vm2, %v4340_v0, %v4455_v3  ;;  %v7506_v31 = vperm.slane %v4762_v17, 3 }
 0x296   :  { %v1592_v56 = vpop.permute.xlu1 %1591  ;;  %1679 = vmatpush.msra.mxu0 %v1488_v16  ;;  %v1549_v52 = vsel %vm1536_vm3, %v4362_v43, %v4467_v8  ;;  %v1548_v2 = vsel %vm1536_vm3, %v4467_v8, %v4497_v19  ;;  %v1309_v0 = vsel %vm1293_vm2, %v4749_v10, %v4346_v4  ;;  %v7517_v8 = vperm.slane %v4762_v17, 2 }
 0x297   :  { %v1629_v16 = vsel %vm1617_vm7, %v1592_v56, %v1594_v49  ;;  %v1590_v6 = vpop.permute.xlu0 %1589  ;;  %v1467_v4 = vsel %vm1455_vm6, %v4403_v35, %v4499_v27  ;;  %v1326_v35 = vmul.f32 %v7506_v31, %v1309_v0  ;;  %v1387_v0 = vsel %vm1374_vm1, %v4443_v57, %v4465_v7 }
 0x298   :  { %v1653_v1 = vmul.f32 %v7505_v47, %v1629_v16  ;;  %v1630_v43 = vsel %vm1617_vm7, %v1590_v6, %v1592_v56  ;;  %v1631_v62 = vsel %vm1617_vm7, %v4863_v25, %v1590_v6  ;;  %1680 = vmatpush.msra.mxu0 %v4810_v30  ;;  %v1228_v16 = vsel %vm1212_vm5, %v4735_v60, %v4250_v54  ;;  %v5033_v47 = vld [vmem:[#allocation7 + $0xa0] sm:$0xff] }
 0x299   :  { %v1651_v56 = vmul.f32 %v7521_v48, %v1631_v62  ;;  %v1652_v25 = vmul.f32 %v7518_v24, %v1630_v43  ;;  %v1061_v30 = vsel %vm1050_vm4, %v4417_v42, %v4463_v5  ;;  %v8089_v6 = vperm.slane %v4812_v38, 7  ;;  %8090 = vst [vmem:[#allocation108_spill] sm:$0xff] %v5033_v47  ;;  %v8113_v24 = vld [vmem:[#allocation32_spill] sm:$0xff]  ;;  %v8116_v48 = vld [vmem:[#allocation43_spill] sm:$0xff] }
 0x29a   :  { %1681 = vmatpush.msra.mxu0 %v4020_v39  ;;  %1737 = vmatpush.msra.mxu3 %v1653_v1  ;;  %v7513_v62 = vperm.slane %v4762_v17, 1  ;;  %v1386_v43 = vsel %vm1374_vm1, %v4465_v7, %v4441_v55  ;;  %v1147_v39 = vsel %vm1131_vm0, %v4743_v63, %v4315_v36  ;;  %v8091_v42 = vperm.slane %v4773_v15, 7 }
 0x29b   :  { %v1572_v54 = vmul.f32 %v8089_v6, %v1548_v2  ;;  %1697 = vmatpush.msra.mxu1 %v1651_v56  ;;  %1717 = vmatpush.msra.mxu2 %v1652_v25  ;;  %v7509_v2 = vperm.slane %v4857_v28, 3  ;;  %v1245_v6 = vmul.f32 %v7517_v8, %v1228_v16  ;;  %v8092_v31 = vperm.slane %v4812_v38, 6  ;;  %v8112_v8 = vld [vmem:[#allocation31_spill] sm:$0xff] }
 0x29c   :  { %v1571_v1 = vmul.f32 %v8091_v42, %v1549_v52  ;;  %1682 = vmatpush.msra.mxu0 %v1326_v35  ;;  %v7512_v56 = vperm.slane %v4762_v17, 0  ;;  %v1066_v52 = vsel %vm1050_vm4, %v4745_v58, %v4319_v45  ;;  %v7511_v57 = vperm.slane %v5033_v47, 0 }
 0x29d   :  { %1738 = vmatpush.msra.mxu3 %v1572_v54  ;;  %v1491_v36 = vmul.f32 %v8092_v31, %v1467_v4  ;;  %1698 = vmatpush.msra.mxu1 %v4854_v21  ;;  %v8093_v7 = vperm.slane %v4812_v38, 1  ;;  %v8094_v16 = vperm.slane %v4857_v28, 1  ;;  %v1164_v31 = vmul.f32 %v7513_v62, %v1147_v39 }
 0x29e   :  { %1718 = vmatpush.msra.mxu2 %v1571_v1  ;;  %1683 = vmatpush.msra.mxu0 %v1245_v6  ;;  %v8095_v45 = vperm.slane %v4812_v38, 5  ;;  %v8096_v21 = vperm.slane %v4812_v38, 3  ;;  %v7507_v42 = vperm.slane %v4857_v28, 2  ;;  %v8097_v39 = vperm.slane %v4773_v15, 5 }
 0x29f   :  { %v5064_v25 = vmul.f32 %v8093_v7, %v1144_v29  ;;  %v5068_v35 = vmul.f32 %v8094_v16, %v1143_v40  ;;  %1739 = vmatpush.msra.mxu3 %v1491_v36  ;;  %v1305_v29 = vsel %vm1293_vm2, %v4455_v3, %v4483_v12  ;;  %1699 = vmatpush.msra.mxu1 %v4944_v11  ;;  %v5083_v40 = vpop.permute.xlu0 %1595  ;;  %v8098_v6 = vperm.slane %v4921_v18, 0 }
 0x2a0   :  { %v1410_v4 = vmul.f32 %v8095_v45, %v1386_v43  ;;  %v1329_v54 = vmul.f32 %v8096_v21, %v1306_v41  ;;  %1719 = vmatpush.msra.mxu2 %v4948_v53  ;;  %v1409_v1 = vmul.f32 %v8097_v39, %v1387_v0  ;;  %v5087_v43 = vld [vmem:[#allocation7 + $0x30] sm:$0xff]  ;;  %v7508_v41 = vperm.slane %v4921_v18, 3  ;;  %1684 = vmatpush.msra.mxu0 %v1164_v31  ;;  %v8100_v45 = vld [vmem:[#allocation12_spill] sm:$0xff]  ;;  %v5146_v39 = vld [vmem:[#allocation7 + $0xb8] sm:$0xff] }
 0x2a1   :  { %v5092_v36 = vmul.f32 %v8098_v6, %v1061_v30  ;;  %v1304_v3 = vsel %vm1293_vm2, %v4483_v12, %v4475_v22  ;;  %v1628_v11 = vsel %vm1617_vm7, %v1594_v49, %v5083_v40  ;;  %v1083_v53 = vmul.f32 %v7512_v56, %v1066_v52  ;;  %1700 = vmatpush.msra.mxu1 %v4962_v46  ;;  %v8099_v31 = vld [vmem:[#allocation182_spill] sm:$0xff]  ;;  %v8109_v56 = vld [vmem:[#allocation101_spill] sm:$0xff] }
 0x2a2   :  { %1740 = vmatpush.msra.mxu3 %v1410_v4  ;;  %v7510_v0 = vperm.slane %v4857_v28, 7  ;;  %v1224_v30 = vsel %vm1212_vm5, %v4387_v26, %v4487_v13  ;;  %v1547_v12 = vsel %vm1536_vm3, %v4497_v19, %v4489_v14  ;;  %v1654_v49 = vmul.f32 %v7511_v57, %v1628_v11  ;;  %1720 = vmatpush.msra.mxu2 %v1409_v1  ;;  %v5121_v26 = vld [vmem:[#allocation7 + $0x38] sm:$0xff]  ;;  %v1600_v57 = vpop.permute.xlu2 %1599 }
 0x2a3   :  { %1685 = vmatpush.msra.mxu0 %v1083_v53  ;;  %v7515_v52 = vperm.slane %v4857_v28, 6  ;;  %v5119_v7 = vmul.f32 %v7509_v2, %v1305_v29  ;;  %v7514_v16 = vperm.slane %v4921_v18, 2  ;;  %v7516_v19 = vperm.slane %v5087_v43, 2  ;;  %1701 = vmatpush.msra.mxu1 %v8099_v31  ;;  %v8101_v29 = vld [vmem:[#allocation22_spill] sm:$0xff]  ;;  %v5157_v53 = vld [vmem:[#allocation7 + $0xa8] sm:$0xff]  ;;  %v8117_v2 = vld [vmem:[#allocation47_spill] sm:$0xff] }
 0x2a4   :  { %1741 = vmatpush.msra.mxu3 %v4141_v23  ;;  %v1223_v46 = vsel %vm1212_vm5, %v4487_v13, %v4511_v20  ;;  %v1466_v23 = vsel %vm1455_vm6, %v4499_v27, %v4525_v34  ;;  %1721 = vmatpush.msra.mxu2 %v8100_v45  ;;  %v5137_v4 = vmul.f32 %v7508_v41, %v1304_v3  ;;  %v7519_v21 = vperm.slane %v4921_v18, 1  ;;  %v8102_v3 = vld [vmem:[#allocation27_spill] sm:$0xff]  ;;  %v8106_v45 = vld [vmem:[#allocation26_spill] sm:$0xff] }
 0x2a5   :  { %v1222_v13 = vsel %vm1212_vm5, %v4511_v20, %v8101_v29  ;;  %1757 = vmatpush.msrb.mxu0 %v1654_v49  ;;  %v1573_v27 = vmul.f32 %v7510_v0, %v1547_v12  ;;  %v7520_v1 = vperm.slane %v4857_v28, 5  ;;  %v5151_v6 = vmul.f32 %v7507_v42, %v1224_v30  ;;  %8103 = vst [vmem:[#allocation109_spill] sm:$0xff] %v5157_v53  ;;  %v8104_v20 = vld [vmem:[#allocation96_spill] sm:$0xff]  ;;  %v5168_v42 = vld [vmem:[#allocation7 + $0xb0] sm:$0xff] }
 0x2a6   :  { %1742 = vmatpush.msra.mxu3 %v1329_v54  ;;  %v1142_v11 = vsel %vm1131_vm0, %v4429_v51, %v8102_v3  ;;  %1702 = vmatpush.msra.mxu1 %v8104_v20  ;;  %v8105_v54 = vld [vmem:[#allocation98_spill] sm:$0xff]  ;;  %v7522_v12 = vperm.slane %v4921_v18, 6  ;;  %v7529_v49 = vperm.slane %v5087_v43, 1  ;;  %v1385_v30 = vsel %vm1374_vm1, %v4441_v55, %v8106_v45  ;;  %v1598_v51 = vpop.permute.xlu1 %1597  ;;  %v8108_v0 = vld [vmem:[#allocation28_spill] sm:$0xff] }
 0x2a7   :  { %1722 = vmatpush.msra.mxu2 %v8105_v54  ;;  %1758 = vmatpush.msrb.mxu0 %v1573_v27  ;;  %v8107_v41 = vld [vmem:[#allocation106_spill] sm:$0xff]  ;;  %v1492_v20 = vmul.f32 %v7515_v52, %v1466_v23  ;;  %v5175_v54 = vmul.f32 %v7514_v16, %v1223_v46  ;;  %v1465_v55 = vsel %vm1455_vm6, %v4525_v34, %v8108_v0  ;;  %v8110_v27 = vld [vmem:[#allocation104_spill] sm:$0xff]  ;;  %v5185_v62 = vpop.permute.xlu0 %1601  ;;  %v7524_v34 = vperm.slane %v5157_v53, 0 }
 0x2a8   :  { %1743 = vmatpush.msra.mxu3 %v8107_v41  ;;  %1703 = vmatpush.msra.mxu1 %v8109_v56  ;;  %v7523_v41 = vperm.slane %v5146_v39, 0  ;;  %v5190_v46 = vld [vmem:[%s7241_s3] sm:$0xff]  ;;  %v5194_v23 = vmul.f32 %v7516_v19, %v1222_v13  ;;  %v1625_v56 = vsel %vm1617_vm7, %v1600_v57, %v5185_v62  ;;  %v5204_v16 = vmul.f32 %v7519_v21, %v1142_v11  ;;  %v8111_v19 = vld [vmem:[#allocation93_spill] sm:$0xff] }
 0x2a9   :  { %1723 = vmatpush.msra.mxu2 %v8110_v27  ;;  %1759 = vmatpush.msrb.mxu0 %v1492_v20  ;;  %v7531_v27 = vperm.slane %v4921_v18, 5  ;;  %v7525_v52 = vperm.slane %v5168_v42, 0  ;;  %v1627_v13 = vsel %vm1617_vm7, %v5083_v40, %v1598_v51  ;;  %v1411_v20 = vmul.f32 %v7520_v1, %v1385_v30 }
 0x2aa   :  { %1744 = vmatpush.msra.mxu3 %v5064_v25  ;;  %1704 = vmatpush.msra.mxu1 %v8111_v19  ;;  %v1140_v11 = vsel %vm1131_vm0, %v8113_v24, %v8112_v8  ;;  %v1626_v21 = vsel %vm1617_vm7, %v1598_v51, %v1600_v57  ;;  %v1493_v40 = vmul.f32 %v7522_v12, %v1465_v55  ;;  %v8114_v19 = vld [vmem:[#allocation37_spill] sm:$0xff]  ;;  %v8115_v57 = vld [vmem:[#allocation100_spill] sm:$0xff]  ;;  %v7528_v51 = vperm.slane %v5087_v43, 7 }
 0x2ab   :  { %1724 = vmatpush.msra.mxu2 %v4952_v33  ;;  %3045 = vmatmul.msk.f32.vlgmr.msra.gmra.mxu0 %vm1666_vm8, %v5190_v46  ;;  %v7526_v33 = vperm.slane %v4921_v18, 7  ;;  %v1546_v30 = vsel %vm1536_vm3, %v4489_v14, %v8114_v19  ;;  %v1657_v1 = vmul.f32 %v7523_v41, %v1625_v56  ;;  %v1544_v55 = vsel %vm1536_vm3, %v8117_v2, %v8116_v48  ;;  %v8123_v25 = vld [vmem:[#allocation33_spill] sm:$0xff] }
 0x2ac   :  { %1745 = vmatpush.msra.mxu3 %v4966_v37  ;;  %1760 = vmatpush.msrb.mxu0 %v1411_v20  ;;  %v7527_v37 = vperm.slane %v5121_v26, 7  ;;  %v1545_v14 = vsel %vm1536_vm3, %v8114_v19, %v8117_v2  ;;  %v1655_v56 = vmul.f32 %v7524_v34, %v1627_v13  ;;  %v8118_v20 = vld [vmem:[#allocation102_spill] sm:$0xff]  ;;  %v1141_v12 = vsel %vm1131_vm0, %v8102_v3, %v8113_v24  ;;  %v5262_v19 = vld [vmem:[#allocation7 + $0x40] sm:$0xff]  ;;  %v8122_v34 = vld [vmem:[#allocation15_spill] sm:$0xff] }
 0x2ad   :  { %1705 = vmatpush.msra.mxu1 %v8115_v57  ;;  %1725 = vmatpush.msra.mxu2 %v8118_v20  ;;  %v1656_v41 = vmul.f32 %v7525_v52, %v1626_v21  ;;  %v7530_v2 = vperm.slane %v5087_v43, 6  ;;  %v7533_v13 = vperm.slane %v5121_v26, 6  ;;  %8119 = vst [vmem:[#allocation110_spill] sm:$0xff] %v5262_v19  ;;  %v8120_v20 = vld [vmem:[#allocation48_spill] sm:$0xff]  ;;  %v1574_v52 = vmul.f32 %v7526_v33, %v1546_v30  ;;  %v8125_v33 = vld [vmem:[#allocation30_spill] sm:$0xff] }
 0x2ae   :  { %3046 = vmatmul.msk.f32.vlgmr.msra.gmra.mxu1 %vm1666_vm8, %v5190_v46  ;;  %3047 = vmatmul.msk.f32.vlgmr.msra.gmra.mxu2 %vm1666_vm8, %v5190_v46  ;;  %v1464_v24 = vsel %vm1455_vm6, %v8108_v0, %v8120_v20  ;;  %v8121_v3 = vld [vmem:[#allocation52_spill] sm:$0xff]  ;;  %v7536_v57 = vperm.slane %v5121_v26, 0  ;;  %v1384_v31 = vsel %vm1374_vm1, %v8106_v45, %v8123_v25  ;;  %v1575_v0 = vmul.f32 %v7528_v51, %v1545_v14 }
 0x2af   :  { %3048 = vmatmul.msk.f32.vlgmr.msra.gmra.mxu3 %vm1666_vm8, %v5190_v46  ;;  %v1463_v21 = vsel %vm1455_vm6, %v8120_v20, %v8121_v3  ;;  %1761 = vmatpush.msrb.mxu0 %v8122_v34  ;;  %v1576_v20 = vmul.f32 %v7527_v37, %v1544_v55  ;;  %v7532_v34 = vperm.slane %v5121_v26, 5  ;;  %v1383_v45 = vsel %vm1374_vm1, %v8123_v25, %v8125_v33  ;;  %v5297_v14 = vld [vmem:[#allocation7 + $0xc0] sm:$0xff]  ;;  %v5301_v37 = vpop.permute.xlu1 %1603 }
 0x2b0   :  { %1777 = vmatpush.msrb.mxu1 %v1655_v56  ;;  %1797 = vmatpush.msrb.mxu2 %v1656_v41  ;;  %v8124_v56 = vld [vmem:[#allocation29_spill] sm:$0xff]  ;;  %8127 = vst [vmem:[#allocation111_spill] sm:$0xff] %v5297_v14  ;;  %v7534_v55 = vperm.slane %v5262_v19, 0  ;;  %v1495_v25 = vmul.f32 %v7533_v13, %v1463_v21  ;;  %v7537_v51 = vperm.slane %v5121_v26, 3  ;;  %v8129_v21 = vperm.slane %v5121_v26, 1 }
 0x2b1   :  { %1817 = vmatpush.msrb.mxu3 %v1657_v1  ;;  %v1060_v30 = vsel %vm1050_vm4, %v4463_v5, %v8124_v56  ;;  %v8126_v41 = vld [vmem:[#allocation53_spill] sm:$0xff]  ;;  %1762 = vmatpush.msrb.mxu0 %v5119_v7  ;;  %v1494_v5 = vmul.f32 %v7530_v2, %v1464_v24  ;;  %v8128_v7 = vld [vmem:[#allocation34_spill] sm:$0xff]  ;;  %v1412_v24 = vmul.f32 %v7531_v27, %v1384_v31  ;;  %v8132_v31 = vld [vmem:[#allocation36_spill] sm:$0xff]  ;;  %v8259_v18 = vperm.slane %v4773_v15, 3 }
 0x2b2   :  { %v1382_v1 = vsel %vm1374_vm1, %v8125_v33, %v8126_v41  ;;  %1778 = vmatpush.msrb.mxu1 %v1574_v52  ;;  %1798 = vmatpush.msrb.mxu2 %v1575_v0  ;;  %v5310_v33 = vmul.f32 %v7529_v49, %v1141_v12  ;;  %v1303_v52 = vsel %vm1293_vm2, %v4475_v22, %v8128_v7  ;;  %v7543_v0 = vperm.slane %v5121_v26, 2  ;;  %v8133_v27 = vld [vmem:[#allocation40_spill] sm:$0xff] }
 0x2b3   :  { %1818 = vmatpush.msrb.mxu3 %v1576_v20  ;;  %1763 = vmatpush.msrb.mxu0 %v5151_v6  ;;  %v5322_v20 = vmul.f32 %v8129_v21, %v1140_v11  ;;  %v7535_v12 = vperm.slane %v5297_v14, 0  ;;  %v8130_v49 = vperm.slane %v5087_v43, 5  ;;  %v1414_v22 = vmul.f32 %v7532_v34, %v1382_v1  ;;  %v5354_v21 = vld [vmem:[#allocation7 + $0x48] sm:$0xff] }
 0x2b4   :  { %1779 = vmatpush.msrb.mxu1 %v1493_v40  ;;  %1799 = vmatpush.msrb.mxu2 %v1494_v5  ;;  %v8131_v6 = vperm.slane %v5087_v43, 0  ;;  %v1058_v11 = vsel %vm1050_vm4, %v8133_v27, %v8132_v31  ;;  %v1059_v5 = vsel %vm1050_vm4, %v8124_v56, %v8133_v27  ;;  %v7541_v56 = vperm.slane %v5262_v19, 7  ;;  %8136 = vst [vmem:[#allocation112_spill] sm:$0xff] %v5354_v21  ;;  %v8141_v34 = vld [vmem:[#allocation17_spill] sm:$0xff] }
 0x2b5   :  { %1819 = vmatpush.msrb.mxu3 %v1495_v25  ;;  %v1413_v2 = vmul.f32 %v8130_v49, %v1383_v45  ;;  %v1624_v49 = vsel %vm1617_vm7, %v5185_v62, %v5301_v37  ;;  %1764 = vmatpush.msrb.mxu0 %v5068_v35  ;;  %v8134_v45 = vld [vmem:[#allocation44_spill] sm:$0xff]  ;;  %v8135_v25 = vperm.slane %v5087_v43, 3  ;;  %v8137_v62 = vld [vmem:[#allocation39_spill] sm:$0xff] }
 0x2b6   :  { %v5331_v40 = vmul.f32 %v8131_v6, %v1060_v30  ;;  %1780 = vmatpush.msrb.mxu1 %v1412_v24  ;;  %v7540_v30 = vperm.slane %v5262_v19, 3  ;;  %v1302_v1 = vsel %vm1293_vm2, %v8128_v7, %v8134_v45  ;;  %v1301_v35 = vsel %vm1293_vm2, %v8134_v45, %v8137_v62  ;;  %v8138_v24 = vld [vmem:[#allocation91_spill] sm:$0xff] }
 0x2b7   :  { %1800 = vmatpush.msrb.mxu2 %v1413_v2  ;;  %1820 = vmatpush.msrb.mxu3 %v1414_v22  ;;  %v1332_v27 = vmul.f32 %v8135_v25, %v1303_v52  ;;  %v1543_v6 = vsel %vm1536_vm3, %v8116_v48, %v8138_v24  ;;  %v8139_v2 = vld [vmem:[#allocation16_spill] sm:$0xff]  ;;  %v7544_v7 = vperm.slane %v5262_v19, 2  ;;  %v1658_v22 = vmul.f32 %v7535_v12, %v1624_v49  ;;  %v8140_v25 = vld [vmem:[#allocation14_spill] sm:$0xff]  ;;  %v8145_v12 = vld [vmem:[#allocation49_spill] sm:$0xff] }
 0x2b8   :  { %1765 = vmatpush.msrb.mxu0 %v4970_v44  ;;  %1781 = vmatpush.msrb.mxu1 %v8139_v2  ;;  %v7542_v45 = vperm.slane %v5262_v19, 6  ;;  %v5375_v48 = vmul.f32 %v7536_v57, %v1059_v5  ;;  %v5379_v44 = vmul.f32 %v7534_v55, %v1058_v11  ;;  %v8142_v2 = vld [vmem:[#allocation41_spill] sm:$0xff]  ;;  %v8143_v49 = vld [vmem:[#allocation46_spill] sm:$0xff]  ;;  %v1333_v11 = vmul.f32 %v7537_v51, %v1302_v1  ;;  %v1015_v5 = vld [vmem:[%s7243_s5] sm:$0xff]  ;;  %v5436_v1 = vpop.permute.xlu1 %1609 }
 0x2b9   :  { %1801 = vmatpush.msrb.mxu2 %v8140_v25  ;;  %1821 = vmatpush.msrb.mxu3 %v8141_v34  ;;  %v1221_v13 = vsel %vm1212_vm5, %v8101_v29, %v8142_v2  ;;  %v1462_v34 = vsel %vm1455_vm6, %v8121_v3, %v8143_v49  ;;  %v7538_v25 = vmov 0   ;;  %v5397_v55 = vld [vmem:[#allocation7 + $0x50] sm:$0xff]  ;;  %v1220_v3 = vsel %vm1212_vm5, %v8142_v2, %v8145_v12  ;;  %v5424_v2 = vld [vmem:[#allocation7 + $0xc8] sm:$0xff] }
 0x2ba   :  { %3049 = vmatmul.msk.f32.vlgmr.msrb.gmra.mxu0 %vm1666_vm8, %v5190_v46  ;;  %3097 = vset.pattern.permute.xlu0 %v7538_v25  ;;  %8144 = vst [vmem:[#allocation115_spill] sm:$0xff] %v5397_v55  ;;  %v1577_v57 = vmul.f32 %v7541_v56, %v1543_v6  ;;  %v5410_v51 = vmul.f32 %v7540_v30, %v1301_v35  ;;  %v8146_v25 = vld [vmem:[#allocation42_spill] sm:$0xff]  ;;  %v5428_v30 = vld [vmem:[#allocation7 + $0xd8] sm:$0xff] }
 0x2bb   :  { %1837 = vmatpush.msra.mxu0 %v1658_v22  ;;  %1782 = vmatpush.msrb.mxu1 %v5137_v4  ;;  %v1219_v29 = vsel %vm1212_vm5, %v8145_v12, %v8146_v25  ;;  %v8147_v52 = vld [vmem:[#allocation50_spill] sm:$0xff]  ;;  %8149 = vst [vmem:[#allocation116_spill] sm:$0xff] %v5424_v2  ;;  %v1252_v12 = vmul.f32 %v7543_v0, %v1221_v13  ;;  %v8152_v0 = vperm.slane %v5262_v19, 5  ;;  %v8155_v56 = vld [vmem:[#allocation55_spill] sm:$0xff] }
 0x2bc   :  { %v1139_v22 = vsel %vm1131_vm0, %v8112_v8, %v8147_v52  ;;  %v8148_v4 = vld [vmem:[#allocation58_spill] sm:$0xff]  ;;  %1802 = vmatpush.msrb.mxu2 %v1332_v27  ;;  %1822 = vmatpush.msrb.mxu3 %v1333_v11  ;;  %8151 = vst [vmem:[#allocation114_spill] sm:$0xff] %v5428_v30  ;;  %v1496_v8 = vmul.f32 %v7542_v45, %v1462_v34  ;;  %v1608_v27 = vpop.permute.xlu0 %1607  ;;  %v7545_v45 = vperm.slane %v5424_v2, 0  ;;  %v8160_v11 = vld [vmem:[#allocation95_spill] sm:$0xff] }
 0x2bd   :  { %v1381_v6 = vsel %vm1374_vm1, %v8126_v41, %v8148_v4  ;;  %v5426_v35 = vld [vmem:[#allocation7 + $0xd0] sm:$0xff]  ;;  %2013 = vperm.xlu0 %3097, %v1015_v5   ;;  %1838 = vmatpush.msra.mxu0 %v1577_v57  ;;  %v5442_v57 = vmul.f32 %v7544_v7, %v1220_v3  ;;  %v1606_v5 = vpop.permute.xlu2 %1605  ;;  %v8154_v3 = vperm.slane %v5354_v21, 2  ;;  %v5462_v34 = vsel %vm1131_vm0, %v8147_v52, %v8155_v56 }
 0x2be   :  { %8150 = vst [vmem:[#allocation113_spill] sm:$0xff] %v5426_v35  ;;  %1783 = vmatpush.msrb.mxu1 %v5175_v54  ;;  %1803 = vmatpush.msrb.mxu2 %v5194_v23  ;;  %v1415_v54 = vmul.f32 %v8152_v0, %v1381_v6  ;;  %v8153_v23 = vperm.slane %v5262_v19, 1  ;;  %v7547_v0 = vperm.slane %v5426_v35, 0  ;;  %v7546_v6 = vperm.slane %v5428_v30, 0 }
 0x2bf   :  { %1823 = vmatpush.msrb.mxu3 %v1252_v12  ;;  %1839 = vmatpush.msra.mxu0 %v1496_v8  ;;  %v5456_v7 = vmul.f32 %v8154_v3, %v1219_v29  ;;  %v1623_v12 = vsel %vm1617_vm7, %v5301_v37, %v1606_v5  ;;  %v1621_v29 = vsel %vm1617_vm7, %v1608_v27, %v5436_v1  ;;  %v7548_v37 = vperm.slane %v5354_v21, 7 }
 0x2c0   :  { %v5452_v41 = vmul.f32 %v8153_v23, %v1139_v22  ;;  %1784 = vmatpush.msrb.mxu1 %v5204_v16  ;;  %1804 = vmatpush.msrb.mxu2 %v5310_v33  ;;  %v1622_v52 = vsel %vm1617_vm7, %v1606_v5, %v1608_v27  ;;  %v5478_v22 = vld [vmem:[#allocation7 + $0x58] sm:$0xff]  ;;  %v8157_v23 = vld [vmem:[#allocation54_spill] sm:$0xff]  ;;  %v8159_v5 = vld [vmem:[#allocation89_spill] sm:$0xff]  ;;  %v7552_v8 = vperm.slane %v5397_v55, 5 }
 0x2c1   :  { %1824 = vmatpush.msrb.mxu3 %v5322_v20  ;;  %1840 = vmatpush.msra.mxu0 %v1415_v54  ;;  %8156 = vst [vmem:[#allocation119_spill] sm:$0xff] %v5478_v22  ;;  %v1380_v16 = vsel %vm1374_vm1, %v8148_v4, %v8157_v23  ;;  %v8158_v33 = vld [vmem:[#allocation90_spill] sm:$0xff]  ;;  %v7550_v20 = vperm.slane %v5397_v55, 7  ;;  %v7549_v27 = vperm.slane %v5478_v22, 7  ;;  %v1540_v4 = vsel %vm1536_vm3, %v8159_v5, %v8160_v11 }
 0x2c2   :  { %v1542_v3 = vsel %vm1536_vm3, %v8138_v24, %v8158_v33  ;;  %1785 = vmatpush.msrb.mxu1 %v5092_v36  ;;  %1805 = vmatpush.msrb.mxu2 %v5331_v40  ;;  %v1541_v54 = vsel %vm1536_vm3, %v8158_v33, %v8159_v5  ;;  %v1659_v24 = vmul.f32 %v7545_v45, %v1623_v12  ;;  %v8161_v40 = vld [vmem:[#allocation64_spill] sm:$0xff]  ;;  %v8163_v45 = vld [vmem:[#allocation69_spill] sm:$0xff] }
 0x2c3   :  { %1825 = vmatpush.msrb.mxu3 %v5375_v48  ;;  %3050 = vmatmul.msk.f32.vlgmr.msrb.gmra.mxu1 %vm1666_vm8, %v5190_v46  ;;  %v1461_v33 = vsel %vm1455_vm6, %v8143_v49, %v8161_v40  ;;  %v1660_v13 = vmul.f32 %v7547_v0, %v1622_v52  ;;  %v1661_v5 = vmul.f32 %v7546_v6, %v1621_v29  ;;  %v8162_v12 = vld [vmem:[#allocation68_spill] sm:$0xff]  ;;  %v8164_v52 = vld [vmem:[#allocation18_spill] sm:$0xff] }
 0x2c4   :  { %3051 = vmatmul.msk.f32.vlgmr.msrb.gmra.mxu2 %vm1666_vm8, %v5190_v46  ;;  %3052 = vmatmul.msk.f32.vlgmr.msrb.gmra.mxu3 %vm1666_vm8, %v5190_v46  ;;  %v1459_v36 = vsel %vm1455_vm6, %v8163_v45, %v8162_v12  ;;  %v1460_v49 = vsel %vm1455_vm6, %v8161_v40, %v8163_v45  ;;  %v1578_v29 = vmul.f32 %v7548_v37, %v1542_v3  ;;  %v7551_v45 = vperm.slane %v5478_v22, 5  ;;  %v8165_v40 = vld [vmem:[#allocation70_spill] sm:$0xff]  ;;  %v8169_v37 = vld [vmem:[#allocation51_spill] sm:$0xff] }
 0x2c5   :  { %1841 = vmatpush.msra.mxu0 %v8164_v52  ;;  %1857 = vmatpush.msra.mxu1 %v1659_v24  ;;  %v1579_v0 = vmul.f32 %v7550_v20, %v1541_v54  ;;  %v1580_v48 = vmul.f32 %v7549_v27, %v1540_v4  ;;  %v1379_v24 = vsel %vm1374_vm1, %v8157_v23, %v8165_v40  ;;  %v8166_v3 = vld [vmem:[#allocation74_spill] sm:$0xff]  ;;  %v8168_v54 = vperm.slane %v5354_v21, 6 }
 0x2c6   :  { %1877 = vmatpush.msra.mxu2 %v1660_v13  ;;  %1897 = vmatpush.msra.mxu3 %v1661_v5  ;;  %v1378_v13 = vsel %vm1374_vm1, %v8165_v40, %v8166_v3  ;;  %v5546_v5 = vld [vmem:[#allocation7 + $0xe0] sm:$0xff]  ;;  %v1137_v23 = vsel %vm1131_vm0, %v8155_v56, %v8169_v37  ;;  %v8170_v27 = vperm.slane %v5397_v55, 6  ;;  %v8171_v20 = vperm.slane %v5478_v22, 6 }
 0x2c7   :  { %8167 = vst [vmem:[#allocation120_spill] sm:$0xff] %v5546_v5  ;;  %1842 = vmatpush.msra.mxu0 %v5410_v51  ;;  %1858 = vmatpush.msra.mxu1 %v1578_v29  ;;  %v1497_v4 = vmul.f32 %v8168_v54, %v1461_v33  ;;  %v8172_v29 = vld [vmem:[#allocation56_spill] sm:$0xff]  ;;  %v8173_v54 = vld [vmem:[#allocation59_spill] sm:$0xff] }
 0x2c8   :  { %1878 = vmatpush.msra.mxu2 %v1579_v0  ;;  %1898 = vmatpush.msra.mxu3 %v1580_v48  ;;  %v1498_v40 = vmul.f32 %v8170_v27, %v1460_v49  ;;  %v1499_v6 = vmul.f32 %v8171_v20, %v1459_v36  ;;  %v5565_v33 = vsel %vm1050_vm4, %v8132_v31, %v8172_v29  ;;  %v8174_v0 = vperm.slane %v5354_v21, 5  ;;  %v5575_v36 = vpop.permute.xlu2 %1611 }
 0x2c9   :  { %v1300_v56 = vsel %vm1293_vm2, %v8137_v62, %v8173_v54  ;;  %1843 = vmatpush.msra.mxu0 %v5442_v57  ;;  %1859 = vmatpush.msra.mxu1 %v1497_v4  ;;  %v7554_v20 = vperm.slane %v5397_v55, 3  ;;  %v7553_v48 = vperm.slane %v5546_v5, 0  ;;  %v1417_v31 = vmul.f32 %v7552_v8, %v1379_v24  ;;  %v8176_v4 = vld [vmem:[#allocation63_spill] sm:$0xff]  ;;  %v8182_v8 = vld [vmem:[#allocation60_spill] sm:$0xff] }
 0x2ca   :  { %v1416_v27 = vmul.f32 %v8174_v0, %v1380_v16  ;;  %1879 = vmatpush.msra.mxu2 %v1498_v40  ;;  %1899 = vmatpush.msra.mxu3 %v1499_v6  ;;  %v1418_v62 = vmul.f32 %v7551_v45, %v1378_v13  ;;  %v8175_v57 = vperm.slane %v5354_v21, 1  ;;  %v1299_v16 = vsel %vm1293_vm2, %v8173_v54, %v8176_v4  ;;  %v5595_v13 = vld [vmem:[#allocation7 + $0x60] sm:$0xff]  ;;  %v8179_v0 = vld [vmem:[#allocation61_spill] sm:$0xff] }
 0x2cb   :  { %v1620_v6 = vsel %vm1617_vm7, %v5436_v1, %v5575_v36  ;;  %1844 = vmatpush.msra.mxu0 %v5452_v41  ;;  %v7555_v24 = vperm.slane %v5478_v22, 3  ;;  %8177 = vst [vmem:[#allocation117_spill] sm:$0xff] %v5595_v13  ;;  %v8178_v40 = vperm.slane %v5397_v55, 1  ;;  %v1298_v54 = vsel %vm1293_vm2, %v8176_v4, %v8179_v0  ;;  %v8181_v45 = vld [vmem:[#allocation57_spill] sm:$0xff]  ;;  %v8184_v4 = vld [vmem:[#allocation94_spill] sm:$0xff] }
 0x2cc   :  { %v1173_v49 = vmul.f32 %v8175_v57, %v5462_v34  ;;  %1860 = vmatpush.msra.mxu1 %v1416_v27  ;;  %1880 = vmatpush.msra.mxu2 %v1417_v31  ;;  %v8180_v57 = vperm.slane %v5354_v21, 3  ;;  %v1055_v51 = vsel %vm1050_vm4, %v8182_v8, %v8181_v45  ;;  %v1539_v31 = vsel %vm1536_vm3, %v8160_v11, %v8184_v4  ;;  %v8188_v41 = vld [vmem:[#allocation21_spill] sm:$0xff] }
 0x2cd   :  { %v1174_v34 = vmul.f32 %v8178_v40, %v1137_v23  ;;  %1900 = vmatpush.msra.mxu3 %v1418_v62  ;;  %v8183_v23 = vld [vmem:[#allocation62_spill] sm:$0xff]  ;;  %1845 = vmatpush.msra.mxu0 %v5379_v44  ;;  %v1662_v27 = vmul.f32 %v7553_v48, %v1620_v6  ;;  %v1336_v11 = vmul.f32 %v7554_v20, %v1299_v16  ;;  %v7557_v44 = vperm.slane %v5595_v13, 6  ;;  %v8189_v62 = vld [vmem:[#allocation81_spill] sm:$0xff] }
 0x2ce   :  { %v1335_v1 = vmul.f32 %v8180_v57, %v1300_v56  ;;  %v1218_v40 = vsel %vm1212_vm5, %v8146_v25, %v8183_v23  ;;  %v8185_v56 = vld [vmem:[#allocation23_spill] sm:$0xff]  ;;  %v8186_v57 = vld [vmem:[#allocation66_spill] sm:$0xff]  ;;  %v8187_v25 = vld [vmem:[#allocation24_spill] sm:$0xff]  ;;  %3053 = vmatmul.msk.f32.vlgmr.msra.gmra.mxu0 %vm1666_vm8, %v5190_v46  ;;  %v1337_v6 = vmul.f32 %v7555_v24, %v1298_v54 }
 0x2cf   :  { %1861 = vmatpush.msra.mxu1 %v8185_v56  ;;  %v1217_v52 = vsel %vm1212_vm5, %v8183_v23, %v8186_v57  ;;  %1881 = vmatpush.msra.mxu2 %v8187_v25  ;;  %v1056_v56 = vsel %vm1050_vm4, %v8172_v29, %v8182_v8  ;;  %v1458_v23 = vsel %vm1455_vm6, %v8162_v12, %v8189_v62  ;;  %v8191_v8 = vperm.slane %v5595_v13, 7  ;;  %v8193_v20 = vld [vmem:[#allocation65_spill] sm:$0xff]  ;;  %v8194_v24 = vld [vmem:[#allocation75_spill] sm:$0xff]  ;;  %v5675_v16 = vld [vmem:[#allocation7 + $0xf0] sm:$0xff] }
 0x2d0   :  { %1901 = vmatpush.msra.mxu3 %v8188_v41  ;;  %v8190_v41 = vld [vmem:[#allocation67_spill] sm:$0xff]  ;;  %1917 = vmatpush.msrb.mxu0 %v1662_v27  ;;  %v8192_v12 = vperm.slane %v5397_v55, 2  ;;  %v1216_v54 = vsel %vm1212_vm5, %v8186_v57, %v8193_v20  ;;  %v5663_v27 = vld [vmem:[#allocation7 + $0xe8] sm:$0xff]  ;;  %8199 = vst [vmem:[#allocation121_spill] sm:$0xff] %v5675_v16 }
 0x2d1   :  { %1862 = vmatpush.msra.mxu1 %v1335_v1  ;;  %v1136_v25 = vsel %vm1131_vm0, %v8169_v37, %v8190_v41  ;;  %1882 = vmatpush.msra.mxu2 %v1336_v11  ;;  %v1581_v29 = vmul.f32 %v8191_v8, %v1539_v31  ;;  %v1377_v37 = vsel %vm1374_vm1, %v8166_v3, %v8194_v24  ;;  %v8196_v31 = vperm.slane %v5478_v22, 2  ;;  %v8197_v8 = vld [vmem:[#allocation76_spill] sm:$0xff]  ;;  %v1614_v3 = vpop.permute.xlu0 %1613  ;;  %v1616_v11 = vpop.permute.xlu1 %1615 }
 0x2d2   :  { %v1255_v48 = vmul.f32 %v8192_v12, %v1218_v40  ;;  %8195 = vst [vmem:[#allocation118_spill] sm:$0xff] %v5663_v27  ;;  %1902 = vmatpush.msra.mxu3 %v1337_v6  ;;  %v1297_v57 = vsel %vm1293_vm2, %v8179_v0, %v8197_v8  ;;  %v5673_v12 = vld [vmem:[#allocation7 + $0xf8] sm:$0xff]  ;;  %v8202_v0 = vperm.slane %v5478_v22, 1 }
 0x2d3   :  { %1863 = vmatpush.msra.mxu1 %v5456_v7  ;;  %v1256_v40 = vmul.f32 %v8196_v31, %v1217_v52  ;;  %8198 = vst [vmem:[#allocation123_spill] sm:$0xff] %v5673_v12  ;;  %1918 = vmatpush.msrb.mxu0 %v1581_v29  ;;  %v1500_v7 = vmul.f32 %v7557_v44, %v1458_v23  ;;  %v8200_v52 = vperm.slane %v5354_v21, 0  ;;  %v5682_v31 = vld [vmem:[#allocation7 + $0x78] sm:$0xff]  ;;  %v1014_v29 = vld [vmem:[%s7242_s4] sm:$0xff]  ;;  %v8204_v23 = vperm.slane %v5478_v22, 0 }
 0x2d4   :  { %1883 = vmatpush.msra.mxu2 %v1255_v48  ;;  %8201 = vst [vmem:[#allocation122_spill] sm:$0xff] %v5682_v31  ;;  %v1175_v1 = vmul.f32 %v8202_v0, %v1136_v25  ;;  %v8203_v48 = vperm.slane %v5397_v55, 0  ;;  %v5713_v25 = vld [vmem:[#allocation7 + $0x68] sm:$0xff] }
 0x2d5   :  { %v1092_v6 = vmul.f32 %v8200_v52, %v5565_v33  ;;  %1903 = vmatpush.msra.mxu3 %v1256_v40  ;;  %1864 = vmatpush.msra.mxu1 %v1173_v49  ;;  %v1094_v44 = vmul.f32 %v8204_v23, %v1055_v51  ;;  %v8205_v52 = vld [vmem:[#allocation72_spill] sm:$0xff]  ;;  %v8206_v40 = vperm.slane %v5595_v13, 5  ;;  %v1619_v33 = vsel %vm1617_vm7, %v5575_v36, %v1614_v3 }
 0x2d6   :  { %v1093_v5 = vmul.f32 %v8203_v48, %v1056_v56  ;;  %v5698_v49 = vsel %vm1131_vm0, %v8190_v41, %v8205_v52  ;;  %1919 = vmatpush.msrb.mxu0 %v1500_v7  ;;  %1884 = vmatpush.msra.mxu2 %v1174_v34  ;;  %v8207_v56 = vperm.slane %v5595_v13, 2  ;;  %v8208_v41 = vmov 0   ;;  %8210 = vst [vmem:[#allocation126_spill] sm:$0xff] %v5713_v25  ;;  %v8213_v23 = vld [vmem:[#allocation92_spill] sm:$0xff] }
 0x2d7   :  { %v1419_v0 = vmul.f32 %v8206_v40, %v1377_v37  ;;  %1904 = vmatpush.msra.mxu3 %v1175_v1  ;;  %3096 = vset.pattern.permute.xlu2 %v8208_v41  ;;  %v8209_v7 = vperm.slane %v5595_v13, 3  ;;  %v5715_v37 = vld [vmem:[#allocation7 + $0x70] sm:$0xff]  ;;  %v8212_v40 = vld [vmem:[#allocation103_spill] sm:$0xff]  ;;  %v7567_v36 = vperm.slane %v5713_v25, 7 }
 0x2d8   :  { %v1257_v48 = vmul.f32 %v8207_v56, %v1216_v54  ;;  %8211 = vst [vmem:[#allocation127_spill] sm:$0xff] %v5715_v37  ;;  %v1633_v54 = vsel %vm1617_vm7, %v1616_v11, %v8212_v40  ;;  %v1618_v56 = vsel %vm1617_vm7, %v1614_v3, %v1616_v11  ;;  %1992 = vperm.xlu2 %3096, %v1014_v29   ;;  %v8214_v11 = vld [vmem:[#allocation105_spill] sm:$0xff]  ;;  %v8215_v29 = vld [vmem:[#allocation20_spill] sm:$0xff] }
 0x2d9   :  { %v1338_v34 = vmul.f32 %v8209_v7, %v1297_v57  ;;  %1920 = vmatpush.msrb.mxu0 %v1419_v0  ;;  %v1538_v57 = vsel %vm1536_vm3, %v8184_v4, %v8213_v23  ;;  %1865 = vmatpush.msra.mxu1 %v1092_v6  ;;  %v1537_v3 = vsel %vm1536_vm3, %v8213_v23, %v8214_v11  ;;  %v8216_v4 = vperm.slane %v5663_v27, 0  ;;  %v8217_v6 = vld [vmem:[#allocation85_spill] sm:$0xff] }
 0x2da   :  { %1885 = vmatpush.msra.mxu2 %v1093_v5  ;;  %v1552_v0 = vsel %vm1536_vm3, %v8214_v11, %v8215_v29  ;;  %1905 = vmatpush.msra.mxu3 %v1094_v44  ;;  %v1457_v40 = vsel %vm1455_vm6, %v8189_v62, %v8217_v6  ;;  %v8218_v23 = vperm.slane %v5673_v12, 0  ;;  %v8219_v7 = vperm.slane %v5675_v16, 0  ;;  %v8221_v29 = vld [vmem:[#allocation87_spill] sm:$0xff] }
 0x2db   :  { %v1663_v1 = vmul.f32 %v8216_v4, %v1619_v33  ;;  %3054 = vmatmul.msk.f32.vlgmr.msra.gmra.mxu1 %vm1666_vm8, %v5190_v46  ;;  %3055 = vmatmul.msk.f32.vlgmr.msra.gmra.mxu2 %vm1666_vm8, %v5190_v46  ;;  %v8220_v33 = vld [vmem:[#allocation13_spill] sm:$0xff]  ;;  %v1456_v62 = vsel %vm1455_vm6, %v8217_v6, %v8221_v29  ;;  %v8225_v27 = vperm.slane %v5682_v31, 7  ;;  %v8226_v6 = vld [vmem:[#allocation88_spill] sm:$0xff]  ;;  %v8255_v12 = vperm.slane %v4773_v15, 6 }
 0x2dc   :  { %v1665_v51 = vmul.f32 %v8218_v23, %v1633_v54  ;;  %v1664_v11 = vmul.f32 %v8219_v7, %v1618_v56  ;;  %3056 = vmatmul.msk.f32.vlgmr.msra.gmra.mxu3 %vm1666_vm8, %v5190_v46  ;;  %v1471_v4 = vsel %vm1455_vm6, %v8221_v29, %v8220_v33  ;;  %v8222_v54 = vld [vmem:[#allocation25_spill] sm:$0xff]  ;;  %v1582_v56 = vmul.f32 %v7567_v36, %v1538_v57  ;;  %v8223_v23 = vld [vmem:[#allocation86_spill] sm:$0xff]  ;;  %v8227_v29 = vld [vmem:[#allocation19_spill] sm:$0xff] }
 0x2dd   :  { %1921 = vmatpush.msrb.mxu0 %v8222_v54  ;;  %1937 = vmatpush.msrb.mxu1 %v1663_v1  ;;  %v7573_v7 = vperm.slane %v5715_v37, 5  ;;  %v1376_v44 = vsel %vm1374_vm1, %v8194_v24, %v8223_v23  ;;  %v8224_v33 = vperm.slane %v5715_v37, 7  ;;  %v1584_v16 = vmul.f32 %v8225_v27, %v1552_v0 }
 0x2de   :  { %1957 = vmatpush.msrb.mxu2 %v1664_v11  ;;  %1977 = vmatpush.msrb.mxu3 %v1665_v51  ;;  %v7575_v1 = vperm.slane %v5682_v31, 5  ;;  %v1375_v57 = vsel %vm1374_vm1, %v8223_v23, %v8226_v6  ;;  %v1390_v24 = vsel %vm1374_vm1, %v8226_v6, %v8227_v29  ;;  %v7561_v27 = vperm.slane %v5595_v13, 0  ;;  %v8229_v51 = vld [vmem:[#allocation73_spill] sm:$0xff] }
 0x2df   :  { %v1583_v5 = vmul.f32 %v8224_v33, %v1537_v3  ;;  %1922 = vmatpush.msrb.mxu0 %v1338_v34  ;;  %1938 = vmatpush.msrb.mxu1 %v1582_v56  ;;  %v8228_v3 = vperm.slane %v5713_v25, 6  ;;  %v1054_v0 = vsel %vm1050_vm4, %v8181_v45, %v8229_v51  ;;  %v8230_v11 = vperm.slane %v5715_v37, 6 }
 0x2e0   :  { %1978 = vmatpush.msrb.mxu3 %v1584_v16  ;;  %v8231_v33 = vperm.slane %v5682_v31, 6  ;;  %v7562_v34 = vperm.slane %v5713_v25, 1  ;;  %v8233_v29 = vperm.slane %v5713_v25, 5  ;;  %v7564_v45 = vperm.slane %v5713_v25, 3  ;;  %3098 = vset.pattern.permute.xlu1 %v8208_v41 }
 0x2e1   :  { %v1501_v54 = vmul.f32 %v8228_v3, %v1457_v40  ;;  %1958 = vmatpush.msrb.mxu2 %v1583_v5  ;;  %v1502_v23 = vmul.f32 %v8230_v11, %v1456_v62  ;;  %1923 = vmatpush.msrb.mxu0 %v1257_v48  ;;  %v8232_v40 = vperm.slane %v5595_v13, 1  ;;  %v7571_v16 = vperm.slane %v5715_v37, 3  ;;  %v8234_v5 = vld [vmem:[#allocation80_spill] sm:$0xff] }
 0x2e2   :  { %v1503_v6 = vmul.f32 %v8231_v33, %v1471_v4  ;;  %v1420_v3 = vmul.f32 %v8233_v29, %v1376_v44  ;;  %v1296_v4 = vsel %vm1293_vm2, %v8197_v8, %v8234_v5  ;;  %v1421_v48 = vmul.f32 %v7573_v7, %v1375_v57  ;;  %v8235_v44 = vld [vmem:[#allocation82_spill] sm:$0xff]  ;;  %v8239_v29 = vld [vmem:[#allocation35_spill] sm:$0xff] }
 0x2e3   :  { %1939 = vmatpush.msrb.mxu1 %v1501_v54  ;;  %v1176_v56 = vmul.f32 %v8232_v40, %v5698_v49  ;;  %1959 = vmatpush.msrb.mxu2 %v1502_v23  ;;  %v1422_v49 = vmul.f32 %v7575_v1, %v1390_v24  ;;  %v7574_v62 = vperm.slane %v5682_v31, 3  ;;  %v1295_v54 = vsel %vm1293_vm2, %v8234_v5, %v8235_v44  ;;  %v8236_v24 = vld [vmem:[#allocation71_spill] sm:$0xff]  ;;  %v8237_v33 = vld [vmem:[#allocation78_spill] sm:$0xff] }
 0x2e4   :  { %1979 = vmatpush.msrb.mxu3 %v1503_v6  ;;  %v1294_v8 = vsel %vm1293_vm2, %v8235_v44, %v4749_v10  ;;  %v1095_v57 = vmul.f32 %v7561_v27, %v1054_v0  ;;  %v7563_v11 = vperm.slane %v5713_v25, 2  ;;  %v1134_v23 = vsel %vm1131_vm0, %v8205_v52, %v8236_v24  ;;  %v8238_v0 = vld [vmem:[#allocation83_spill] sm:$0xff]  ;;  %v8240_v5 = vld [vmem:[#allocation38_spill] sm:$0xff] }
 0x2e5   :  { %1924 = vmatpush.msrb.mxu0 %v1176_v56  ;;  %1940 = vmatpush.msrb.mxu1 %v1420_v3  ;;  %v1215_v6 = vsel %vm1212_vm5, %v8193_v20, %v8237_v33  ;;  %v7569_v10 = vperm.slane %v5715_v37, 2  ;;  %v7572_v40 = vperm.slane %v5682_v31, 2  ;;  %v1213_v56 = vsel %vm1212_vm5, %v8238_v0, %v4735_v60 }
 0x2e6   :  { %1960 = vmatpush.msrb.mxu2 %v1421_v48  ;;  %1980 = vmatpush.msrb.mxu3 %v1422_v49  ;;  %v1214_v52 = vsel %vm1212_vm5, %v8237_v33, %v8238_v0  ;;  %v1339_v20 = vmul.f32 %v7564_v45, %v1296_v4  ;;  %v7560_v3 = vperm.slane %v5713_v25, 0  ;;  %v8241_v48 = vld [vmem:[#allocation45_spill] sm:$0xff]  ;;  %v1340_v60 = vmul.f32 %v7571_v16, %v1295_v54  ;;  %v8242_v33 = vld [vmem:[#allocation84_spill] sm:$0xff] }
 0x2e7   :  { %1925 = vmatpush.msrb.mxu0 %v1095_v57  ;;  %1941 = vmatpush.msrb.mxu1 %v8239_v29  ;;  %v1341_v49 = vmul.f32 %v7574_v62, %v1294_v8  ;;  %v7566_v44 = vperm.slane %v5715_v37, 1  ;;  %v7570_v57 = vperm.slane %v5682_v31, 1  ;;  %v1133_v4 = vsel %vm1131_vm0, %v8236_v24, %v8242_v33  ;;  %v8243_v29 = vld [vmem:[#allocation77_spill] sm:$0xff] }
 0x2e8   :  { %1961 = vmatpush.msrb.mxu2 %v8240_v5  ;;  %1981 = vmatpush.msrb.mxu3 %v8241_v48  ;;  %v1132_v0 = vsel %vm1131_vm0, %v8242_v33, %v4743_v63  ;;  %v1258_v54 = vmul.f32 %v7563_v11, %v1215_v6  ;;  %v7565_v8 = vperm.slane %v5715_v37, 0  ;;  %v1053_v5 = vsel %vm1050_vm4, %v8229_v51, %v8243_v29  ;;  %v8244_v48 = vld [vmem:[#allocation79_spill] sm:$0xff] }
 0x2e9   :  { %3057 = vmatmul.msk.f32.vlgmr.msrb.gmra.mxu0 %vm1666_vm8, %v5190_v46  ;;  %1942 = vmatpush.msrb.mxu1 %v1339_v20  ;;  %v1259_v24 = vmul.f32 %v7569_v10, %v1214_v52  ;;  %v1260_v63 = vmul.f32 %v7572_v40, %v1213_v56  ;;  %v7568_v20 = vperm.slane %v5682_v31, 0  ;;  %v1052_v6 = vsel %vm1050_vm4, %v8243_v29, %v8244_v48 }
 0x2ea   :  { %1962 = vmatpush.msrb.mxu2 %v1340_v60  ;;  %1982 = vmatpush.msrb.mxu3 %v1341_v49  ;;  %v1051_v51 = vsel %vm1050_vm4, %v8244_v48, %v4745_v58  ;;  %v1177_v60 = vmul.f32 %v7562_v34, %v1134_v23  ;;  %v1178_v56 = vmul.f32 %v7566_v44, %v1133_v4  ;;  %v8247_v36 = vperm.slane %v4938_v32, 0 }
 0x2eb   :  { %1943 = vmatpush.msrb.mxu1 %v1258_v54  ;;  %v1179_v52 = vmul.f32 %v7570_v57, %v1132_v0  ;;  %v1096_v49 = vmul.f32 %v7560_v3, %v1053_v5  ;;  %v1097_v58 = vmul.f32 %v7565_v8, %v1052_v6  ;;  %v1098_v41 = vmul.f32 %v7568_v20, %v1051_v51 }
 0x2ec   :  { %1963 = vmatpush.msrb.mxu2 %v1259_v24  ;;  %1983 = vmatpush.msrb.mxu3 %v1260_v63 }
 0x2ed   :  { %1944 = vmatpush.msrb.mxu1 %v1177_v60 }
 0x2ee   :  { %1964 = vmatpush.msrb.mxu2 %v1178_v56  ;;  %1984 = vmatpush.msrb.mxu3 %v1179_v52 }
 0x2ef   :  { %1945 = vmatpush.msrb.mxu1 %v1096_v49 }
 0x2f0   :  { %1965 = vmatpush.msrb.mxu2 %v1097_v58  ;;  %1985 = vmatpush.msrb.mxu3 %v1098_v41 }
 0x2f1   :  { %3058 = vmatmul.msk.f32.vlgmr.msrb.gmra.mxu1 %vm1666_vm8, %v5190_v46  ;;  %3059 = vmatmul.msk.f32.vlgmr.msrb.gmra.mxu2 %vm1666_vm8, %v5190_v46 }
 0x2f2   :  { %3060 = vmatmul.msk.f32.vlgmr.msrb.gmra.mxu3 %vm1666_vm8, %v5190_v46 }
 0x32b   :  { %v1707_v23 = vpop.f32.mrf.mxu1 }
 0x32f   :  { %v5907_v0 = vpop.permute.xlu0 %2013 }
 0x331   :  { %v1727_v24 = vpop.f32.mrf.mxu2 }
 0x332   :  { %v5904_v33 = vpop.permute.xlu2 %1992  ;;  %v1747_v48 = vpop.f32.mrf.mxu3 }
 0x333   :  { %v1996_v4 = vmul.f32 %v5904_v33, %v1707_v23  ;;  %v1997_v46 = vmul.f32 %v5904_v33, %v1727_v24  ;;  %v1998_v51 = vmul.f32 %v5904_v33, %v1747_v48 }
 0x335   :  { %v2017_v54 = vadd.f32 %v5907_v0, %v1996_v4  ;;  %v2018_v63 = vadd.f32 %v5907_v0, %v1997_v46  ;;  %v2019_v56 = vadd.f32 %v5907_v0, %v1998_v51 }
 0x337   :  { %vm2033_vm9 = vcmp.gt.f32.partialorder %v2017_v54, 0.0  ;;  %v2049_v29 = vmul.f32 0.01, %v2017_v54  ;;  %v2050_v6 = vmul.f32 0.01, %v2018_v63  ;;  %vm2034_vm10 = vcmp.gt.f32.partialorder %v2018_v63, 0.0 }
 0x338   :  { %v2051_v52 = vmul.f32 0.01, %v2019_v56  ;;  %vm2035_vm11 = vcmp.gt.f32.partialorder %v2019_v56, 0.0 }
 0x339   :  { %v5910_v5 = vsel %vm2033_vm9, %v2017_v54, %v2049_v29  ;;  %v5927_v60 = vsel %vm2034_vm10, %v2018_v63, %v2050_v6 }
 0x33a   :  { %2277 = vrot.lane.b32.xlu0 %v5910_v5, %s3246_s11  ;;  %2149 = vrot.lane.b32.xlu1 %v5910_v5, %s3242_s28  ;;  %v5936_v49 = vsel %vm2035_vm11, %v2019_v56, %v2051_v52 }
 0x33b   :  { %2085 = vrot.lane.b32.xlu2 %v5910_v5, %s3243_s29 }
 0x340   :  { %v1787_v58 = vpop.f32.mrf.mxu1 }
 0x341   :  { %v2000_v41 = vmul.f32 %v5904_v33, %v1787_v58 }
 0x342   :  { %2533 = vrot.lane.b32.xlu0 %v5910_v5, %s3248_s13  ;;  %2405 = vrot.lane.b32.xlu1 %v5910_v5, %s3244_s30 }
 0x343   :  { %2213 = vrot.lane.b32.xlu2 %v5910_v5, %s3241_s2  ;;  %v2021_v23 = vadd.f32 %v5907_v0, %v2000_v41 }
 0x345   :  { %v2053_v4 = vmul.f32 0.01, %v2021_v23  ;;  %vm2037_vm12 = vcmp.gt.f32.partialorder %v2021_v23, 0.0 }
 0x347   :  { %v5952_v54 = vsel %vm2037_vm12, %v2021_v23, %v2053_v4  ;;  %v1807_v29 = vpop.f32.mrf.mxu2  ;;  %v1827_v63 = vpop.f32.mrf.mxu3 }
 0x348   :  { %8245 = vst [vmem:[#allocation124_spill] sm:$0xff] %v5952_v54  ;;  %v2001_v24 = vmul.f32 %v5904_v33, %v1807_v29  ;;  %v2002_v6 = vmul.f32 %v5904_v33, %v1827_v63 }
 0x34a   :  { %2215 = vrot.lane.b32.xlu0 %v5927_v60, %s3241_s2  ;;  %2087 = vrot.lane.b32.xlu1 %v5927_v60, %s3243_s29  ;;  %v2022_v46 = vadd.f32 %v5907_v0, %v2001_v24  ;;  %v2023_v56 = vadd.f32 %v5907_v0, %v2002_v6  ;;  %v1687_v6 = vpop.f32.mrf.mxu0 }
 0x34b   :  { %2469 = vrot.lane.b32.xlu2 %v5910_v5, %s3247_s12 }
 0x34c   :  { %v2054_v48 = vmul.f32 0.01, %v2022_v46  ;;  %vm2038_vm13 = vcmp.gt.f32.partialorder %v2022_v46, 0.0  ;;  %v2055_v52 = vmul.f32 0.01, %v2023_v56  ;;  %vm2039_vm14 = vcmp.gt.f32.partialorder %v2023_v56, 0.0 }
 0x34e   :  { %v5969_v51 = vsel %vm2038_vm13, %v2022_v46, %v2054_v48  ;;  %v5978_v58 = vsel %vm2039_vm14, %v2023_v56, %v2055_v52  ;;  %v1995_v56 = vmul.f32 %v5904_v33, %v1687_v6 }
 0x34f   :  { %8246 = vst [vmem:[#allocation125_spill] sm:$0xff] %v5969_v51 }
 0x352   :  { %2153 = vrot.lane.b32.xlu0 %v5936_v49, %s3242_s28  ;;  %2279 = vrot.lane.b32.xlu1 %v5927_v60, %s3246_s11  ;;  %v1767_v45 = vpop.f32.mrf.mxu0 }
 0x353   :  { %2151 = vrot.lane.b32.xlu2 %v5927_v60, %s3242_s28  ;;  %v1999_v44 = vmul.f32 %v5904_v33, %v1767_v45 }
 0x355   :  { %v2020_v10 = vadd.f32 %v5907_v0, %v1999_v44  ;;  %v8248_v44 = vperm.slane %v4757_v9, 7 }
 0x357   :  { %v2052_v32 = vmul.f32 0.01, %v2020_v10  ;;  %vm2036_vm13 = vcmp.gt.f32.partialorder %v2020_v10, 0.0 }
 0x358   :  { %v1867_v41 = vpop.f32.mrf.mxu1 }
 0x359   :  { %v2004_v23 = vmul.f32 %v5904_v33, %v1867_v41 }
 0x35a   :  { %2537 = vrot.lane.b32.xlu0 %v5936_v49, %s3248_s13  ;;  %2217 = vrot.lane.b32.xlu1 %v5936_v49, %s3241_s2  ;;  %v1847_v30 = vpop.f32.mrf.mxu0 }
 0x35b   :  { %2535 = vrot.lane.b32.xlu2 %v5927_v60, %s3248_s13  ;;  %v2025_v4 = vadd.f32 %v5907_v0, %v2004_v23  ;;  %v2016_v23 = vadd.f32 %v5907_v0, %v1995_v56 }
 0x35d   :  { %v2057_v24 = vmul.f32 0.01, %v2025_v4  ;;  %vm2041_vm15 = vcmp.gt.f32.partialorder %v2025_v4, 0.0  ;;  %vm2032_vm10 = vcmp.gt.f32.partialorder %v2016_v23, 0.0 }
 0x35e   :  { %v1887_v29 = vpop.f32.mrf.mxu2 }
 0x35f   :  { %v2005_v46 = vmul.f32 %v5904_v33, %v1887_v29  ;;  %v5995_v63 = vsel %vm2041_vm15, %v2025_v4, %v2057_v24  ;;  %v2048_v29 = vmul.f32 0.01, %v2016_v23 }
 0x361   :  { %v2026_v48 = vadd.f32 %v5907_v0, %v2005_v46  ;;  %v6016_v24 = vsel %vm2032_vm10, %v2016_v23, %v2048_v29 }
 0x362   :  { %2473 = vrot.lane.b32.xlu0 %v5936_v49, %s3247_s12  ;;  %2093 = vrot.lane.b32.xlu1 %v5952_v54, %s3243_s29 }
 0x363   :  { %2471 = vrot.lane.b32.xlu2 %v5927_v60, %s3247_s12  ;;  %v2058_v52 = vmul.f32 0.01, %v2026_v48  ;;  %vm2042_vm9 = vcmp.gt.f32.partialorder %v2026_v48, 0.0 }
 0x365   :  { %v6005_v41 = vsel %vm2042_vm9, %v2026_v48, %v2058_v52  ;;  %v1907_v48 = vpop.f32.mrf.mxu3 }
 0x366   :  { %v2006_v6 = vmul.f32 %v5904_v33, %v1907_v48 }
 0x368   :  { %v2027_v52 = vadd.f32 %v5907_v0, %v2006_v6 }
 0x36a   :  { %2409 = vrot.lane.b32.xlu0 %v5936_v49, %s3244_s30  ;;  %2285 = vrot.lane.b32.xlu1 %v5952_v54, %s3246_s11  ;;  %v2059_v27 = vmul.f32 0.01, %v2027_v52  ;;  %vm2043_vm11 = vcmp.gt.f32.partialorder %v2027_v52, 0.0 }
 0x36b   :  { %2407 = vrot.lane.b32.xlu2 %v5927_v60, %s3244_s30 }
 0x36c   :  { %v6049_v6 = vsel %vm2043_vm11, %v2027_v52, %v2059_v27 }
 0x36e   :  { %v1947_v23 = vpop.f32.mrf.mxu1 }
 0x36f   :  { %v2008_v48 = vmul.f32 %v5904_v33, %v1947_v23 }
 0x371   :  { %v2029_v11 = vadd.f32 %v5907_v0, %v2008_v48 }
 0x372   :  { %2345 = vrot.lane.b32.xlu0 %v5936_v49, %s3245_s10  ;;  %2223 = vrot.lane.b32.xlu1 %v5969_v51, %s3241_s2 }
 0x373   :  { %2343 = vrot.lane.b32.xlu2 %v5927_v60, %s3245_s10  ;;  %v2061_v27 = vmul.f32 0.01, %v2029_v11  ;;  %vm2045_vm12 = vcmp.gt.f32.partialorder %v2029_v11, 0.0 }
 0x374   :  { %v1967_v25 = vpop.f32.mrf.mxu2 }
 0x375   :  { %v6069_v57 = vsel %vm2045_vm12, %v2029_v11, %v2061_v27  ;;  %v6086_v27 = vsel %vm2036_vm13, %v2020_v10, %v2052_v32  ;;  %v8250_v32 = vperm.slane %v4757_v9, 6 }
 0x376   :  { %8249 = vst [vmem:[#allocation130_spill] sm:$0xff] %v6086_v27 }
 0x37a   :  { %2221 = vrot.lane.b32.xlu0 %v5952_v54, %s3241_s2  ;;  %2161 = vrot.lane.b32.xlu1 %v5978_v58, %s3242_s28 }
 0x37b   :  { %2089 = vrot.lane.b32.xlu2 %v5936_v49, %s3243_s29 }
 0x382   :  { %2159 = vrot.lane.b32.xlu0 %v5969_v51, %s3242_s28  ;;  %2545 = vrot.lane.b32.xlu1 %v5978_v58, %s3248_s13 }
 0x383   :  { %2281 = vrot.lane.b32.xlu2 %v5936_v49, %s3246_s11 }
 0x38a   :  { %2543 = vrot.lane.b32.xlu0 %v5969_v51, %s3248_s13  ;;  %2229 = vrot.lane.b32.xlu1 %v5995_v63, %s3241_s2 }
 0x38b   :  { %2157 = vrot.lane.b32.xlu2 %v5952_v54, %s3242_s28 }
 0x392   :  { %2097 = vrot.lane.b32.xlu0 %v5978_v58, %s3243_s29  ;;  %2167 = vrot.lane.b32.xlu1 %v6005_v41, %s3242_s28 }
 0x393   :  { %2095 = vrot.lane.b32.xlu2 %v5969_v51, %s3243_s29 }
 0x395   :  { %v6014_v4 = vpop.permute.xlu2 %2085 }
 0x39a   :  { %2289 = vrot.lane.b32.xlu0 %v5978_v58, %s3246_s11  ;;  %2083 = vrot.lane.b32.xlu1 %v6016_v24, %s3243_s29 }
 0x39b   :  { %2287 = vrot.lane.b32.xlu2 %v5969_v51, %s3246_s11 }
 0x39d   :  { %v6024_v46 = vpop.permute.xlu2 %2213 }
 0x3a2   :  { %2481 = vrot.lane.b32.xlu0 %v5978_v58, %s3247_s12  ;;  %2211 = vrot.lane.b32.xlu1 %v6016_v24, %s3241_s2 }
 0x3a3   :  { %2479 = vrot.lane.b32.xlu2 %v5969_v51, %s3247_s12 }
 0x3a5   :  { %v6033_v56 = vpop.permute.xlu2 %2469 }
 0x3aa   :  { %2165 = vrot.lane.b32.xlu0 %v5995_v63, %s3242_s28  ;;  %2467 = vrot.lane.b32.xlu1 %v6016_v24, %s3247_s12 }
 0x3ab   :  { %2225 = vrot.lane.b32.xlu2 %v5978_v58, %s3241_s2 }
 0x3ac   :  { %v6042_v29 = vpop.permute.xlu0 %2277  ;;  %v6044_v3 = vpop.permute.xlu1 %2149 }
 0x3ad   :  { %v6047_v34 = vpop.permute.xlu2 %2151 }
 0x3b2   :  { %2103 = vrot.lane.b32.xlu0 %v6005_v41, %s3243_s29  ;;  %2105 = vrot.lane.b32.xlu1 %v6049_v6, %s3243_s29 }
 0x3b3   :  { %2101 = vrot.lane.b32.xlu2 %v5995_v63, %s3243_s29 }
 0x3b4   :  { %v6058_v8 = vpop.permute.xlu0 %2533  ;;  %v6060_v23 = vpop.permute.xlu1 %2405 }
 0x3b5   :  { %v2536_v52 = vpop.permute.xlu2 %2535 }
 0x3b6   :  { %v2576_v48 = vsel %vm1617_vm7, %v6058_v8, %v2536_v52 }
 0x3b7   :  { %v2580_v20 = vmul.f32 %v2576_v48, %v8247_v36 }
 0x3b9   :  { %2625 = vmatpush.msra.mxu1 %v2580_v20 }
 0x3ba   :  { %2147 = vrot.lane.b32.xlu0 %v6016_v24, %s3242_s28  ;;  %2173 = vrot.lane.b32.xlu1 %v6069_v57, %s3242_s28 }
 0x3bb   :  { %2231 = vrot.lane.b32.xlu2 %v6005_v41, %s3241_s2 }
 0x3bc   :  { %v6077_v45 = vpop.permute.xlu0 %2215  ;;  %v6079_v16 = vpop.permute.xlu1 %2087 }
 0x3bd   :  { %v2472_v36 = vpop.permute.xlu2 %2471  ;;  %v2256_v55 = vsel %vm1212_vm5, %v6024_v46, %v6077_v45 }
 0x3be   :  { %v2512_v11 = vsel %vm1536_vm3, %v6033_v56, %v2472_v36 }
 0x3bf   :  { %v2516_v20 = vmul.f32 %v2512_v11, %v8248_v44 }
 0x3c1   :  { %2626 = vmatpush.msra.mxu1 %v2516_v20 }
 0x3c2   :  { %2403 = vrot.lane.b32.xlu0 %v6016_v24, %s3244_s30  ;;  %2155 = vrot.lane.b32.xlu1 %v6086_v27, %s3242_s28 }
 0x3c3   :  { %2275 = vrot.lane.b32.xlu2 %v6016_v24, %s3246_s11 }
 0x3c4   :  { %v6094_v48 = vpop.permute.xlu0 %2153  ;;  %v6096_v40 = vpop.permute.xlu1 %2279 }
 0x3c5   :  { %v2408_v7 = vpop.permute.xlu2 %2407  ;;  %v2320_v14 = vsel %vm1293_vm2, %v6042_v29, %v6096_v40 }
 0x3c6   :  { %v2448_v10 = vsel %vm1455_vm6, %v6060_v23, %v2408_v7 }
 0x3c7   :  { %v2452_v11 = vmul.f32 %v2448_v10, %v8250_v32  ;;  %v8251_v10 = vperm.slane %v4940_v50, 0 }
 0x3c9   :  { %2627 = vmatpush.msra.mxu1 %v2452_v11 }
 0x3ca   :  { %2233 = vrot.lane.b32.xlu0 %v6049_v6, %s3241_s2  ;;  %2539 = vrot.lane.b32.xlu1 %v6086_v27, %s3248_s13 }
 0x3cb   :  { %2531 = vrot.lane.b32.xlu2 %v6016_v24, %s3248_s13 }
 0x3cc   :  { %v6109_v44 = vpop.permute.xlu0 %2537  ;;  %v6111_v20 = vpop.permute.xlu1 %2217 }
 0x3cd   :  { %v2575_v62 = vsel %vm1617_vm7, %v2536_v52, %v6109_v44  ;;  %v6116_v1 = vpop.permute.xlu2 %2343 }
 0x3ce   :  { %v2581_v32 = vmul.f32 %v2575_v62, %v8251_v10  ;;  %v8253_v62 = vperm.slane %v4773_v15, 7 }
 0x3d0   :  { %2645 = vmatpush.msra.mxu2 %v2581_v32  ;;  %v1987_v32 = vpop.f32.mrf.mxu3 }
 0x3d1   :  { %v2010_v31 = vmul.f32 %v5904_v33, %v1987_v32 }
 0x3d2   :  { %2109 = vrot.lane.b32.xlu0 %v6069_v57, %s3243_s29  ;;  %2475 = vrot.lane.b32.xlu1 %v6086_v27, %s3247_s12 }
 0x3d3   :  { %2339 = vrot.lane.b32.xlu2 %v6016_v24, %s3245_s10  ;;  %v2031_v19 = vadd.f32 %v5907_v0, %v2010_v31 }
 0x3d4   :  { %v6126_v11 = vpop.permute.xlu0 %2473  ;;  %v6128_v13 = vpop.permute.xlu1 %2093 }
 0x3d5   :  { %8252 = vst [vmem:[#allocation131_spill] sm:$0xff] %v6128_v13  ;;  %v2511_v52 = vsel %vm1536_vm3, %v2472_v36, %v6126_v11  ;;  %v6133_v50 = vpop.permute.xlu2 %2089  ;;  %v2063_v32 = vmul.f32 0.01, %v2031_v19  ;;  %vm2047_vm14 = vcmp.gt.f32.partialorder %v2031_v19, 0.0 }
 0x3d6   :  { %v2517_v10 = vmul.f32 %v2511_v52, %v8253_v62 }
 0x3d7   :  { %v6180_v22 = vsel %vm2047_vm14, %v2031_v19, %v2063_v32  ;;  %v2192_v19 = vsel %vm1131_vm0, %v6044_v3, %v6047_v34 }
 0x3d8   :  { %2646 = vmatpush.msra.mxu2 %v2517_v10  ;;  %v2009_v10 = vmul.f32 %v5904_v33, %v1967_v25 }
 0x3da   :  { %2091 = vrot.lane.b32.xlu0 %v6086_v27, %s3243_s29  ;;  %2411 = vrot.lane.b32.xlu1 %v6086_v27, %s3244_s30  ;;  %v2030_v2 = vadd.f32 %v5907_v0, %v2009_v10 }
 0x3db   :  { %2169 = vrot.lane.b32.xlu2 %v6049_v6, %s3242_s28 }
 0x3dc   :  { %v6143_v37 = vpop.permute.xlu0 %2409  ;;  %v6145_v36 = vpop.permute.xlu1 %2285  ;;  %v2062_v31 = vmul.f32 0.01, %v2030_v2  ;;  %vm2046_vm15 = vcmp.gt.f32.partialorder %v2030_v2, 0.0 }
 0x3dd   :  { %8254 = vst [vmem:[#allocation128_spill] sm:$0xff] %v6145_v36  ;;  %v2447_v52 = vsel %vm1455_vm6, %v2408_v7, %v6143_v37  ;;  %v6151_v62 = vpop.permute.xlu2 %2281 }
 0x3de   :  { %v2453_v21 = vmul.f32 %v2447_v52, %v8255_v12  ;;  %v8257_v52 = vperm.slane %v4773_v15, 5  ;;  %v6186_v35 = vsel %vm2046_vm15, %v2030_v2, %v2062_v31  ;;  %v8260_v2 = vperm.slane %v4773_v15, 2 }
 0x3df   :  { %8258 = vst [vmem:[#allocation132_spill] sm:$0xff] %v6186_v35  ;;  %v2128_v31 = vsel %vm1050_vm4, %v6014_v4, %v6079_v16 }
 0x3e0   :  { %2647 = vmatpush.msra.mxu2 %v2453_v21  ;;  %v2261_v32 = vmul.f32 %v2256_v55, %v8260_v2  ;;  %v8263_v55 = vperm.slane %v4773_v15, 0 }
 0x3e2   :  { %2283 = vrot.lane.b32.xlu0 %v6086_v27, %s3246_s11  ;;  %2347 = vrot.lane.b32.xlu1 %v6086_v27, %s3245_s10  ;;  %v2133_v2 = vmul.f32 %v2128_v31, %v8263_v55 }
 0x3e3   :  { %2237 = vrot.lane.b32.xlu2 %v6069_v57, %s3241_s2 }
 0x3e4   :  { %v6164_v7 = vpop.permute.xlu0 %2345  ;;  %v6166_v25 = vpop.permute.xlu1 %2223 }
 0x3e5   :  { %v2383_v21 = vsel %vm1374_vm1, %v6116_v1, %v6164_v7  ;;  %v6172_v12 = vpop.permute.xlu2 %2157 }
 0x3e6   :  { %8256 = vst [vmem:[#allocation129_spill] sm:$0xff] %v6172_v12  ;;  %v2389_v10 = vmul.f32 %v2383_v21, %v8257_v52  ;;  %v2325_v21 = vmul.f32 %v2320_v14, %v8259_v18 }
 0x3e8   :  { %2648 = vmatpush.msra.mxu2 %v2389_v10  ;;  %v8262_v10 = vperm.slane %v4773_v15, 1 }
 0x3ea   :  { %2649 = vmatpush.msra.mxu2 %v5927_v60  ;;  %2177 = vrot.lane.b32.xlu0 %v6180_v22, %s3242_s28  ;;  %v2003_v60 = vmul.f32 %v5904_v33, %v1847_v30 }
 0x3eb   :  { %2219 = vrot.lane.b32.xlu2 %v6086_v27, %s3241_s2  ;;  %2111 = vrot.lane.b32.xlu1 %v6186_v35, %s3243_s29  ;;  %v2197_v27 = vmul.f32 %v2192_v19, %v8262_v10 }
 0x3ec   :  { %v6203_v18 = vpop.permute.xlu0 %2221  ;;  %v6205_v14 = vpop.permute.xlu1 %2161  ;;  %2650 = vmatpush.msra.mxu2 %v2325_v21  ;;  %v2024_v28 = vadd.f32 %v5907_v0, %v2003_v60 }
 0x3ed   :  { %8261 = vst [vmem:[#allocation133_spill] sm:$0xff] %v6203_v18  ;;  %v6212_v52 = vpop.permute.xlu2 %2095  ;;  %v1927_v21 = vpop.f32.mrf.mxu0 }
 0x3ee   :  { %2651 = vmatpush.msra.mxu2 %v2261_v32  ;;  %v2056_v15 = vmul.f32 0.01, %v2024_v28  ;;  %vm2040_vm9 = vcmp.gt.f32.partialorder %v2024_v28, 0.0 }
 0x3f0   :  { %2652 = vmatpush.msra.mxu2 %v2197_v27  ;;  %v2007_v27 = vmul.f32 %v5904_v33, %v1927_v21  ;;  %v6232_v60 = vsel %vm2040_vm9, %v2024_v28, %v2056_v15 }
 0x3f1   :  { %8264 = vst [vmem:[#allocation134_spill] sm:$0xff] %v6232_v60 }
 0x3f2   :  { %2653 = vmatpush.msra.mxu2 %v2133_v2  ;;  %2239 = vrot.lane.b32.xlu0 %v6186_v35, %s3241_s2  ;;  %v2028_v31 = vadd.f32 %v5907_v0, %v2007_v27  ;;  %v8268_v2 = vperm.slane %v5168_v42, 0 }
 0x3f3   :  { %2113 = vrot.lane.b32.xlu2 %v6180_v22, %s3243_s29  ;;  %2241 = vrot.lane.b32.xlu1 %v6180_v22, %s3241_s2 }
 0x3f4   :  { %v6225_v30 = vpop.permute.xlu0 %2159  ;;  %v6227_v19 = vpop.permute.xlu1 %2545  ;;  %v2060_v33 = vmul.f32 0.01, %v2028_v31  ;;  %vm2044_vm10 = vcmp.gt.f32.partialorder %v2028_v31, 0.0 }
 0x3f5   :  { %v6230_v32 = vpop.permute.xlu2 %2287 }
 0x3f6   :  { %v6253_v15 = vsel %vm2044_vm10, %v2028_v31, %v2060_v33 }
 0x3fa   :  { %2227 = vrot.lane.b32.xlu0 %v6232_v60, %s3241_s2 }
 0x3fb   :  { %2175 = vrot.lane.b32.xlu2 %v6186_v35, %s3242_s28  ;;  %2099 = vrot.lane.b32.xlu1 %v6232_v60, %s3243_s29 }
 0x3fc   :  { %v6241_v10 = vpop.permute.xlu0 %2543  ;;  %v6243_v55 = vpop.permute.xlu1 %2229 }
 0x3fd   :  { %8265 = vst [vmem:[#allocation135_spill] sm:$0xff] %v6241_v10  ;;  %v2571_v28 = vsel %vm1617_vm7, %v6241_v10, %v6227_v19  ;;  %v6249_v0 = vpop.permute.xlu2 %2479 }
 0x3fe   :  { %8266 = vst [vmem:[#allocation136_spill] sm:$0xff] %v6243_v55  ;;  %v2585_v21 = vmul.f32 %v2571_v28, %v8268_v2 }
 0x3ff   :  { %8267 = vst [vmem:[#allocation137_spill] sm:$0xff] %v6249_v0 }
 0x400   :  { %2725 = vmatpush.msrb.mxu2 %v2585_v21 }
 0x402   :  { %2171 = vrot.lane.b32.xlu0 %v6253_v15, %s3242_s28 }
 0x403   :  { %2163 = vrot.lane.b32.xlu2 %v6232_v60, %s3242_s28  ;;  %2291 = vrot.lane.b32.xlu1 %v6232_v60, %s3246_s11 }
 0x404   :  { %v6261_v27 = vpop.permute.xlu0 %2097  ;;  %v6263_v55 = vpop.permute.xlu1 %2167 }
 0x405   :  { %8269 = vst [vmem:[#allocation138_spill] sm:$0xff] %v6263_v55  ;;  %v6265_v53 = vpop.permute.xlu2 %2225 }
 0x40a   :  { %2341 = vrot.lane.b32.xlu0 %v5910_v5, %s3245_s10 }
 0x40b   :  { %2547 = vrot.lane.b32.xlu2 %v6232_v60, %s3248_s13  ;;  %2483 = vrot.lane.b32.xlu1 %v6232_v60, %s3247_s12 }
 0x40c   :  { %v6273_v42 = vpop.permute.xlu0 %2289  ;;  %v6275_v31 = vpop.permute.xlu1 %2083 }
 0x40d   :  { %v6277_v33 = vpop.permute.xlu2 %2101 }
 0x40e   :  { %8270 = vst [vmem:[#allocation139_spill] sm:$0xff] %v6277_v33  ;;  %v8272_v33 = vperm.slane %v5087_v43, 7 }
 0x412   :  { %2419 = vrot.lane.b32.xlu0 %v6232_v60, %s3244_s30 }
 0x413   :  { %2107 = vrot.lane.b32.xlu2 %v6253_v15, %s3243_s29  ;;  %2235 = vrot.lane.b32.xlu1 %v6253_v15, %s3241_s2 }
 0x414   :  { %v6285_v28 = vpop.permute.xlu0 %2481  ;;  %v6287_v2 = vpop.permute.xlu1 %2211 }
 0x415   :  { %v2507_v21 = vsel %vm1536_vm3, %v6249_v0, %v6285_v28  ;;  %v6293_v47 = vpop.permute.xlu2 %2231 }
 0x416   :  { %8271 = vst [vmem:[#allocation140_spill] sm:$0xff] %v6293_v47  ;;  %v2521_v13 = vmul.f32 %v2507_v21, %v8272_v33  ;;  %v8278_v47 = vld [vmem:[#allocation97_spill] sm:$0xff] }
 0x417   :  { %v8279_v18 = vperm.slane %v8278_v47, 0 }
 0x418   :  { %2726 = vmatpush.msrb.mxu2 %v2521_v13 }
 0x41a   :  { %2355 = vrot.lane.b32.xlu0 %v6232_v60, %s3245_s10 }
 0x41b   :  { %2417 = vrot.lane.b32.xlu2 %v5978_v58, %s3244_s30  ;;  %2415 = vrot.lane.b32.xlu1 %v5969_v51, %s3244_s30 }
 0x41c   :  { %v6303_v10 = vpop.permute.xlu0 %2165  ;;  %v6305_v12 = vpop.permute.xlu1 %2467 }
 0x41d   :  { %8273 = vst [vmem:[#allocation141_spill] sm:$0xff] %v6303_v10  ;;  %v6307_v0 = vpop.permute.xlu2 %2275  ;;  %v2513_v10 = vsel %vm1536_vm3, %v6305_v12, %v6033_v56 }
 0x41e   :  { %8274 = vst [vmem:[#allocation142_spill] sm:$0xff] %v6305_v12 }
 0x422   :  { %2477 = vrot.lane.b32.xlu0 %v5952_v54, %s3247_s12 }
 0x423   :  { %2353 = vrot.lane.b32.xlu2 %v5978_v58, %s3245_s10  ;;  %2351 = vrot.lane.b32.xlu1 %v5969_v51, %s3245_s10 }
 0x424   :  { %v6315_v13 = vpop.permute.xlu0 %2103  ;;  %v6317_v33 = vpop.permute.xlu1 %2105 }
 0x425   :  { %8275 = vst [vmem:[#allocation143_spill] sm:$0xff] %v6315_v13  ;;  %v6319_v21 = vpop.permute.xlu2 %2531  ;;  %v8280_v13 = vperm.slane %v4762_v17, 7 }
 0x426   :  { %8276 = vst [vmem:[#allocation144_spill] sm:$0xff] %v6317_v33  ;;  %v2577_v60 = vsel %vm1617_vm7, %v6319_v21, %v6058_v8 }
 0x427   :  { %8277 = vst [vmem:[#allocation145_spill] sm:$0xff] %v6319_v21  ;;  %v2579_v36 = vmul.f32 %v2577_v60, %v8279_v18  ;;  %v2515_v51 = vmul.f32 %v2513_v10, %v8280_v13  ;;  %v8285_v13 = vperm.slane %v4762_v17, 6 }
 0x429   :  { %2605 = vmatpush.msra.mxu0 %v2579_v36 }
 0x42a   :  { %2553 = vrot.lane.b32.xlu0 %v6049_v6, %s3248_s13 }
 0x42b   :  { %2305 = vrot.lane.b32.xlu2 %v6180_v22, %s3246_s11  ;;  %2541 = vrot.lane.b32.xlu1 %v5952_v54, %s3248_s13 }
 0x42c   :  { %2606 = vmatpush.msra.mxu0 %v2515_v51  ;;  %v6339_v8 = vpop.permute.xlu0 %2147  ;;  %v6341_v56 = vpop.permute.xlu1 %2173 }
 0x42d   :  { %8281 = vst [vmem:[#allocation146_spill] sm:$0xff] %v6341_v56  ;;  %v6343_v47 = vpop.permute.xlu2 %2339 }
 0x432   :  { %2487 = vrot.lane.b32.xlu0 %v6005_v41, %s3247_s12 }
 0x433   :  { %2551 = vrot.lane.b32.xlu2 %v6005_v41, %s3248_s13  ;;  %2413 = vrot.lane.b32.xlu1 %v5952_v54, %s3244_s30 }
 0x434   :  { %v6351_v36 = vpop.permute.xlu0 %2403  ;;  %v6353_v18 = vpop.permute.xlu1 %2155 }
 0x435   :  { %8282 = vst [vmem:[#allocation147_spill] sm:$0xff] %v6351_v36  ;;  %v6355_v51 = vpop.permute.xlu2 %2169  ;;  %v2449_v60 = vsel %vm1455_vm6, %v6351_v36, %v6060_v23 }
 0x436   :  { %8283 = vst [vmem:[#allocation148_spill] sm:$0xff] %v6353_v18  ;;  %v6365_v10 = vsel %vm1131_vm0, %v6263_v55, %v6355_v51  ;;  %v2451_v56 = vmul.f32 %v2449_v60, %v8285_v13  ;;  %v8288_v60 = vperm.slane %v4935_v59, 0  ;;  %v8294_v18 = vperm.slane %v4812_v38, 3 }
 0x437   :  { %8284 = vst [vmem:[#allocation149_spill] sm:$0xff] %v6365_v10 }
 0x438   :  { %2607 = vmatpush.msra.mxu0 %v2451_v56 }
 0x43a   :  { %2423 = vrot.lane.b32.xlu0 %v6005_v41, %s3244_s30 }
 0x43b   :  { %2349 = vrot.lane.b32.xlu2 %v5952_v54, %s3245_s10  ;;  %2555 = vrot.lane.b32.xlu1 %v6253_v15, %s3248_s13 }
 0x43c   :  { %v6375_v23 = vpop.permute.xlu0 %2233  ;;  %v6377_v36 = vpop.permute.xlu1 %2539 }
 0x43d   :  { %8286 = vst [vmem:[#allocation150_spill] sm:$0xff] %v6375_v23  ;;  %v6379_v12 = vpop.permute.xlu2 %2237  ;;  %v2574_v56 = vsel %vm1617_vm7, %v6109_v44, %v6377_v36  ;;  %v8289_v44 = vperm.slane %v4812_v38, 7 }
 0x43e   :  { %8287 = vst [vmem:[#allocation151_spill] sm:$0xff] %v6379_v12  ;;  %v2582_v13 = vmul.f32 %v2574_v56, %v8288_v60 }
 0x440   :  { %2665 = vmatpush.msra.mxu3 %v2582_v13 }
 0x442   :  { %2359 = vrot.lane.b32.xlu0 %v6005_v41, %s3245_s10 }
 0x443   :  { %2491 = vrot.lane.b32.xlu2 %v6253_v15, %s3247_s12  ;;  %2489 = vrot.lane.b32.xlu1 %v6049_v6, %s3247_s12 }
 0x444   :  { %v6393_v55 = vpop.permute.xlu0 %2109  ;;  %v6395_v12 = vpop.permute.xlu1 %2475 }
 0x445   :  { %v6397_v21 = vpop.permute.xlu2 %2219  ;;  %v2510_v59 = vsel %vm1536_vm3, %v6126_v11, %v6395_v12 }
 0x446   :  { %v2518_v56 = vmul.f32 %v2510_v59, %v8289_v44  ;;  %v8291_v59 = vperm.slane %v4812_v38, 6 }
 0x448   :  { %2666 = vmatpush.msra.mxu3 %v2518_v56 }
 0x44a   :  { %2549 = vrot.lane.b32.xlu0 %v5995_v63, %s3248_s13 }
 0x44b   :  { %2427 = vrot.lane.b32.xlu2 %v6253_v15, %s3244_s30  ;;  %2425 = vrot.lane.b32.xlu1 %v6049_v6, %s3244_s30 }
 0x44c   :  { %v6411_v60 = vpop.permute.xlu0 %2091  ;;  %v6413_v13 = vpop.permute.xlu1 %2411 }
 0x44d   :  { %8290 = vst [vmem:[#allocation152_spill] sm:$0xff] %v6411_v60  ;;  %v6415_v10 = vpop.permute.xlu2 %2113  ;;  %v2446_v11 = vsel %vm1455_vm6, %v6143_v37, %v6413_v13  ;;  %v2255_v60 = vsel %vm1212_vm5, %v6077_v45, %v6111_v20 }
 0x44e   :  { %v2454_v44 = vmul.f32 %v2446_v11, %v8291_v59  ;;  %v8293_v11 = vperm.slane %v4812_v38, 5 }
 0x450   :  { %2667 = vmatpush.msra.mxu3 %v2454_v44  ;;  %v2319_v44 = vsel %vm1293_vm2, %v6096_v40, %v6151_v62  ;;  %v8295_v40 = vperm.slane %v4812_v38, 2 }
 0x451   :  { %v2326_v54 = vmul.f32 %v2319_v44, %v8294_v18  ;;  %v8300_v44 = vperm.slane %v4812_v38, 0 }
 0x452   :  { %2561 = vrot.lane.b32.xlu0 %v6180_v22, %s3248_s13  ;;  %v2262_v45 = vmul.f32 %v2255_v60, %v8295_v40 }
 0x453   :  { %2363 = vrot.lane.b32.xlu2 %v6253_v15, %s3245_s10  ;;  %2361 = vrot.lane.b32.xlu1 %v6049_v6, %s3245_s10 }
 0x454   :  { %v6429_v56 = vpop.permute.xlu0 %2283  ;;  %v6431_v33 = vpop.permute.xlu1 %2347 }
 0x455   :  { %v6433_v23 = vpop.permute.xlu2 %2175  ;;  %v2382_v37 = vsel %vm1374_vm1, %v6164_v7, %v6431_v33  ;;  %v2191_v7 = vsel %vm1131_vm0, %v6047_v34, %v6094_v48 }
 0x456   :  { %8292 = vst [vmem:[#allocation153_spill] sm:$0xff] %v6433_v23  ;;  %v2390_v59 = vmul.f32 %v2382_v37, %v8293_v11 }
 0x458   :  { %2668 = vmatpush.msra.mxu3 %v2390_v59  ;;  %v8297_v59 = vperm.slane %v4812_v38, 1 }
 0x45a   :  { %2297 = vrot.lane.b32.xlu0 %v6049_v6, %s3246_s11  ;;  %2669 = vmatpush.msra.mxu3 %v5936_v49  ;;  %v2127_v49 = vsel %vm1050_vm4, %v6079_v16, %v6133_v50  ;;  %v2198_v60 = vmul.f32 %v2191_v7, %v8297_v59  ;;  %v8303_v59 = vperm.slane %v5146_v39, 0 }
 0x45b   :  { %2559 = vrot.lane.b32.xlu2 %v6186_v35, %s3248_s13  ;;  %2485 = vrot.lane.b32.xlu1 %v5995_v63, %s3247_s12  ;;  %v2134_v40 = vmul.f32 %v2127_v49, %v8300_v44 }
 0x45c   :  { %v6464_v18 = vpop.permute.xlu0 %2177  ;;  %2670 = vmatpush.msra.mxu3 %v2326_v54 }
 0x45d   :  { %v6470_v37 = vpop.permute.xlu2 %2163  ;;  %v6476_v34 = vsel %vm1131_vm0, %v6433_v23, %v6464_v18  ;;  %v2112_v11 = vpop.permute.xlu1 %2111  ;;  %v6495_v23 = vld [vmem:[%s7244_s6] sm:$0xff] }
 0x45e   :  { %8296 = vst [vmem:[#allocation154_spill] sm:$0xff] %v6476_v34  ;;  %2671 = vmatpush.msra.mxu3 %v2262_v45  ;;  %v6483_v54 = vsel %vm1050_vm4, %v2112_v11, %v6415_v10  ;;  %v6488_v16 = vsel %vm1050_vm4, %v6393_v55, %v2112_v11  ;;  %3063 = vmatmul.msk.f32.vlgmr.msra.gmra.mxu2 %vm1666_vm8, %v6495_v23  ;;  %v8309_v34 = vperm.slane %v4757_v9, 5 }
 0x45f   :  { %8298 = vst [vmem:[#allocation155_spill] sm:$0xff] %v6483_v54 }
 0x460   :  { %8299 = vst [vmem:[#allocation156_spill] sm:$0xff] %v6488_v16  ;;  %2672 = vmatpush.msra.mxu3 %v2198_v60 }
 0x462   :  { %2497 = vrot.lane.b32.xlu0 %v6180_v22, %s3247_s12  ;;  %2673 = vmatpush.msra.mxu3 %v2134_v40 }
 0x463   :  { %2295 = vrot.lane.b32.xlu2 %v6005_v41, %s3246_s11  ;;  %2293 = vrot.lane.b32.xlu1 %v5995_v63, %s3246_s11 }
 0x464   :  { %v6503_v7 = vpop.permute.xlu0 %2239  ;;  %3064 = vmatmul.msk.f32.vlgmr.msra.gmra.mxu3 %vm1666_vm8, %v6495_v23 }
 0x465   :  { %8301 = vst [vmem:[#allocation157_spill] sm:$0xff] %v6503_v7  ;;  %v6509_v38 = vpop.permute.xlu2 %2547  ;;  %v2242_v45 = vpop.permute.xlu1 %2241 }
 0x466   :  { %v2570_v49 = vsel %vm1617_vm7, %v6227_v19, %v6509_v38  ;;  %v6518_v11 = vsel %vm1212_vm5, %v6503_v7, %v2242_v45 }
 0x467   :  { %8302 = vst [vmem:[#allocation158_spill] sm:$0xff] %v6518_v11  ;;  %v2586_v60 = vmul.f32 %v2570_v49, %v8303_v59 }
 0x469   :  { %2745 = vmatpush.msrb.mxu3 %v2586_v60 }
 0x46a   :  { %2433 = vrot.lane.b32.xlu0 %v6180_v22, %s3244_s30 }
 0x46b   :  { %2495 = vrot.lane.b32.xlu2 %v6186_v35, %s3247_s12  ;;  %2421 = vrot.lane.b32.xlu1 %v5995_v63, %s3244_s30 }
 0x46c   :  { %v6528_v44 = vpop.permute.xlu0 %2227 }
 0x46d   :  { %v6530_v19 = vpop.permute.xlu2 %2107  ;;  %v6532_v40 = vpop.permute.xlu1 %2099 }
 0x46e   :  { %8304 = vst [vmem:[#allocation159_spill] sm:$0xff] %v6530_v19  ;;  %v6538_v39 = vsel %vm1050_vm4, %v6530_v19, %v6393_v55 }
 0x46f   :  { %8305 = vst [vmem:[#allocation160_spill] sm:$0xff] %v6538_v39 }
 0x472   :  { %2557 = vrot.lane.b32.xlu0 %v6069_v57, %s3248_s13 }
 0x473   :  { %2431 = vrot.lane.b32.xlu2 %v6186_v35, %s3244_s30  ;;  %2357 = vrot.lane.b32.xlu1 %v5995_v63, %s3245_s10 }
 0x474   :  { %v6546_v49 = vpop.permute.xlu0 %2171 }
 0x475   :  { %8306 = vst [vmem:[#allocation161_spill] sm:$0xff] %v6546_v49  ;;  %v2418_v59 = vpop.permute.xlu2 %2417  ;;  %v6552_v60 = vsel %vm1131_vm0, %v6355_v51, %v6546_v49  ;;  %v6554_v55 = vpop.permute.xlu1 %2291  ;;  %v8308_v49 = vperm.slane %v4762_v17, 5 }
 0x476   :  { %8307 = vst [vmem:[#allocation162_spill] sm:$0xff] %v6552_v60 }
 0x47a   :  { %2303 = vrot.lane.b32.xlu0 %v6186_v35, %s3246_s11 }
 0x47b   :  { %2369 = vrot.lane.b32.xlu2 %v6180_v22, %s3245_s10  ;;  %2367 = vrot.lane.b32.xlu1 %v6186_v35, %s3245_s10 }
 0x47c   :  { %v2342_v39 = vpop.permute.xlu0 %2341 }
 0x47d   :  { %v6562_v19 = vpop.permute.xlu2 %2353  ;;  %v2384_v16 = vsel %vm1374_vm1, %v2342_v39, %v6116_v1  ;;  %v2385_v51 = vsel %vm1374_vm1, %v6343_v47, %v2342_v39  ;;  %v6570_v60 = vpop.permute.xlu1 %2483  ;;  %v2321_v1 = vsel %vm1293_vm2, %v6307_v0, %v6042_v29  ;;  %v8310_v39 = vperm.slane %v5121_v26, 7 }
 0x47e   :  { %v2387_v54 = vmul.f32 %v2385_v51, %v8308_v49  ;;  %v2388_v7 = vmul.f32 %v2384_v16, %v8309_v34  ;;  %v2506_v35 = vsel %vm1536_vm3, %v6285_v28, %v6570_v60  ;;  %v2257_v34 = vsel %vm1212_vm5, %v6287_v2, %v6024_v46 }
 0x47f   :  { %v2522_v11 = vmul.f32 %v2506_v35, %v8310_v39  ;;  %v8311_v16 = vperm.slane %v4757_v9, 3  ;;  %v2193_v35 = vsel %vm1131_vm0, %v6339_v8, %v6044_v3  ;;  %v8312_v46 = vperm.slane %v4757_v9, 2 }
 0x480   :  { %2608 = vmatpush.msra.mxu0 %v2387_v54  ;;  %2628 = vmatpush.msra.mxu1 %v2388_v7 }
 0x481   :  { %2746 = vmatpush.msrb.mxu3 %v2522_v11  ;;  %v2324_v49 = vmul.f32 %v2321_v1, %v8311_v16  ;;  %v2260_v29 = vmul.f32 %v2257_v34, %v8312_v46  ;;  %v8313_v11 = vperm.slane %v4757_v9, 1  ;;  %v8314_v1 = vperm.slane %v5121_v26, 6 }
 0x482   :  { %2299 = vrot.lane.b32.xlu0 %v6253_v15, %s3246_s11  ;;  %2629 = vmatpush.msra.mxu1 %v5910_v5  ;;  %v2129_v5 = vsel %vm1050_vm4, %v6275_v31, %v6014_v4  ;;  %v2258_v4 = vsel %vm1212_vm5, %v2242_v45, %v6287_v2  ;;  %v8315_v34 = vperm.slane %v4762_v17, 3  ;;  %v2130_v2 = vsel %vm1050_vm4, %v6415_v10, %v6275_v31 }
 0x483   :  { %2301 = vrot.lane.b32.xlu2 %v6069_v57, %s3246_s11  ;;  %2493 = vrot.lane.b32.xlu1 %v6069_v57, %s3247_s12  ;;  %v2196_v51 = vmul.f32 %v2193_v35, %v8313_v11  ;;  %v8317_v35 = vperm.slane %v4762_v17, 2  ;;  %v8320_v11 = vperm.slane %v5121_v26, 5 }
 0x484   :  { %2609 = vmatpush.msra.mxu0 %v6016_v24  ;;  %2630 = vmatpush.msra.mxu1 %v2324_v49  ;;  %v6606_v28 = vpop.permute.xlu0 %2419  ;;  %v8316_v49 = vperm.slane %v4757_v9, 0  ;;  %v8318_v9 = vperm.slane %v4762_v17, 1 }
 0x485   :  { %v6612_v3 = vpop.permute.xlu2 %2305  ;;  %v2442_v54 = vsel %vm1455_vm6, %v2418_v59, %v6606_v28  ;;  %v6617_v7 = vpop.permute.xlu1 %2235 }
 0x486   :  { %v2322_v24 = vsel %vm1293_vm2, %v6612_v3, %v6307_v0  ;;  %v2458_v39 = vmul.f32 %v2442_v54, %v8314_v1  ;;  %2631 = vmatpush.msra.mxu1 %v2260_v29  ;;  %v2132_v46 = vmul.f32 %v2129_v5, %v8316_v49  ;;  %v2194_v0 = vsel %vm1131_vm0, %v6464_v18, %v6339_v8 }
 0x487   :  { %v2323_v16 = vmul.f32 %v2322_v24, %v8315_v34  ;;  %v2259_v29 = vmul.f32 %v2258_v4, %v8317_v35  ;;  %v2195_v45 = vmul.f32 %v2194_v0, %v8318_v9  ;;  %v8319_v5 = vperm.slane %v4762_v17, 0  ;;  %v2082_v17 = vld [vmem:[%s7246_s8] sm:$0xff] }
 0x488   :  { %2632 = vmatpush.msra.mxu1 %v2196_v51  ;;  %2747 = vmatpush.msrb.mxu3 %v2458_v39  ;;  %v2315_v1 = vsel %vm1293_vm2, %v6230_v32, %v6273_v42  ;;  %v8321_v39 = vperm.slane %v5087_v43, 6  ;;  %v2081_v34 = vld [vmem:[%s7245_s7] sm:$0xff]  ;;  %v8323_v0 = vperm.slane %v5121_v26, 2  ;;  %s3250_s7 = smov [#allocation8]  }
 0x489   :  { %2610 = vmatpush.msra.mxu0 %v2323_v16  ;;  %v2131_v54 = vmul.f32 %v2130_v2, %v8319_v5  ;;  %v8322_v16 = vperm.slane %v5121_v26, 3  ;;  %v2123_v2 = vsel %vm1050_vm4, %v6212_v52, %v6261_v27  ;;  %s3029_s8 = sshll.u32 %s3250_s7, 4  ;;  %s3030_s8 = int_to_ptr.vmem [resolvable:$true] %s3029_s8 }
 0x48a   :  { %2633 = vmatpush.msra.mxu1 %v2132_v46  ;;  %v2187_v46 = vsel %vm1131_vm0, %v6225_v30, %v6205_v14 }
 0x48b   :  { %2365 = vrot.lane.b32.xlu2 %v6069_v57, %s3245_s10  ;;  %2429 = vrot.lane.b32.xlu1 %v6069_v57, %s3244_s30  ;;  %v2330_v49 = vmul.f32 %v2315_v1, %v8322_v16  ;;  %v8327_v1 = vperm.slane %v5121_v26, 0 }
 0x48c   :  { %2611 = vmatpush.msra.mxu0 %v2259_v29  ;;  %3062 = vmatmul.msk.f32.vlgmr.msra.gmra.mxu1 %vm1666_vm8, %v6495_v23  ;;  %v6652_v8 = vpop.permute.xlu0 %2355 }
 0x48d   :  { %v6654_v18 = vpop.permute.xlu2 %2551  ;;  %v2378_v31 = vsel %vm1374_vm1, %v6562_v19, %v6652_v8  ;;  %v6660_v10 = vpop.permute.xlu1 %2415 }
 0x48e   :  { %v2394_v51 = vmul.f32 %v2378_v31, %v8320_v11  ;;  %2612 = vmatpush.msra.mxu0 %v2195_v45  ;;  %v2443_v24 = vsel %vm1455_vm6, %v6660_v10, %v2418_v59  ;;  %v2251_v59 = vsel %vm1212_vm5, %v6166_v25, %v6265_v53 }
 0x48f   :  { %v2457_v4 = vmul.f32 %v2443_v24, %v8321_v39  ;;  %v2266_v35 = vmul.f32 %v2251_v59, %v8323_v0  ;;  %v2138_v39 = vmul.f32 %v2123_v2, %v8327_v1  ;;  %v8330_v59 = vld [vmem:[#allocation125_spill] sm:$0xff] }
 0x490   :  { %2613 = vmatpush.msra.mxu0 %v2131_v54  ;;  %2748 = vmatpush.msrb.mxu3 %v2394_v51  ;;  %v8325_v54 = vperm.slane %v5087_v43, 5  ;;  %v8326_v51 = vld [vmem:[#allocation128_spill] sm:$0xff] }
 0x491   :  { %3061 = vmatmul.msk.f32.vlgmr.msra.gmra.mxu0 %vm1666_vm8, %v6495_v23  ;;  %2727 = vmatpush.msrb.mxu2 %v2457_v4  ;;  %v2316_v24 = vsel %vm1293_vm2, %v8326_v51, %v6230_v32  ;;  %v8328_v4 = vld [vmem:[#allocation133_spill] sm:$0xff] }
 0x492   :  { %2749 = vmatpush.msrb.mxu3 %v5978_v58  ;;  %v8324_v58 = vperm.slane %v5121_v26, 1  ;;  %v8331_v26 = vperm.slane %v5087_v43, 2 }
 0x493   :  { %2941 = vperm.xlu2 %3096, %v2082_v17   ;;  %2920 = vperm.xlu1 %3098, %v2081_v34   ;;  %v2252_v17 = vsel %vm1212_vm5, %v8328_v4, %v6166_v25 }
 0x494   :  { %v2478_v29 = vpop.permute.xlu0 %2477  ;;  %2750 = vmatpush.msrb.mxu3 %v2330_v49  ;;  %v2202_v31 = vmul.f32 %v2187_v46, %v8324_v58  ;;  %v2265_v16 = vmul.f32 %v2252_v17, %v8331_v26  ;;  %v8332_v49 = vld [vmem:[#allocation129_spill] sm:$0xff] }
 0x495   :  { %v2350_v9 = vpop.permute.xlu2 %2349  ;;  %v2352_v45 = vpop.permute.xlu1 %2351  ;;  %v2188_v46 = vsel %vm1131_vm0, %v8332_v49, %v6225_v30  ;;  %v2509_v58 = vsel %vm1536_vm3, %v6395_v12, %v2478_v29  ;;  %v8338_v17 = vld [vmem:[#allocation109_spill] sm:$0xff]  ;;  %v8340_v12 = vperm.slane %v5087_v43, 1 }
 0x496   :  { %v2379_v5 = vsel %vm1374_vm1, %v2352_v45, %v6562_v19  ;;  %2751 = vmatpush.msrb.mxu3 %v2266_v35  ;;  %v8329_v19 = vperm.slane %v5087_v43, 3  ;;  %v8333_v35 = vld [vmem:[#allocation137_spill] sm:$0xff] }
 0x497   :  { %v2393_v11 = vmul.f32 %v2379_v5, %v8325_v54  ;;  %v2508_v2 = vsel %vm1536_vm3, %v2478_v29, %v8333_v35  ;;  %v8335_v54 = vld [vmem:[#allocation131_spill] sm:$0xff]  ;;  %v2201_v29 = vmul.f32 %v2188_v46, %v8340_v12 }
 0x498   :  { %2752 = vmatpush.msrb.mxu3 %v2202_v31  ;;  %v2329_v34 = vmul.f32 %v2316_v24, %v8329_v19  ;;  %v8334_v31 = vld [vmem:[#allocation135_spill] sm:$0xff]  ;;  %v8336_v24 = vld [vmem:[#allocation108_spill] sm:$0xff]  ;;  %v8339_v19 = vperm.slane %v8338_v17, 0 }
 0x499   :  { %2728 = vmatpush.msrb.mxu2 %v2393_v11  ;;  %v2124_v11 = vsel %vm1050_vm4, %v8335_v54, %v6212_v52  ;;  %v8337_v1 = vperm.slane %v8336_v24, 0 }
 0x49a   :  { %2753 = vmatpush.msrb.mxu3 %v2138_v39 }
 0x49b   :  { %2729 = vmatpush.msrb.mxu2 %v8330_v59  ;;  %3068 = vmatmul.msk.f32.vlgmr.msrb.gmra.mxu3 %vm1666_vm8, %v6495_v23  ;;  %v8341_v59 = vld [vmem:[#allocation99_spill] sm:$0xff] }
 0x49c   :  { %v2554_v32 = vpop.permute.xlu0 %2553  ;;  %v8342_v26 = vperm.slane %v8341_v59, 7 }
 0x49d   :  { %v6728_v0 = vpop.permute.xlu2 %2491  ;;  %2730 = vmatpush.msrb.mxu2 %v2329_v34  ;;  %v2542_v25 = vpop.permute.xlu1 %2541  ;;  %v2567_v52 = vsel %vm1617_vm7, %v6654_v18, %v2554_v32 }
 0x49e   :  { %v2572_v5 = vsel %vm1617_vm7, %v2542_v25, %v8334_v31  ;;  %v2573_v30 = vsel %vm1617_vm7, %v6377_v36, %v2542_v25  ;;  %v2519_v35 = vmul.f32 %v2509_v58, %v8342_v26  ;;  %v8343_v31 = vld [vmem:[#allocation107_spill] sm:$0xff] }
 0x49f   :  { %v2583_v39 = vmul.f32 %v2573_v30, %v8337_v1  ;;  %v2584_v34 = vmul.f32 %v2572_v5, %v8339_v19  ;;  %2731 = vmatpush.msrb.mxu2 %v2265_v16  ;;  %v8344_v36 = vperm.slane %v8343_v31, 7  ;;  %v8345_v30 = vperm.slane %v5087_v43, 0  ;;  %v8346_v16 = vld [vmem:[#allocation113_spill] sm:$0xff] }
 0x4a0   :  { %v8347_v46 = vperm.slane %v8346_v16, 0  ;;  %v2381_v43 = vsel %vm1374_vm1, %v6431_v33, %v2350_v9  ;;  %v8348_v19 = vperm.slane %v8341_v59, 6  ;;  %v8349_v12 = vperm.slane %v8343_v31, 6  ;;  %v8355_v16 = vld [vmem:[#allocation124_spill] sm:$0xff] }
 0x4a1   :  { %v2520_v25 = vmul.f32 %v2508_v2, %v8344_v36  ;;  %2685 = vmatpush.msrb.mxu0 %v2583_v39  ;;  %2705 = vmatpush.msrb.mxu1 %v2584_v34  ;;  %v2137_v24 = vmul.f32 %v2124_v11, %v8345_v30  ;;  %v2380_v11 = vsel %vm1374_vm1, %v2350_v9, %v2352_v45  ;;  %v8350_v33 = vperm.slane %v8341_v59, 5 }
 0x4a2   :  { %2732 = vmatpush.msrb.mxu2 %v2201_v29  ;;  %v2589_v5 = vmul.f32 %v2567_v52, %v8347_v46  ;;  %v8351_v9 = vperm.slane %v8343_v31, 5  ;;  %v2254_v36 = vsel %vm1212_vm5, %v6111_v20, %v6397_v21  ;;  %v8353_v30 = vperm.slane %v8343_v31, 3  ;;  %v8356_v46 = vld [vmem:[#allocation148_spill] sm:$0xff] }
 0x4a3   :  { %2686 = vmatpush.msrb.mxu0 %v2519_v35  ;;  %2706 = vmatpush.msrb.mxu1 %v2520_v25  ;;  %v2391_v26 = vmul.f32 %v2381_v43, %v8350_v33  ;;  %v2253_v35 = vsel %vm1212_vm5, %v6397_v21, %v8328_v4  ;;  %v2189_v20 = vsel %vm1131_vm0, %v8356_v46, %v8332_v49  ;;  %v8361_v49 = vld [vmem:[#allocation152_spill] sm:$0xff]  ;;  %v8363_v33 = vperm.slane %v8343_v31, 1 }
 0x4a4   :  { %2733 = vmatpush.msrb.mxu2 %v2137_v24  ;;  %v6763_v58 = vpop.permute.xlu0 %2487  ;;  %v2392_v45 = vmul.f32 %v2380_v11, %v8351_v9  ;;  %v8354_v24 = vld [vmem:[#allocation130_spill] sm:$0xff]  ;;  %v2190_v21 = vsel %vm1131_vm0, %v6094_v48, %v8356_v46  ;;  %v8358_v11 = vperm.slane %v8343_v31, 2  ;;  %v2125_v48 = vsel %vm1050_vm4, %v8361_v49, %v8335_v54 }
 0x4a5   :  { %3067 = vmatmul.msk.f32.vlgmr.msrb.gmra.mxu2 %vm1666_vm8, %v6495_v23  ;;  %v6767_v2 = vpop.permute.xlu2 %2427  ;;  %v2414_v1 = vpop.permute.xlu1 %2413  ;;  %v8364_v9 = vperm.slane %v8341_v59, 0 }
 0x4a6   :  { %2805 = vmatpush.msra.mxu2 %v2589_v5  ;;  %v2444_v39 = vsel %vm1455_vm6, %v2414_v1, %v6660_v10  ;;  %v2445_v17 = vsel %vm1455_vm6, %v6413_v13, %v2414_v1  ;;  %v2317_v10 = vsel %vm1293_vm2, %v6429_v56, %v8326_v51  ;;  %v2318_v13 = vsel %vm1293_vm2, %v6151_v62, %v6429_v56 }
 0x4a7   :  { %v2455_v34 = vmul.f32 %v2445_v17, %v8348_v19  ;;  %v2456_v29 = vmul.f32 %v2444_v39, %v8349_v12  ;;  %v8352_v51 = vperm.slane %v8341_v59, 3  ;;  %v2328_v62 = vmul.f32 %v2317_v10, %v8353_v30  ;;  %v8359_v17 = vld [vmem:[#allocation114_spill] sm:$0xff]  ;;  %v8368_v30 = vld [vmem:[#allocation119_spill] sm:$0xff] }
 0x4a8   :  { %v8357_v1 = vperm.slane %v8341_v59, 2  ;;  %v2264_v39 = vmul.f32 %v2253_v35, %v8358_v11  ;;  %v8360_v19 = vperm.slane %v8359_v17, 0  ;;  %v8362_v12 = vperm.slane %v8341_v59, 1 }
 0x4a9   :  { %2687 = vmatpush.msrb.mxu0 %v2455_v34  ;;  %2707 = vmatpush.msrb.mxu1 %v2456_v29  ;;  %v2327_v52 = vmul.f32 %v2318_v13, %v8352_v51  ;;  %v8365_v10 = vperm.slane %v8343_v31, 0  ;;  %v8366_v31 = vld [vmem:[#allocation115_spill] sm:$0xff] }
 0x4aa   :  { %v2263_v43 = vmul.f32 %v2254_v36, %v8357_v1  ;;  %v2199_v29 = vmul.f32 %v2190_v21, %v8362_v12  ;;  %v8367_v51 = vperm.slane %v8366_v31, 7  ;;  %v8370_v1 = vld [vmem:[#allocation111_spill] sm:$0xff] }
 0x4ab   :  { %2688 = vmatpush.msrb.mxu0 %v2391_v26  ;;  %2708 = vmatpush.msrb.mxu1 %v2392_v45  ;;  %v2200_v26 = vmul.f32 %v2189_v20, %v8363_v33  ;;  %v2136_v54 = vmul.f32 %v2125_v48, %v8365_v10 }
 0x4ac   :  { %v6804_v25 = vpop.permute.xlu0 %2423 }
 0x4ad   :  { %v6810_v56 = vpop.permute.xlu2 %2363  ;;  %2689 = vmatpush.msrb.mxu0 %v8354_v24  ;;  %2709 = vmatpush.msrb.mxu1 %v8355_v16  ;;  %v6814_v4 = vpop.permute.xlu1 %2555 }
 0x4ae   :  { %v2566_v5 = vsel %vm1617_vm7, %v2554_v32, %v6814_v4  ;;  %v2126_v32 = vsel %vm1050_vm4, %v6133_v50, %v8361_v49 }
 0x4af   :  { %v2590_v34 = vmul.f32 %v2566_v5, %v8360_v19  ;;  %2690 = vmatpush.msrb.mxu0 %v2327_v52  ;;  %2710 = vmatpush.msrb.mxu1 %v2328_v62  ;;  %v2135_v45 = vmul.f32 %v2126_v32, %v8364_v9  ;;  %v8369_v62 = vperm.slane %v8368_v30, 7 }
 0x4b1   :  { %2691 = vmatpush.msrb.mxu0 %v2263_v43  ;;  %2711 = vmatpush.msrb.mxu1 %v2264_v39  ;;  %v8371_v43 = vperm.slane %v8370_v1, 0  ;;  %v8372_v39 = vld [vmem:[#allocation116_spill] sm:$0xff] }
 0x4b2   :  { %2825 = vmatpush.msra.mxu3 %v2590_v34  ;;  %v8373_v17 = vperm.slane %v8372_v39, 0 }
 0x4b3   :  { %2692 = vmatpush.msrb.mxu0 %v2199_v29  ;;  %2712 = vmatpush.msrb.mxu1 %v2200_v26 }
 0x4b4   :  { %v6849_v13 = vpop.permute.xlu0 %2359 }
 0x4b5   :  { %v6851_v50 = vpop.permute.xlu2 %2559  ;;  %2693 = vmatpush.msrb.mxu0 %v2135_v45  ;;  %2713 = vmatpush.msrb.mxu1 %v2136_v54  ;;  %v2490_v35 = vpop.permute.xlu1 %2489  ;;  %v8376_v45 = vperm.slane %v8366_v31, 5  ;;  %v8377_v54 = vperm.slane %v8368_v30, 5 }
 0x4b6   :  { %v2502_v36 = vsel %vm1536_vm3, %v2490_v35, %v6728_v0  ;;  %v2503_v59 = vsel %vm1536_vm3, %v6763_v58, %v2490_v35  ;;  %3065 = vmatmul.msk.f32.vlgmr.msrb.gmra.mxu0 %vm1666_vm8, %v6495_v23  ;;  %3066 = vmatmul.msk.f32.vlgmr.msrb.gmra.mxu1 %vm1666_vm8, %v6495_v23 }
 0x4b7   :  { %v2525_v52 = vmul.f32 %v2503_v59, %v8367_v51  ;;  %v2526_v24 = vmul.f32 %v2502_v36, %v8369_v62  ;;  %v8378_v59 = vld [vmem:[#allocation150_spill] sm:$0xff]  ;;  %v8379_v51 = vld [vmem:[#allocation140_spill] sm:$0xff] }
 0x4b9   :  { %2806 = vmatpush.msra.mxu2 %v2525_v52  ;;  %2826 = vmatpush.msra.mxu3 %v2526_v24  ;;  %v2247_v52 = vsel %vm1212_vm5, %v8379_v51, %v8378_v59 }
 0x4bc   :  { %v2550_v16 = vpop.permute.xlu0 %2549 }
 0x4bd   :  { %v2296_v46 = vpop.permute.xlu2 %2295  ;;  %v2568_v20 = vsel %vm1617_vm7, %v2550_v16, %v6654_v18  ;;  %v2569_v21 = vsel %vm1617_vm7, %v6509_v38, %v2550_v16  ;;  %v2426_v5 = vpop.permute.xlu1 %2425  ;;  %v8374_v18 = vperm.slane %v8366_v31, 6  ;;  %v8375_v38 = vperm.slane %v8368_v30, 6 }
 0x4be   :  { %v2587_v11 = vmul.f32 %v2569_v21, %v8371_v43  ;;  %v2588_v19 = vmul.f32 %v2568_v20, %v8373_v17  ;;  %v2438_v34 = vsel %vm1455_vm6, %v2426_v5, %v6767_v2  ;;  %v2439_v49 = vsel %vm1455_vm6, %v6804_v25, %v2426_v5  ;;  %v8381_v21 = vld [vmem:[#allocation110_spill] sm:$0xff]  ;;  %v8383_v43 = vld [vmem:[#allocation112_spill] sm:$0xff] }
 0x4bf   :  { %v2461_v48 = vmul.f32 %v2439_v49, %v8374_v18  ;;  %v2462_v32 = vmul.f32 %v2438_v34, %v8375_v38  ;;  %v8380_v16 = vperm.slane %v8368_v30, 3  ;;  %v8382_v5 = vperm.slane %v8381_v21, 7  ;;  %v8386_v49 = vld [vmem:[#allocation144_spill] sm:$0xff]  ;;  %v8387_v18 = vld [vmem:[#allocation143_spill] sm:$0xff] }
 0x4c0   :  { %2765 = vmatpush.msra.mxu0 %v2587_v11  ;;  %2785 = vmatpush.msra.mxu1 %v2588_v19  ;;  %v8384_v11 = vperm.slane %v8383_v43, 7  ;;  %v8385_v17 = vperm.slane %v8368_v30, 2 }
 0x4c1   :  { %2807 = vmatpush.msra.mxu2 %v2461_v48  ;;  %2827 = vmatpush.msra.mxu3 %v2462_v32  ;;  %v8389_v48 = vld [vmem:[#allocation149_spill] sm:$0xff] }
 0x4c2   :  { %v2270_v19 = vmul.f32 %v2247_v52, %v8385_v17  ;;  %v8390_v32 = vld [vmem:[#allocation145_spill] sm:$0xff]  ;;  %v8393_v52 = vld [vmem:[#allocation136_spill] sm:$0xff] }
 0x4c3   :  { %v8400_v17 = vld [vmem:[#allocation141_spill] sm:$0xff] }
 0x4c4   :  { %v2562_v12 = vpop.permute.xlu0 %2561 }
 0x4c5   :  { %v2362_v29 = vpop.permute.xlu1 %2361  ;;  %v6887_v33 = vpop.permute.xlu2 %2495 }
 0x4c6   :  { %v2374_v26 = vsel %vm1374_vm1, %v2362_v29, %v6810_v56  ;;  %v2375_v9 = vsel %vm1374_vm1, %v6849_v13, %v2362_v29  ;;  %v2578_v29 = vsel %vm1617_vm7, %v2562_v12, %v8390_v32 }
 0x4c7   :  { %v2397_v10 = vmul.f32 %v2375_v9, %v8376_v45  ;;  %v2398_v35 = vmul.f32 %v2374_v26, %v8377_v54  ;;  %v8391_v26 = vperm.slane %v8368_v30, 0 }
 0x4c9   :  { %2808 = vmatpush.msra.mxu2 %v2397_v10  ;;  %2828 = vmatpush.msra.mxu3 %v2398_v35  ;;  %v8392_v10 = vld [vmem:[#allocation142_spill] sm:$0xff] }
 0x4cb   :  { %2809 = vmatpush.msra.mxu2 %v6005_v41  ;;  %2829 = vmatpush.msra.mxu3 %v6049_v6 }
 0x4cc   :  { %v6901_v36 = vpop.permute.xlu0 %2297 }
 0x4cd   :  { %v2311_v62 = vsel %vm1293_vm2, %v2296_v46, %v6901_v36  ;;  %v2486_v24 = vpop.permute.xlu1 %2485  ;;  %v6924_v34 = vpop.permute.xlu2 %2431 }
 0x4ce   :  { %v2334_v20 = vmul.f32 %v2311_v62, %v8380_v16  ;;  %v2504_v41 = vsel %vm1536_vm3, %v2486_v24, %v6763_v58  ;;  %v2505_v6 = vsel %vm1536_vm3, %v6570_v60, %v2486_v24  ;;  %v2119_v58 = vsel %vm1050_vm4, %v8387_v18, %v8386_v49  ;;  %v8394_v24 = vld [vmem:[#allocation123_spill] sm:$0xff] }
 0x4cf   :  { %v2523_v1 = vmul.f32 %v2505_v6, %v8382_v5  ;;  %v2524_v39 = vmul.f32 %v2504_v41, %v8384_v11  ;;  %v8388_v60 = vperm.slane %v8368_v30, 1  ;;  %v2142_v9 = vmul.f32 %v2119_v58, %v8391_v26  ;;  %v8396_v41 = vld [vmem:[#allocation122_spill] sm:$0xff] }
 0x4d0   :  { %2830 = vmatpush.msra.mxu3 %v2334_v20  ;;  %v2248_v62 = vsel %vm1212_vm5, %v8393_v52, %v8379_v51  ;;  %v8395_v16 = vperm.slane %v8394_v24, 0  ;;  %v8397_v6 = vperm.slane %v8396_v41, 7 }
 0x4d1   :  { %2766 = vmatpush.msra.mxu0 %v2523_v1  ;;  %2786 = vmatpush.msra.mxu1 %v2524_v39  ;;  %v2206_v38 = vmul.f32 %v8389_v48, %v8388_v60  ;;  %v8398_v1 = vperm.slane %v8366_v31, 3  ;;  %v8399_v39 = vld [vmem:[#allocation138_spill] sm:$0xff]  ;;  %v8402_v60 = vld [vmem:[#allocation139_spill] sm:$0xff] }
 0x4d2   :  { %2831 = vmatpush.msra.mxu3 %v2270_v19  ;;  %v2594_v20 = vmul.f32 %v2578_v29, %v8395_v16  ;;  %v2184_v51 = vsel %vm1131_vm0, %v8400_v17, %v8399_v39  ;;  %v8401_v19 = vperm.slane %v8366_v31, 2  ;;  %v2563_v29 = vsel %vm1617_vm7, %v6851_v50, %v2562_v12 }
 0x4d3   :  { %v8406_v12 = vperm.slane %v8396_v41, 6  ;;  %v8410_v39 = vperm.slane %v8383_v43, 6 }
 0x4d4   :  { %v2498_v45 = vpop.permute.xlu0 %2497  ;;  %2832 = vmatpush.msra.mxu3 %v2206_v38  ;;  %v2269_v58 = vmul.f32 %v2248_v62, %v8401_v19  ;;  %v8403_v38 = vperm.slane %v8366_v31, 1  ;;  %v8405_v62 = vld [vmem:[#allocation147_spill] sm:$0xff] }
 0x4d5   :  { %v2514_v54 = vsel %vm1536_vm3, %v2498_v45, %v8392_v10  ;;  %v2294_v35 = vpop.permute.xlu1 %2293  ;;  %v2370_v48 = vpop.permute.xlu2 %2369  ;;  %v2499_v16 = vsel %vm1536_vm3, %v6887_v33, %v2498_v45 }
 0x4d6   :  { %v2530_v5 = vmul.f32 %v2514_v54, %v8397_v6  ;;  %v2312_v30 = vsel %vm1293_vm2, %v2294_v35, %v2296_v46  ;;  %2833 = vmatpush.msra.mxu3 %v2142_v9  ;;  %v2120_v46 = vsel %vm1050_vm4, %v8402_v60, %v8387_v18  ;;  %v2205_v32 = vmul.f32 %v2184_v51, %v8403_v38  ;;  %v8407_v6 = vld [vmem:[#allocation121_spill] sm:$0xff] }
 0x4d7   :  { %v2333_v11 = vmul.f32 %v2312_v30, %v8398_v1  ;;  %3072 = vmatmul.msk.f32.vlgmr.msra.gmra.mxu3 %vm1666_vm8, %v6495_v23  ;;  %v8404_v9 = vperm.slane %v8366_v31, 0  ;;  %v2386_v54 = vsel %vm1374_vm1, %v2370_v48, %v6343_v47  ;;  %v8409_v1 = vperm.slane %v8381_v21, 6 }
 0x4d8   :  { %2905 = vmatpush.msrb.mxu3 %v2594_v20  ;;  %v8411_v51 = vperm.slane %v8396_v41, 5 }
 0x4d9   :  { %2810 = vmatpush.msra.mxu2 %v2333_v11  ;;  %v2141_v10 = vmul.f32 %v2120_v46, %v8404_v9 }
 0x4da   :  { %2906 = vmatpush.msrb.mxu3 %v2530_v5  ;;  %v8408_v5 = vperm.slane %v8407_v6, 0  ;;  %v2402_v19 = vmul.f32 %v2386_v54, %v8411_v51  ;;  %v8415_v54 = vperm.slane %v8383_v43, 5  ;;  %v8421_v6 = vperm.slane %v8381_v21, 2 }
 0x4db   :  { %2811 = vmatpush.msra.mxu2 %v2269_v58 }
 0x4dc   :  { %v2434_v26 = vpop.permute.xlu0 %2433  ;;  %v2593_v30 = vmul.f32 %v2563_v29, %v8408_v5 }
 0x4dd   :  { %v2450_v18 = vsel %vm1455_vm6, %v2434_v26, %v8405_v62  ;;  %2812 = vmatpush.msra.mxu2 %v2205_v32  ;;  %v2422_v24 = vpop.permute.xlu1 %2421 }
 0x4de   :  { %v2466_v20 = vmul.f32 %v2450_v18, %v8406_v12  ;;  %v2440_v31 = vsel %vm1455_vm6, %v2422_v24, %v6804_v25  ;;  %v2441_v47 = vsel %vm1455_vm6, %v6606_v28, %v2422_v24  ;;  %v2435_v25 = vsel %vm1455_vm6, %v6924_v34, %v2434_v26  ;;  %v8412_v28 = vld [vmem:[#allocation127_spill] sm:$0xff] }
 0x4df   :  { %v2459_v11 = vmul.f32 %v2441_v47, %v8409_v1  ;;  %v2460_v45 = vmul.f32 %v2440_v31, %v8410_v39  ;;  %2813 = vmatpush.msra.mxu2 %v2141_v10  ;;  %v8413_v58 = vperm.slane %v8412_v28, 7  ;;  %v8414_v38 = vperm.slane %v8412_v28, 6 }
 0x4e0   :  { %3071 = vmatmul.msk.f32.vlgmr.msra.gmra.mxu2 %vm1666_vm8, %v6495_v23  ;;  %2907 = vmatpush.msrb.mxu3 %v2466_v20  ;;  %v2313_v18 = vsel %vm1293_vm2, %v6554_v55, %v2294_v35  ;;  %v8416_v24 = vperm.slane %v8381_v21, 5  ;;  %v8417_v35 = vperm.slane %v8383_v43, 3  ;;  %v8422_v1 = vperm.slane %v8396_v41, 3 }
 0x4e1   :  { %v2529_v46 = vmul.f32 %v2499_v16, %v8413_v58  ;;  %2885 = vmatpush.msrb.mxu2 %v2593_v30  ;;  %2767 = vmatpush.msra.mxu0 %v2459_v11  ;;  %v2465_v32 = vmul.f32 %v2435_v25, %v8414_v38  ;;  %v2314_v16 = vsel %vm1293_vm2, %v6273_v42, %v6554_v55  ;;  %v8418_v55 = vperm.slane %v8381_v21, 3  ;;  %v8427_v58 = vld [vmem:[#allocation158_spill] sm:$0xff] }
 0x4e2   :  { %2787 = vmatpush.msra.mxu1 %v2460_v45  ;;  %2908 = vmatpush.msrb.mxu3 %v2402_v19  ;;  %v2332_v12 = vmul.f32 %v2313_v18, %v8417_v35  ;;  %v2185_v42 = vsel %vm1131_vm0, %v6470_v37, %v8400_v17  ;;  %v2121_v30 = vsel %vm1050_vm4, %v6532_v40, %v8402_v60  ;;  %v8423_v11 = vperm.slane %v8383_v43, 1  ;;  %v8439_v35 = vld [vmem:[#allocation154_spill] sm:$0xff] }
 0x4e3   :  { %2886 = vmatpush.msrb.mxu2 %v2529_v46  ;;  %v2331_v20 = vmul.f32 %v2314_v16, %v8418_v55  ;;  %v2122_v39 = vsel %vm1050_vm4, %v6261_v27, %v6532_v40  ;;  %v8424_v45 = vperm.slane %v8412_v28, 5  ;;  %v8425_v60 = vperm.slane %v8381_v21, 1  ;;  %v8440_v55 = vld [vmem:[#allocation153_spill] sm:$0xff] }
 0x4e4   :  { %v2558_v29 = vpop.permute.xlu0 %2557  ;;  %2909 = vmatpush.msrb.mxu3 %v6180_v22  ;;  %v8426_v25 = vperm.slane %v8396_v41, 2  ;;  %v8428_v27 = vperm.slane %v8383_v43, 0 }
 0x4e5   :  { %2887 = vmatpush.msrb.mxu2 %v2465_v32  ;;  %v2358_v26 = vpop.permute.xlu1 %2357  ;;  %v2564_v38 = vsel %vm1617_vm7, %v2558_v29, %v6851_v50  ;;  %v2565_v32 = vsel %vm1617_vm7, %v6814_v4, %v2558_v29  ;;  %v8430_v50 = vld [vmem:[#allocation157_spill] sm:$0xff]  ;;  %v8434_v4 = vld [vmem:[#allocation132_spill] sm:$0xff] }
 0x4e6   :  { %v2376_v9 = vsel %vm1374_vm1, %v2358_v26, %v6849_v13  ;;  %v2377_v10 = vsel %vm1374_vm1, %v6652_v8, %v2358_v26  ;;  %v2249_v8 = vsel %vm1212_vm5, %v6528_v44, %v8393_v52  ;;  %v2250_v13 = vsel %vm1212_vm5, %v6265_v53, %v6528_v44  ;;  %v8419_v52 = vld [vmem:[#allocation134_spill] sm:$0xff]  ;;  %v8435_v29 = vld [vmem:[#allocation120_spill] sm:$0xff] }
 0x4e7   :  { %v2396_v62 = vmul.f32 %v2376_v9, %v8415_v54  ;;  %v2395_v22 = vmul.f32 %v2377_v10, %v8416_v24  ;;  %v2186_v53 = vsel %vm1131_vm0, %v6205_v14, %v6470_v37  ;;  %v8420_v44 = vperm.slane %v8383_v43, 2  ;;  %v8431_v54 = vld [vmem:[#allocation151_spill] sm:$0xff] }
 0x4e8   :  { %v2267_v5 = vmul.f32 %v2250_v13, %v8421_v6  ;;  %v2203_v19 = vmul.f32 %v2186_v53, %v8425_v60  ;;  %v2274_v46 = vmul.f32 %v8427_v58, %v8426_v25  ;;  %v2140_v40 = vmul.f32 %v2121_v30, %v8428_v27  ;;  %v8445_v30 = vld [vmem:[#allocation126_spill] sm:$0xff] }
 0x4e9   :  { %2788 = vmatpush.msra.mxu1 %v2396_v62  ;;  %2768 = vmatpush.msra.mxu0 %v2395_v22  ;;  %v2268_v47 = vmul.f32 %v2249_v8, %v8420_v44  ;;  %v8429_v9 = vperm.slane %v8381_v21, 0  ;;  %v2244_v43 = vsel %vm1212_vm5, %v8431_v54, %v8430_v50  ;;  %v8432_v62 = vld [vmem:[#allocation118_spill] sm:$0xff]  ;;  %v8436_v22 = vperm.slane %v8435_v29, 0  ;;  %v2675_v50 = vpop.f32.mrf.mxu3  ;;  %v8458_v29 = vld [vmem:[#allocation161_spill] sm:$0xff] }
 0x4ea   :  { %v8433_v18 = vperm.slane %v8432_v62, 0  ;;  %v8437_v8 = vperm.slane %v8412_v28, 3  ;;  %v8438_v13 = vperm.slane %v8396_v41, 1  ;;  %v2246_v62 = vsel %vm1212_vm5, %v8378_v59, %v6617_v7 }
 0x4eb   :  { %2789 = vmatpush.msra.mxu1 %v5995_v63  ;;  %2769 = vmatpush.msra.mxu0 %v8419_v52  ;;  %v2139_v10 = vmul.f32 %v2122_v39, %v8429_v9  ;;  %v2591_v16 = vmul.f32 %v2565_v32, %v8436_v22  ;;  %v8449_v39 = vperm.slane %v8412_v28, 1 }
 0x4ec   :  { %v2304_v31 = vpop.permute.xlu0 %2303  ;;  %v2592_v24 = vmul.f32 %v2564_v38, %v8433_v18 }
 0x4ed   :  { %v2307_v63 = vsel %vm1293_vm2, %v2304_v31, %v6612_v3  ;;  %2790 = vmatpush.msra.mxu1 %v2332_v12  ;;  %v2368_v17 = vpop.permute.xlu1 %2367  ;;  %2770 = vmatpush.msra.mxu0 %v2331_v20  ;;  %v2204_v3 = vmul.f32 %v2185_v42, %v8423_v11  ;;  %v2210_v12 = vmul.f32 %v8439_v35, %v8438_v13  ;;  %v8441_v20 = vld [vmem:[#allocation146_spill] sm:$0xff] }
 0x4ee   :  { %v2338_v14 = vmul.f32 %v2307_v63, %v8422_v1  ;;  %v2371_v37 = vsel %vm1374_vm1, %v2368_v17, %v2370_v48  ;;  %v2302_v48 = vpop.permute.xlu2 %2301  ;;  %v2180_v52 = vsel %vm1131_vm0, %v8441_v20, %v8440_v55  ;;  %v8444_v63 = vld [vmem:[#allocation155_spill] sm:$0xff]  ;;  %v8446_v1 = vperm.slane %v8445_v30, 7  ;;  %v8463_v55 = vld [vmem:[#allocation162_spill] sm:$0xff] }
 0x4ef   :  { %v2401_v51 = vmul.f32 %v2371_v37, %v8424_v45  ;;  %2791 = vmatpush.msra.mxu1 %v2268_v47  ;;  %2771 = vmatpush.msra.mxu0 %v2267_v5  ;;  %v2308_v26 = vsel %vm1293_vm2, %v2302_v48, %v2304_v31  ;;  %v8442_v31 = vperm.slane %v8412_v28, 2  ;;  %v8443_v47 = vperm.slane %v8396_v41, 0  ;;  %v8447_v37 = vld [vmem:[#allocation117_spill] sm:$0xff]  ;;  %v8451_v41 = vld [vmem:[#allocation156_spill] sm:$0xff] }
 0x4f0   :  { %2910 = vmatpush.msrb.mxu3 %v2338_v14  ;;  %v2337_v21 = vmul.f32 %v2308_v26, %v8437_v8  ;;  %v8448_v11 = vperm.slane %v8447_v37, 7  ;;  %v2209_v45 = vmul.f32 %v2180_v52, %v8449_v39  ;;  %v8452_v38 = vperm.slane %v8447_v37, 6 }
 0x4f1   :  { %2792 = vmatpush.msra.mxu1 %v2204_v3  ;;  %2888 = vmatpush.msrb.mxu2 %v2401_v51  ;;  %v2273_v53 = vmul.f32 %v2244_v43, %v8442_v31  ;;  %v2146_v6 = vmul.f32 %v8444_v63, %v8443_v47  ;;  %v8455_v26 = vperm.slane %v8445_v30, 5  ;;  %v2245_v43 = vsel %vm1212_vm5, %v6617_v7, %v8431_v54 }
 0x4f2   :  { %2772 = vmatpush.msra.mxu0 %v2203_v19  ;;  %2911 = vmatpush.msrb.mxu3 %v2274_v46  ;;  %v2181_v54 = vsel %vm1131_vm0, %v8458_v29, %v8441_v20  ;;  %v8459_v59 = vperm.slane %v8447_v37, 2  ;;  %v8460_v8 = vperm.slane %v8445_v30, 2  ;;  %v8464_v52 = vperm.slane %v8445_v30, 1 }
 0x4f3   :  { %2793 = vmatpush.msra.mxu1 %v2140_v40  ;;  %2889 = vmatpush.msrb.mxu2 %v8434_v4  ;;  %v8465_v61 = vperm.slane %v8447_v37, 0  ;;  %v8466_v63 = vperm.slane %v8445_v30, 0 }
 0x4f4   :  { %2773 = vmatpush.msra.mxu0 %v2139_v10  ;;  %3070 = vmatmul.msk.f32.vlgmr.msra.gmra.mxu1 %vm1666_vm8, %v6495_v23  ;;  %v2300_v46 = vpop.permute.xlu0 %2299  ;;  %v2655_v10 = vpop.f32.mrf.mxu2  ;;  %v2208_v31 = vmul.f32 %v2181_v54, %v8464_v52 }
 0x4f5   :  { %3069 = vmatmul.msk.f32.vlgmr.msra.gmra.mxu0 %vm1666_vm8, %v6495_v23  ;;  %2865 = vmatpush.msrb.mxu1 %v2592_v24  ;;  %v2494_v42 = vpop.permute.xlu1 %2493  ;;  %v8457_v24 = vperm.slane %v8445_v30, 3 }
 0x4f6   :  { %2845 = vmatpush.msrb.mxu0 %v2591_v16  ;;  %2890 = vmatpush.msrb.mxu2 %v2337_v21  ;;  %v2500_v44 = vsel %vm1536_vm3, %v2494_v42, %v6887_v33  ;;  %v2501_v5 = vsel %vm1536_vm3, %v6728_v0, %v2494_v42  ;;  %v8450_v33 = vperm.slane %v8412_v28, 0  ;;  %v2366_v51 = vpop.permute.xlu2 %2365  ;;  %v2271_v16 = vmul.f32 %v2246_v62, %v8459_v59 }
 0x4f7   :  { %2912 = vmatpush.msrb.mxu3 %v2210_v12  ;;  %v2528_v14 = vmul.f32 %v2500_v44, %v8446_v1  ;;  %v2527_v3 = vmul.f32 %v2501_v5, %v8448_v11  ;;  %v2373_v19 = vsel %vm1374_vm1, %v6810_v56, %v2366_v51  ;;  %v2372_v25 = vsel %vm1374_vm1, %v2366_v51, %v2368_v17 }
 0x4f8   :  { %2891 = vmatpush.msrb.mxu2 %v2273_v53  ;;  %v2145_v0 = vmul.f32 %v8451_v41, %v8450_v33  ;;  %v8453_v56 = vperm.slane %v8445_v30, 6  ;;  %v8454_v17 = vperm.slane %v8447_v37, 5  ;;  %v2400_v9 = vmul.f32 %v2372_v25, %v8455_v26 }
 0x4f9   :  { %2913 = vmatpush.msrb.mxu3 %v2146_v6  ;;  %2866 = vmatpush.msrb.mxu1 %v2528_v14  ;;  %v2272_v21 = vmul.f32 %v2245_v43, %v8460_v8  ;;  %v8462_v42 = vperm.slane %v8447_v37, 1  ;;  %v8467_v6 = vld [vmem:[#allocation160_spill] sm:$0xff] }
 0x4fa   :  { %3076 = vmatmul.msk.f32.vlgmr.msrb.gmra.mxu3 %vm1666_vm8, %v6495_v23  ;;  %2846 = vmatpush.msrb.mxu0 %v2527_v3  ;;  %v2399_v32 = vmul.f32 %v2373_v19, %v8454_v17  ;;  %v2144_v5 = vmul.f32 %v8467_v6, %v8466_v63 }
 0x4fb   :  { %2892 = vmatpush.msrb.mxu2 %v2209_v45  ;;  %v2207_v20 = vmul.f32 %v8463_v55, %v8462_v42 }
 0x4fd   :  { %2893 = vmatpush.msrb.mxu2 %v2145_v0  ;;  %v2430_v60 = vpop.permute.xlu1 %2429 }
 0x4fe   :  { %3075 = vmatmul.msk.f32.vlgmr.msrb.gmra.mxu2 %vm1666_vm8, %v6495_v23  ;;  %v2436_v28 = vsel %vm1455_vm6, %v2430_v60, %v6924_v34  ;;  %v2437_v58 = vsel %vm1455_vm6, %v6767_v2, %v2430_v60  ;;  %v2309_v34 = vsel %vm1293_vm2, %v2300_v46, %v2302_v48  ;;  %v2310_v2 = vsel %vm1293_vm2, %v6901_v36, %v2300_v46 }
 0x4ff   :  { %v2463_v27 = vmul.f32 %v2437_v58, %v8452_v38  ;;  %v2464_v40 = vmul.f32 %v2436_v28, %v8453_v56  ;;  %v8456_v48 = vperm.slane %v8447_v37, 3  ;;  %v2336_v36 = vmul.f32 %v2309_v34, %v8457_v24 }
 0x501   :  { %2847 = vmatpush.msrb.mxu0 %v2463_v27  ;;  %2867 = vmatpush.msrb.mxu1 %v2464_v40  ;;  %v2335_v18 = vmul.f32 %v2310_v2, %v8456_v48 }
 0x503   :  { %2848 = vmatpush.msrb.mxu0 %v2399_v32  ;;  %2868 = vmatpush.msrb.mxu1 %v2400_v9 }
 0x505   :  { %2849 = vmatpush.msrb.mxu0 %v6253_v15  ;;  %2869 = vmatpush.msrb.mxu1 %v6069_v57  ;;  %v7170_v4 = vpop.permute.xlu1 %2920  ;;  %v7182_v15 = vpop.permute.xlu2 %2941  ;;  %v8461_v57 = vld [vmem:[#allocation159_spill] sm:$0xff] }
 0x506   :  { %v2925_v22 = vmul.f32 %v7170_v4, %v2655_v10  ;;  %v2926_v7 = vmul.f32 %v7170_v4, %v2675_v50  ;;  %v2118_v13 = vsel %vm1050_vm4, %v8386_v49, %v8461_v57 }
 0x507   :  { %2850 = vmatpush.msrb.mxu0 %v2335_v18  ;;  %2870 = vmatpush.msrb.mxu1 %v2336_v36  ;;  %v2143_v49 = vmul.f32 %v2118_v13, %v8465_v61 }
 0x508   :  { %v2946_v35 = vadd.f32 %v7182_v15, %v2925_v22  ;;  %v2947_v12 = vadd.f32 %v7182_v15, %v2926_v7 }
 0x509   :  { %v2635_v53 = vpop.f32.mrf.mxu1  ;;  %2851 = vmatpush.msrb.mxu0 %v2271_v16  ;;  %2871 = vmatpush.msrb.mxu1 %v2272_v21 }
 0x50a   :  { %vm2962_vm0 = vcmp.gt.f32.partialorder %v2946_v35, 0.0  ;;  %vm2963_vm1 = vcmp.gt.f32.partialorder %v2947_v12, 0.0  ;;  %v2978_v44 = vmul.f32 0.01, %v2946_v35  ;;  %v2979_v47 = vmul.f32 0.01, %v2947_v12 }
 0x50b   :  { %v2924_v1 = vmul.f32 %v7170_v4, %v2635_v53  ;;  %2852 = vmatpush.msrb.mxu0 %v2207_v20  ;;  %2872 = vmatpush.msrb.mxu1 %v2208_v31 }
 0x50c   :  { %v2994_v14 = vsel %vm2962_vm0, %v2946_v35, %v2978_v44  ;;  %v2995_v11 = vsel %vm2963_vm1, %v2947_v12, %v2979_v47 }
 0x50d   :  { %3010 = vst [vmem:[#allocation8 + $0x10] sm:$0xff] %v2994_v14  ;;  %v2945_v3 = vadd.f32 %v7182_v15, %v2924_v1  ;;  %2853 = vmatpush.msrb.mxu0 %v2143_v49  ;;  %2873 = vmatpush.msrb.mxu1 %v2144_v5 }
 0x50e   :  { %3011 = vst [vmem:[#allocation8 + $0x18] sm:$0xff] %v2995_v11  ;;  %v2615_v39 = vpop.f32.mrf.mxu0  ;;  %3073 = vmatmul.msk.f32.vlgmr.msrb.gmra.mxu0 %vm1666_vm8, %v6495_v23  ;;  %3074 = vmatmul.msk.f32.vlgmr.msrb.gmra.mxu1 %vm1666_vm8, %v6495_v23 }
 0x50f   :  { %vm2961_vm2 = vcmp.gt.f32.partialorder %v2945_v3, 0.0  ;;  %v2977_v30 = vmul.f32 0.01, %v2945_v3  ;;  %v2923_v37 = vmul.f32 %v7170_v4, %v2615_v39 }
 0x511   :  { %v2993_v45 = vsel %vm2961_vm2, %v2945_v3, %v2977_v30  ;;  %v2944_v33 = vadd.f32 %v7182_v15, %v2923_v37 }
 0x512   :  { %3009 = vst [vmem:[#allocation8 + $0x8] sm:$0xff] %v2993_v45 }
 0x513   :  { %vm2960_vm3 = vcmp.gt.f32.partialorder %v2944_v33, 0.0  ;;  %v2976_v41 = vmul.f32 0.01, %v2944_v33 }
 0x515   :  { %v2992_v0 = vsel %vm2960_vm3, %v2944_v33, %v2976_v41 }
 0x516   :  { %3008 = vst [vmem:[#allocation8] sm:$0xff] %v2992_v0 }
 0x51e   :  { %v2755_v51 = vpop.f32.mrf.mxu3 }
 0x51f   :  { %v2930_v60 = vmul.f32 %v7170_v4, %v2755_v51 }
 0x521   :  { %v2951_v19 = vadd.f32 %v7182_v15, %v2930_v60 }
 0x523   :  { %vm2967_vm4 = vcmp.gt.f32.partialorder %v2951_v19, 0.0  ;;  %v2983_v25 = vmul.f32 0.01, %v2951_v19 }
 0x525   :  { %v2999_v23 = vsel %vm2967_vm4, %v2951_v19, %v2983_v25 }
 0x526   :  { %3015 = vst [vmem:[#allocation8 + $0x38] sm:$0xff] %v2999_v23 }
 0x528   :  { %v2735_v28 = vpop.f32.mrf.mxu2 }
 0x529   :  { %v2929_v58 = vmul.f32 %v7170_v4, %v2735_v28 }
 0x52b   :  { %v2950_v46 = vadd.f32 %v7182_v15, %v2929_v58 }
 0x52d   :  { %vm2966_vm5 = vcmp.gt.f32.partialorder %v2950_v46, 0.0  ;;  %v2982_v38 = vmul.f32 0.01, %v2950_v46 }
 0x52f   :  { %v2998_v27 = vsel %vm2966_vm5, %v2950_v46, %v2982_v38 }
 0x530   :  { %3014 = vst [vmem:[#allocation8 + $0x30] sm:$0xff] %v2998_v27 }
 0x533   :  { %v2695_v56 = vpop.f32.mrf.mxu0  ;;  %v2715_v40 = vpop.f32.mrf.mxu1 }
 0x534   :  { %v2927_v17 = vmul.f32 %v7170_v4, %v2695_v56  ;;  %v2928_v32 = vmul.f32 %v7170_v4, %v2715_v40 }
 0x536   :  { %v2948_v26 = vadd.f32 %v7182_v15, %v2927_v17  ;;  %v2949_v9 = vadd.f32 %v7182_v15, %v2928_v32 }
 0x538   :  { %vm2964_vm6 = vcmp.gt.f32.partialorder %v2948_v26, 0.0  ;;  %v2980_v34 = vmul.f32 0.01, %v2948_v26  ;;  %vm2965_vm7 = vcmp.gt.f32.partialorder %v2949_v9, 0.0  ;;  %v2981_v2 = vmul.f32 0.01, %v2949_v9 }
 0x53a   :  { %v2996_v10 = vsel %vm2964_vm6, %v2948_v26, %v2980_v34  ;;  %v2997_v50 = vsel %vm2965_vm7, %v2949_v9, %v2981_v2 }
 0x53b   :  { %3012 = vst [vmem:[#allocation8 + $0x20] sm:$0xff] %v2996_v10 }
 0x53c   :  { %3013 = vst [vmem:[#allocation8 + $0x28] sm:$0xff] %v2997_v50 }
 0x55a   :  { %v2835_v43 = vpop.f32.mrf.mxu3 }
 0x55b   :  { %v2934_v62 = vmul.f32 %v7170_v4, %v2835_v43 }
 0x55d   :  { %v2955_v48 = vadd.f32 %v7182_v15, %v2934_v62 }
 0x55f   :  { %vm2971_vm8 = vcmp.gt.f32.partialorder %v2955_v48, 0.0  ;;  %v2987_v18 = vmul.f32 0.01, %v2955_v48 }
 0x561   :  { %v3003_v24 = vsel %vm2971_vm8, %v2955_v48, %v2987_v18 }
 0x562   :  { %3020 = vst [vmem:[#allocation8 + $0x58] sm:$0xff] %v3003_v24 }
 0x563   :  { %v2815_v36 = vpop.f32.mrf.mxu2 }
 0x564   :  { %v2933_v29 = vmul.f32 %v7170_v4, %v2815_v36 }
 0x566   :  { %v2954_v54 = vadd.f32 %v7182_v15, %v2933_v29 }
 0x568   :  { %vm2970_vm11 = vcmp.gt.f32.partialorder %v2954_v54, 0.0  ;;  %v2986_v22 = vmul.f32 0.01, %v2954_v54 }
 0x56a   :  { %v3002_v7 = vsel %vm2970_vm11, %v2954_v54, %v2986_v22 }
 0x56b   :  { %3019 = vst [vmem:[#allocation8 + $0x50] sm:$0xff] %v3002_v7 }
 0x571   :  { %v2795_v59 = vpop.f32.mrf.mxu1 }
 0x572   :  { %v2775_v16 = vpop.f32.mrf.mxu0  ;;  %v2932_v8 = vmul.f32 %v7170_v4, %v2795_v59 }
 0x573   :  { %v2931_v21 = vmul.f32 %v7170_v4, %v2775_v16 }
 0x574   :  { %v2953_v57 = vadd.f32 %v7182_v15, %v2932_v8 }
 0x575   :  { %v2952_v13 = vadd.f32 %v7182_v15, %v2931_v21 }
 0x576   :  { %vm2969_vm12 = vcmp.gt.f32.partialorder %v2953_v57, 0.0  ;;  %v2985_v35 = vmul.f32 0.01, %v2953_v57 }
 0x577   :  { %vm2968_vm13 = vcmp.gt.f32.partialorder %v2952_v13, 0.0  ;;  %v2984_v12 = vmul.f32 0.01, %v2952_v13 }
 0x578   :  { %v3001_v42 = vsel %vm2969_vm12, %v2953_v57, %v2985_v35 }
 0x579   :  { %v3000_v55 = vsel %vm2968_vm13, %v2952_v13, %v2984_v12  ;;  %3018 = vst [vmem:[#allocation8 + $0x48] sm:$0xff] %v3001_v42 }
 0x57a   :  { %3017 = vst [vmem:[#allocation8 + $0x40] sm:$0xff] %v3000_v55 }
 0x57d   :  { %v2915_v20 = vpop.f32.mrf.mxu3 }
 0x57e   :  { %v2938_v52 = vmul.f32 %v7170_v4, %v2915_v20 }
 0x580   :  { %v2959_v31 = vadd.f32 %v7182_v15, %v2938_v52 }
 0x581   :  { %v2895_v53 = vpop.f32.mrf.mxu2 }
 0x582   :  { %vm2975_vm14 = vcmp.gt.f32.partialorder %v2959_v31, 0.0  ;;  %v2991_v44 = vmul.f32 0.01, %v2959_v31  ;;  %v2937_v47 = vmul.f32 %v7170_v4, %v2895_v53 }
 0x584   :  { %v3007_v61 = vsel %vm2975_vm14, %v2959_v31, %v2991_v44  ;;  %v2958_v49 = vadd.f32 %v7182_v15, %v2937_v47 }
 0x585   :  { %3024 = vst [vmem:[#allocation8 + $0x78] sm:$0xff] %v3007_v61 }
 0x586   :  { %vm2974_vm15 = vcmp.gt.f32.partialorder %v2958_v49, 0.0  ;;  %v2990_v63 = vmul.f32 0.01, %v2958_v49 }
 0x588   :  { %v3006_v6 = vsel %vm2974_vm15, %v2958_v49, %v2990_v63 }
 0x589   :  { %3023 = vst [vmem:[#allocation8 + $0x70] sm:$0xff] %v3006_v6 }
 0x58b   :  { %v2855_v5 = vpop.f32.mrf.mxu0  ;;  %v2875_v1 = vpop.f32.mrf.mxu1 }
 0x58c   :  { %v2935_v14 = vmul.f32 %v7170_v4, %v2855_v5  ;;  %v2936_v11 = vmul.f32 %v7170_v4, %v2875_v1 }
 0x58e   :  { %v2956_v3 = vadd.f32 %v7182_v15, %v2935_v14  ;;  %v2957_v39 = vadd.f32 %v7182_v15, %v2936_v11 }
 0x590   :  { %vm2972_vm9 = vcmp.gt.f32.partialorder %v2956_v3, 0.0  ;;  %v2988_v30 = vmul.f32 0.01, %v2956_v3  ;;  %vm2973_vm10 = vcmp.gt.f32.partialorder %v2957_v39, 0.0  ;;  %v2989_v37 = vmul.f32 0.01, %v2957_v39 }
 0x592   :  { %v3004_v45 = vsel %vm2972_vm9, %v2956_v3, %v2988_v30  ;;  %v3005_v33 = vsel %vm2973_vm10, %v2957_v39, %v2989_v37 }
 0x593   :  { %3021 = vst [vmem:[#allocation8 + $0x60] sm:$0xff] %v3004_v45 }
 0x594   :  { %3022 = vst [vmem:[#allocation8 + $0x68] sm:$0xff] %v3005_v33 }
 0x595   :  { %3037 = dma.vmem_to_hbm [thread:$0]  %s3030_s8, 2048, %s3032_s25, [#allocation4], %s3233_s17, %s3233_s17, %s3234_s18  }
 0x596   :  { %3230 = dma.done.wait [#allocation4], 2048  }
 0x597   :  { %3231 = vsyncadd [#allocation4], 4294965248 }
 0x598   :  { %3042 = vsyncpa [#allocation3], 1 }
 0x599   :  { %3043 = vsyncpa [#allocation6], 1 }
 0x59a   :  { %3044 = vsyncpa [#allocation4], 1 }

</bundles_post_ra>
